<compile_context>
chip_gen: v6e
topology: v6e:2x2x1
jax: 0.10.0
libtpu: 0.0.40
codegen_flags: <defaults>
</compile_context>

<pallas_src>
import numpy as np

import jax
import jax.numpy as jnp
from jax.experimental import pallas as pl
from jax.experimental.pallas import tpu as pltpu


# ---------------------------------------------------------------------------
# The single fused Pallas kernel: whole VAE forward for one row-block.
# ---------------------------------------------------------------------------
def _vae_fused_kernel(
    x_ref, eps_ref,
    k1_ref, b1_ref, k2_ref, b2_ref,
    wf_ref, bf_ref,
    wmu_ref, bmu_ref, wlv_ref, blv_ref,
    wd1_ref, bd1_ref, wd2_ref, bd2_ref,
    dec_ref, z_ref, mu_ref, lv_ref,
):
    f32 = jnp.float32
    x = x_ref[...]                                   # (bm, C*H*W)  NCHW-flat rows

    # encoder2d: conv(3x3,s2,p1)+ReLU twice, each lowered to ONE dense matmul against
    # a precomputed Toeplitz matrix (padding/stride/layout absorbed into K1/K2).
    # NOTE: at larger channel counts cast operands to bf16 here (f32 accumulate) for
    # the v6e/v7x MXU peak; f32 kept at these tiny sizes for accuracy.
    h1 = jnp.dot(x, k1_ref[...], preferred_element_type=f32) + b1_ref[...]
    h1 = jnp.maximum(h1, 0.0)                        # (bm, 8*8*8)
    h2 = jnp.dot(h1, k2_ref[...], preferred_element_type=f32) + b2_ref[...]
    h2 = jnp.maximum(h2, 0.0)                        # (bm, 4*4*16)
    encoded = jnp.dot(h2, wf_ref[...], preferred_element_type=f32) + bf_ref[...]

    # VAE head + reparametrize, fused in the same body (no extra launches, no HBM
    # round-trips for mu/logvar/z).
    mu = jnp.dot(encoded, wmu_ref[...], preferred_element_type=f32) + bmu_ref[...]
    logvar = jnp.dot(encoded, wlv_ref[...], preferred_element_type=f32) + blv_ref[...]
    std = jnp.exp(0.5 * logvar)                      # EUP
    z = mu + eps_ref[...] * std                      # VPU

    # decoder2d: Linear + ReLU -> Linear (wd2 columns are NCHW-flat output pixels).
    d1 = jnp.maximum(jnp.dot(z, wd1_ref[...], preferred_element_type=f32) + bd1_ref[...], 0.0)
    dec = jnp.dot(d1, wd2_ref[...], preferred_element_type=f32) + bd2_ref[...]

    dec_ref[...] = dec
    z_ref[...] = z
    mu_ref[...] = mu
    lv_ref[...] = logvar


def vae_forward(fused, x, eps, *, row_block=256):
    """Fused Pallas VAE forward. x: (B, C, H, W) NCHW; eps: (B, latent_dim)."""
    B, C, H, W = x.shape
    L = eps.shape[1]
    x_flat = x.reshape(B, C * H * W)                 # pure reshape; K1 rows match NCHW order

    bm = row_block if (B % row_block == 0) else B    # degenerates to one block at B=2
    grid = (B // bm,)

    def row_map(i):
        return (i, 0)

    def const_map(i):                                # weights stay resident across row blocks
        return (0, 0)

    def row_spec(ncols):
        return pl.BlockSpec((bm, ncols), row_map)

    def full_spec(arr):
        return pl.BlockSpec(arr.shape, const_map)

    weights = (
        fused["k1"], fused["b1"], fused["k2"], fused["b2"],
        fused["wf"], fused["bf"],
        fused["wmu"], fused["bmu"], fused["wlv"], fused["blv"],
        fused["wd1"], fused["bd1"], fused["wd2"], fused["bd2"],
    )
    dec_dim = fused["wd2"].shape[1]

    in_specs = [row_spec(x_flat.shape[1]), row_spec(L)] + [full_spec(w) for w in weights]
    out_specs = (row_spec(dec_dim), row_spec(L), row_spec(L), row_spec(L))
    out_shape = (
        jax.ShapeDtypeStruct((B, dec_dim), jnp.float32),
        jax.ShapeDtypeStruct((B, L), jnp.float32),
        jax.ShapeDtypeStruct((B, L), jnp.float32),
        jax.ShapeDtypeStruct((B, L), jnp.float32),
    )

    dec_flat, z, mu, logvar = pl.pallas_call(
        _vae_fused_kernel,
        out_shape=out_shape,
        grid=grid,
        in_specs=in_specs,
        out_specs=out_specs,
        compiler_params=pltpu.CompilerParams(
            dimension_semantics=("parallel",),       # megacore-shardable if B grows
            vmem_limit_bytes=32 * 1024 * 1024,
        ),
    )(x_flat, eps, *weights)

    decoded = dec_flat.reshape(B, C, H, W)
    return decoded, z, mu, logvar


# ---------------------------------------------------------------------------
# Synthetic VAE parameters (PyTorch conv conventions), plus a ONE-TIME host-side
# preparation step that folds each conv into a dense matmul matrix.
# ---------------------------------------------------------------------------
def init_params(key, in_ch=4, latent_dim=20, img_hw=16):
    ks = jax.random.split(key, 12)
    s = 0.05
    enc_flat = 16 * (img_hw // 4) * (img_hw // 4)        # 16 * 4 * 4 = 256
    dec_out = in_ch * img_hw * img_hw                    # 4 * 16 * 16 = 1024
    p = {
        # encoder2d: conv(s2)+relu -> conv(s2)+relu -> flatten -> linear(latent)
        "enc_w1": jax.random.normal(ks[0], (8, in_ch, 3, 3), jnp.float32) * s,
        "enc_b1": jax.random.normal(ks[1], (8,), jnp.float32) * s,
        "enc_w2": jax.random.normal(ks[2], (16, 8, 3, 3), jnp.float32) * s,
        "enc_b2": jax.random.normal(ks[3], (16,), jnp.float32) * s,
        # enc_wf rows are indexed in NHWC-flatten order (spatial-major, channel-minor)
        # of the conv2 output — the one-time row-permutation choice from the review.
        "enc_wf": jax.random.normal(ks[4], (enc_flat, latent_dim), jnp.float32) * s,
        "enc_bf": jax.random.normal(ks[5], (latent_dim,), jnp.float32) * s,
        # VAE head: mu / logvar Linear(latent_dim, latent_dim)
        "mu_w": jax.random.normal(ks[6], (latent_dim, latent_dim), jnp.float32) * s,
        "mu_b": jax.random.normal(ks[7], (latent_dim,), jnp.float32) * s,
        "lv_w": jax.random.normal(ks[8], (latent_dim, latent_dim), jnp.float32) * s,
        "lv_b": jax.random.normal(ks[9], (latent_dim,), jnp.float32) * s,
        # decoder2d: linear + relu -> linear -> reshape to NCHW image
        "dec_w1": jax.random.normal(ks[10], (latent_dim, 128), jnp.float32) * s,
        "dec_b1": jnp.zeros((128,), jnp.float32),
        "dec_w2": jax.random.normal(ks[11], (128, dec_out), jnp.float32) * s,
        "dec_b2": jnp.zeros((dec_out,), jnp.float32),
    }
    return p


def _conv_gather(h_in, w_in, k, stride, pad):
    """T[p, t, q] = 1 iff conv output position p reads input position q through tap t."""
    h_out = (h_in + 2 * pad - k) // stride + 1
    w_out = (w_in + 2 * pad - k) // stride + 1
    T = np.zeros((h_out * w_out, k * k, h_in * w_in), np.float32)
    for ho in range(h_out):
        for wo in range(w_out):
            p = ho * w_out + wo
            for i in range(k):
                for j in range(k):
                    hi = ho * stride + i - pad
                    wi = wo * stride + j - pad
                    if 0 <= hi < h_in and 0 <= wi < w_in:
                        T[p, i * k + j, hi * w_in + wi] = 1.0
    return T, h_out, w_out


def prepare_fused_params(params, img_hw):
    """One-time, exact (numpy) prep:
      * fold each 3x3/s2/p1 conv into a dense Toeplitz matmul matrix (K1, K2),
        absorbing padding, stride and the NCHW input flatten order;
      * replicate conv biases over spatial positions;
      * pre-shape every bias to (1, N) so nothing is reshaped per forward call."""
    k, stride, pad = 3, 2, 1
    w1 = np.asarray(params["enc_w1"]); b1 = np.asarray(params["enc_b1"])
    w2 = np.asarray(params["enc_w2"]); b2 = np.asarray(params["enc_b2"])
    c1, c0 = w1.shape[0], w1.shape[1]
    c2 = w2.shape[0]

    T1, ho1, wo1 = _conv_gather(img_hw, img_hw, k, stride, pad)      # (P1, 9, Q1)
    T2, ho2, wo2 = _conv_gather(ho1, wo1, k, stride, pad)            # (P2, 9, Q2)
    q1, p1 = img_hw * img_hw, ho1 * wo1
    q2, p2 = p1, ho2 * wo2

    # K1[c0*Q1 + q, p*C1 + d]: rows follow the NCHW flatten of x; columns follow the
    # NHWC flatten (spatial-major, channel-minor) of the conv1 output.
    k1 = np.einsum("ptq,dct->cqpd", T1, w1.reshape(c1, c0, k * k)).reshape(c0 * q1, p1 * c1)
    # K2[q*C1 + c, p*C2 + d]: rows match K1's column order; columns match enc_wf rows.
    k2 = np.einsum("ptq,dct->qcpd", T2, w2.reshape(c2, c1, k * k)).reshape(q2 * c1, p2 * c2)
    b1_rep = np.tile(b1, p1)                                         # (P1*C1,)
    b2_rep = np.tile(b2, p2)                                         # (P2*C2,)

    f32 = jnp.float32
    return {
        "k1": jnp.asarray(k1, f32), "b1": jnp.asarray(b1_rep, f32).reshape(1, -1),
        "k2": jnp.asarray(k2, f32), "b2": jnp.asarray(b2_rep, f32).reshape(1, -1),
        "wf": params["enc_wf"], "bf": params["enc_bf"].reshape(1, -1),
        "wmu": params["mu_w"], "bmu": params["mu_b"].reshape(1, -1),
        "wlv": params["lv_w"], "blv": params["lv_b"].reshape(1, -1),
        "wd1": params["dec_w1"], "bd1": params["dec_b1"].reshape(1, -1),
        "wd2": params["dec_w2"], "bd2": params["dec_b2"].reshape(1, -1),
    }


# ---------------------------------------------------------------------------
# Pure-JAX reference (real convs) for a sanity check.
# ---------------------------------------------------------------------------
def vae_forward_ref(params, x, eps):
    B, C, H, W = x.shape
    dn = ("NCHW", "OIHW", "NCHW")
    hp = jax.lax.Precision.HIGHEST
    h = jax.lax.conv_general_dilated(x, params["enc_w1"], (2, 2), [(1, 1), (1, 1)],
                                     dimension_numbers=dn, precision=hp)
    h = jnp.maximum(h + params["enc_b1"][None, :, None, None], 0.0)
    h = jax.lax.conv_general_dilated(h, params["enc_w2"], (2, 2), [(1, 1), (1, 1)],
                                     dimension_numbers=dn, precision=hp)
    h = jnp.maximum(h + params["enc_b2"][None, :, None, None], 0.0)
    h = h.transpose(0, 2, 3, 1).reshape(B, -1)       # NHWC flatten (matches enc_wf rows)
    encoded = h @ params["enc_wf"] + params["enc_bf"]
    mu = encoded @ params["mu_w"] + params["mu_b"]
    logvar = encoded @ params["lv_w"] + params["lv_b"]
    z = mu + eps * jnp.exp(0.5 * logvar)
    d = jnp.maximum(z @ params["dec_w1"] + params["dec_b1"], 0.0)
    d = d @ params["dec_w2"] + params["dec_b2"]
    return d.reshape(B, C, H, W), z, mu, logvar


# ---------------------------------------------------------------------------
if __name__ == "__main__":
    key = jax.random.PRNGKey(0)
    k_x, k_eps, k_p = jax.random.split(key, 3)

    B, C, H, W = 2, 4, 16, 16
    latent_dim = 20

    x = jax.random.normal(k_x, (B, C, H, W), jnp.float32)
    # TODO(synk): torch.randn_like(std) is sampled host-side with jax.random and passed
    # in as eps so the kernel stays deterministic and comparable to the reference.
    eps = jax.random.normal(k_eps, (B, latent_dim), jnp.float32)

    params = init_params(k_p, in_ch=C, latent_dim=latent_dim, img_hw=H)
    fused = prepare_fused_params(params, img_hw=H)   # one-time host-side prep

    fwd = jax.jit(vae_forward)
    decoded, z, mu, logvar = jax.block_until_ready(fwd(fused, x, eps))

    # sanity check against pure-JAX reference
    d_ref, z_ref, mu_ref, lv_ref = vae_forward_ref(params, x, eps)
    assert decoded.shape == (B, C, H, W)
    assert z.shape == mu.shape == logvar.shape == (B, latent_dim)
    for got, ref in ((decoded, d_ref), (z, z_ref), (mu, mu_ref), (logvar, lv_ref)):
        assert jnp.allclose(got, ref, rtol=1e-2, atol=1e-2), "mismatch vs reference"

    print("KERNEL_OK")
</pallas_src>

<mosaic_0001>
module attributes {stable_mosaic.version = 11 : i64} {
  func.func @_vae_fused_kernel(%arg0: i32, %arg1: memref<2x1024xf32, #tpu.memory_space<vmem>>, %arg2: memref<2x20xf32, #tpu.memory_space<vmem>>, %arg3: memref<1024x512xf32, #tpu.memory_space<vmem>>, %arg4: memref<1x512xf32, #tpu.memory_space<vmem>>, %arg5: memref<512x256xf32, #tpu.memory_space<vmem>>, %arg6: memref<1x256xf32, #tpu.memory_space<vmem>>, %arg7: memref<256x20xf32, #tpu.memory_space<vmem>>, %arg8: memref<1x20xf32, #tpu.memory_space<vmem>>, %arg9: memref<20x20xf32, #tpu.memory_space<vmem>>, %arg10: memref<1x20xf32, #tpu.memory_space<vmem>>, %arg11: memref<20x20xf32, #tpu.memory_space<vmem>>, %arg12: memref<1x20xf32, #tpu.memory_space<vmem>>, %arg13: memref<20x128xf32, #tpu.memory_space<vmem>>, %arg14: memref<1x128xf32, #tpu.memory_space<vmem>>, %arg15: memref<128x1024xf32, #tpu.memory_space<vmem>>, %arg16: memref<1x1024xf32, #tpu.memory_space<vmem>>, %arg17: memref<2x1024xf32, #tpu.memory_space<vmem>>, %arg18: memref<2x20xf32, #tpu.memory_space<vmem>>, %arg19: memref<2x20xf32, #tpu.memory_space<vmem>>, %arg20: memref<2x20xf32, #tpu.memory_space<vmem>>) attributes {dimension_semantics = [#tpu.dimension_semantics<parallel>], iteration_bounds = array<i64: 1>, scalar_prefetch = 0 : i64, scratch_operands = 0 : i64, tpu.core_type = #tpu.core_type<tc>, window_params = [{transform_indices = @transform_0, window_bounds = array<i64: 2, 1024>}, {transform_indices = @transform_1, window_bounds = array<i64: 2, 20>}, {pipeline_mode = #tpu.pipeline_mode<synchronous>, transform_indices = @transform_2, window_bounds = array<i64: 1024, 512>}, {pipeline_mode = #tpu.pipeline_mode<synchronous>, transform_indices = @transform_3, window_bounds = array<i64: 1, 512>}, {pipeline_mode = #tpu.pipeline_mode<synchronous>, transform_indices = @transform_4, window_bounds = array<i64: 512, 256>}, {pipeline_mode = #tpu.pipeline_mode<synchronous>, transform_indices = @transform_5, window_bounds = array<i64: 1, 256>}, {pipeline_mode = #tpu.pipeline_mode<synchronous>, transform_indices = @transform_6, window_bounds = array<i64: 256, 20>}, {pipeline_mode = #tpu.pipeline_mode<synchronous>, transform_indices = @transform_7, window_bounds = array<i64: 1, 20>}, {pipeline_mode = #tpu.pipeline_mode<synchronous>, transform_indices = @transform_8, window_bounds = array<i64: 20, 20>}, {pipeline_mode = #tpu.pipeline_mode<synchronous>, transform_indices = @transform_9, window_bounds = array<i64: 1, 20>}, {pipeline_mode = #tpu.pipeline_mode<synchronous>, transform_indices = @transform_10, window_bounds = array<i64: 20, 20>}, {pipeline_mode = #tpu.pipeline_mode<synchronous>, transform_indices = @transform_11, window_bounds = array<i64: 1, 20>}, {pipeline_mode = #tpu.pipeline_mode<synchronous>, transform_indices = @transform_12, window_bounds = array<i64: 20, 128>}, {pipeline_mode = #tpu.pipeline_mode<synchronous>, transform_indices = @transform_13, window_bounds = array<i64: 1, 128>}, {pipeline_mode = #tpu.pipeline_mode<synchronous>, transform_indices = @transform_14, window_bounds = array<i64: 128, 1024>}, {pipeline_mode = #tpu.pipeline_mode<synchronous>, transform_indices = @transform_15, window_bounds = array<i64: 1, 1024>}, {transform_indices = @transform_16, window_bounds = array<i64: 2, 1024>}, {transform_indices = @transform_17, window_bounds = array<i64: 2, 20>}, {transform_indices = @transform_18, window_bounds = array<i64: 2, 20>}, {transform_indices = @transform_19, window_bounds = array<i64: 2, 20>}]} {
    %c0 = arith.constant 0 : index
    %c0_0 = arith.constant 0 : index
    %0 = vector.load %arg1[%c0, %c0_0] : memref<2x1024xf32, #tpu.memory_space<vmem>>, vector<2x1024xf32>
    %c0_1 = arith.constant 0 : index
    %c0_2 = arith.constant 0 : index
    %1 = vector.load %arg3[%c0_1, %c0_2] : memref<1024x512xf32, #tpu.memory_space<vmem>>, vector<1024x512xf32>
    %cst = arith.constant dense<0.000000e+00> : vector<2x512xf32>
    %2 = tpu.matmul %0, %1, %cst {dimension_numbers = #tpu.dot_dimension_numbers<[1], [0], [0], [1], [0, 0, 1, 1], [], []>} : vector<2x1024xf32>, vector<1024x512xf32>, vector<2x512xf32> -> vector<2x512xf32>
    %c0_3 = arith.constant 0 : index
    %c0_4 = arith.constant 0 : index
    %3 = vector.load %arg4[%c0_3, %c0_4] : memref<1x512xf32, #tpu.memory_space<vmem>>, vector<1x512xf32>
    %4 = vector.broadcast %3 : vector<1x512xf32> to vector<2x512xf32>
    %5 = arith.addf %2, %4 : vector<2x512xf32>
    %cst_5 = arith.constant 0.000000e+00 : f32
    %6 = vector.broadcast %cst_5 : f32 to vector<2x512xf32>
    %7 = arith.maximumf %5, %6 : vector<2x512xf32>
    %c0_6 = arith.constant 0 : index
    %c0_7 = arith.constant 0 : index
    %8 = vector.load %arg5[%c0_6, %c0_7] : memref<512x256xf32, #tpu.memory_space<vmem>>, vector<512x256xf32>
    %cst_8 = arith.constant dense<0.000000e+00> : vector<2x256xf32>
    %9 = tpu.matmul %7, %8, %cst_8 {dimension_numbers = #tpu.dot_dimension_numbers<[1], [0], [0], [1], [0, 0, 1, 1], [], []>} : vector<2x512xf32>, vector<512x256xf32>, vector<2x256xf32> -> vector<2x256xf32>
    %c0_9 = arith.constant 0 : index
    %c0_10 = arith.constant 0 : index
    %10 = vector.load %arg6[%c0_9, %c0_10] : memref<1x256xf32, #tpu.memory_space<vmem>>, vector<1x256xf32>
    %11 = vector.broadcast %10 : vector<1x256xf32> to vector<2x256xf32>
    %12 = arith.addf %9, %11 : vector<2x256xf32>
    %cst_11 = arith.constant 0.000000e+00 : f32
    %13 = vector.broadcast %cst_11 : f32 to vector<2x256xf32>
    %14 = arith.maximumf %12, %13 : vector<2x256xf32>
    %c0_12 = arith.constant 0 : index
    %c0_13 = arith.constant 0 : index
    %15 = vector.load %arg7[%c0_12, %c0_13] : memref<256x20xf32, #tpu.memory_space<vmem>>, vector<256x20xf32>
    %cst_14 = arith.constant dense<0.000000e+00> : vector<2x20xf32>
    %16 = tpu.matmul %14, %15, %cst_14 {dimension_numbers = #tpu.dot_dimension_numbers<[1], [0], [0], [1], [0, 0, 1, 1], [], []>} : vector<2x256xf32>, vector<256x20xf32>, vector<2x20xf32> -> vector<2x20xf32>
    %c0_15 = arith.constant 0 : index
    %c0_16 = arith.constant 0 : index
    %17 = vector.load %arg8[%c0_15, %c0_16] : memref<1x20xf32, #tpu.memory_space<vmem>>, vector<1x20xf32>
    %18 = vector.broadcast %17 : vector<1x20xf32> to vector<2x20xf32>
    %19 = arith.addf %16, %18 : vector<2x20xf32>
    %c0_17 = arith.constant 0 : index
    %c0_18 = arith.constant 0 : index
    %20 = vector.load %arg9[%c0_17, %c0_18] : memref<20x20xf32, #tpu.memory_space<vmem>>, vector<20x20xf32>
    %cst_19 = arith.constant dense<0.000000e+00> : vector<2x20xf32>
    %21 = tpu.matmul %19, %20, %cst_19 {dimension_numbers = #tpu.dot_dimension_numbers<[1], [0], [0], [1], [0, 0, 1, 1], [], []>} : vector<2x20xf32>, vector<20x20xf32>, vector<2x20xf32> -> vector<2x20xf32>
    %c0_20 = arith.constant 0 : index
    %c0_21 = arith.constant 0 : index
    %22 = vector.load %arg10[%c0_20, %c0_21] : memref<1x20xf32, #tpu.memory_space<vmem>>, vector<1x20xf32>
    %23 = vector.broadcast %22 : vector<1x20xf32> to vector<2x20xf32>
    %24 = arith.addf %21, %23 : vector<2x20xf32>
    %c0_22 = arith.constant 0 : index
    %c0_23 = arith.constant 0 : index
    %25 = vector.load %arg11[%c0_22, %c0_23] : memref<20x20xf32, #tpu.memory_space<vmem>>, vector<20x20xf32>
    %cst_24 = arith.constant dense<0.000000e+00> : vector<2x20xf32>
    %26 = tpu.matmul %19, %25, %cst_24 {dimension_numbers = #tpu.dot_dimension_numbers<[1], [0], [0], [1], [0, 0, 1, 1], [], []>} : vector<2x20xf32>, vector<20x20xf32>, vector<2x20xf32> -> vector<2x20xf32>
    %c0_25 = arith.constant 0 : index
    %c0_26 = arith.constant 0 : index
    %27 = vector.load %arg12[%c0_25, %c0_26] : memref<1x20xf32, #tpu.memory_space<vmem>>, vector<1x20xf32>
    %28 = vector.broadcast %27 : vector<1x20xf32> to vector<2x20xf32>
    %29 = arith.addf %26, %28 : vector<2x20xf32>
    %cst_27 = arith.constant 5.000000e-01 : f32
    %30 = vector.broadcast %cst_27 : f32 to vector<2x20xf32>
    %31 = arith.mulf %30, %29 : vector<2x20xf32>
    %32 = math.exp %31 : vector<2x20xf32>
    %c0_28 = arith.constant 0 : index
    %c0_29 = arith.constant 0 : index
    %33 = vector.load %arg2[%c0_28, %c0_29] : memref<2x20xf32, #tpu.memory_space<vmem>>, vector<2x20xf32>
    %34 = arith.mulf %33, %32 : vector<2x20xf32>
    %35 = arith.addf %24, %34 : vector<2x20xf32>
    %c0_30 = arith.constant 0 : index
    %c0_31 = arith.constant 0 : index
    %36 = vector.load %arg13[%c0_30, %c0_31] : memref<20x128xf32, #tpu.memory_space<vmem>>, vector<20x128xf32>
    %cst_32 = arith.constant dense<0.000000e+00> : vector<2x128xf32>
    %37 = tpu.matmul %35, %36, %cst_32 {dimension_numbers = #tpu.dot_dimension_numbers<[1], [0], [0], [1], [0, 0, 1, 1], [], []>} : vector<2x20xf32>, vector<20x128xf32>, vector<2x128xf32> -> vector<2x128xf32>
    %c0_33 = arith.constant 0 : index
    %c0_34 = arith.constant 0 : index
    %38 = vector.load %arg14[%c0_33, %c0_34] : memref<1x128xf32, #tpu.memory_space<vmem>>, vector<1x128xf32>
    %39 = vector.broadcast %38 : vector<1x128xf32> to vector<2x128xf32>
    %40 = arith.addf %37, %39 : vector<2x128xf32>
    %cst_35 = arith.constant 0.000000e+00 : f32
    %41 = vector.broadcast %cst_35 : f32 to vector<2x128xf32>
    %42 = arith.maximumf %40, %41 : vector<2x128xf32>
    %c0_36 = arith.constant 0 : index
    %c0_37 = arith.constant 0 : index
    %43 = vector.load %arg15[%c0_36, %c0_37] : memref<128x1024xf32, #tpu.memory_space<vmem>>, vector<128x1024xf32>
    %cst_38 = arith.constant dense<0.000000e+00> : vector<2x1024xf32>
    %44 = tpu.matmul %42, %43, %cst_38 {dimension_numbers = #tpu.dot_dimension_numbers<[1], [0], [0], [1], [0, 0, 1, 1], [], []>} : vector<2x128xf32>, vector<128x1024xf32>, vector<2x1024xf32> -> vector<2x1024xf32>
    %c0_39 = arith.constant 0 : index
    %c0_40 = arith.constant 0 : index
    %45 = vector.load %arg16[%c0_39, %c0_40] : memref<1x1024xf32, #tpu.memory_space<vmem>>, vector<1x1024xf32>
    %46 = vector.broadcast %45 : vector<1x1024xf32> to vector<2x1024xf32>
    %47 = arith.addf %44, %46 : vector<2x1024xf32>
    %c0_41 = arith.constant 0 : index
    %c0_42 = arith.constant 0 : index
    %48 = vector.load %arg17[%c0_41, %c0_42] : memref<2x1024xf32, #tpu.memory_space<vmem>>, vector<2x1024xf32>
    tpu.vector_store %arg17[%c0_41, %c0_42], %47 {strides = array<i32>} : memref<2x1024xf32, #tpu.memory_space<vmem>>, vector<2x1024xf32>,
    %c0_43 = arith.constant 0 : index
    %c0_44 = arith.constant 0 : index
    %49 = vector.load %arg18[%c0_43, %c0_44] : memref<2x20xf32, #tpu.memory_space<vmem>>, vector<2x20xf32>
    tpu.vector_store %arg18[%c0_43, %c0_44], %35 {strides = array<i32>} : memref<2x20xf32, #tpu.memory_space<vmem>>, vector<2x20xf32>,
    %c0_45 = arith.constant 0 : index
    %c0_46 = arith.constant 0 : index
    %50 = vector.load %arg19[%c0_45, %c0_46] : memref<2x20xf32, #tpu.memory_space<vmem>>, vector<2x20xf32>
    tpu.vector_store %arg19[%c0_45, %c0_46], %24 {strides = array<i32>} : memref<2x20xf32, #tpu.memory_space<vmem>>, vector<2x20xf32>,
    %c0_47 = arith.constant 0 : index
    %c0_48 = arith.constant 0 : index
    %51 = vector.load %arg20[%c0_47, %c0_48] : memref<2x20xf32, #tpu.memory_space<vmem>>, vector<2x20xf32>
    tpu.vector_store %arg20[%c0_47, %c0_48], %29 {strides = array<i32>} : memref<2x20xf32, #tpu.memory_space<vmem>>, vector<2x20xf32>,
    return
  }
  func.func @transform_0(%arg0: i32) -> (i32, i32) {
    %c0_i32 = arith.constant 0 : i32
    %c0_i32_0 = arith.constant 0 : i32
    return %arg0, %c0_i32 : i32, i32
  }
  func.func @transform_1(%arg0: i32) -> (i32, i32) {
    %c0_i32 = arith.constant 0 : i32
    %c0_i32_0 = arith.constant 0 : i32
    return %arg0, %c0_i32 : i32, i32
  }
  func.func @transform_2(%arg0: i32) -> (i32, i32) {
    %c0_i32 = arith.constant 0 : i32
    %c0_i32_0 = arith.constant 0 : i32
    %c0_i32_1 = arith.constant 0 : i32
    return %c0_i32, %c0_i32_0 : i32, i32
  }
  func.func @transform_3(%arg0: i32) -> (i32, i32) {
    %c0_i32 = arith.constant 0 : i32
    %c0_i32_0 = arith.constant 0 : i32
    %c0_i32_1 = arith.constant 0 : i32
    return %c0_i32, %c0_i32_0 : i32, i32
  }
  func.func @transform_4(%arg0: i32) -> (i32, i32) {
    %c0_i32 = arith.constant 0 : i32
    %c0_i32_0 = arith.constant 0 : i32
    %c0_i32_1 = arith.constant 0 : i32
    return %c0_i32, %c0_i32_0 : i32, i32
  }
  func.func @transform_5(%arg0: i32) -> (i32, i32) {
    %c0_i32 = arith.constant 0 : i32
    %c0_i32_0 = arith.constant 0 : i32
    %c0_i32_1 = arith.constant 0 : i32
    return %c0_i32, %c0_i32_0 : i32, i32
  }
  func.func @transform_6(%arg0: i32) -> (i32, i32) {
    %c0_i32 = arith.constant 0 : i32
    %c0_i32_0 = arith.constant 0 : i32
    %c0_i32_1 = arith.constant 0 : i32
    return %c0_i32, %c0_i32_0 : i32, i32
  }
  func.func @transform_7(%arg0: i32) -> (i32, i32) {
    %c0_i32 = arith.constant 0 : i32
    %c0_i32_0 = arith.constant 0 : i32
    %c0_i32_1 = arith.constant 0 : i32
    return %c0_i32, %c0_i32_0 : i32, i32
  }
  func.func @transform_8(%arg0: i32) -> (i32, i32) {
    %c0_i32 = arith.constant 0 : i32
    %c0_i32_0 = arith.constant 0 : i32
    %c0_i32_1 = arith.constant 0 : i32
    return %c0_i32, %c0_i32_0 : i32, i32
  }
  func.func @transform_9(%arg0: i32) -> (i32, i32) {
    %c0_i32 = arith.constant 0 : i32
    %c0_i32_0 = arith.constant 0 : i32
    %c0_i32_1 = arith.constant 0 : i32
    return %c0_i32, %c0_i32_0 : i32, i32
  }
  func.func @transform_10(%arg0: i32) -> (i32, i32) {
    %c0_i32 = arith.constant 0 : i32
    %c0_i32_0 = arith.constant 0 : i32
    %c0_i32_1 = arith.constant 0 : i32
    return %c0_i32, %c0_i32_0 : i32, i32
  }
  func.func @transform_11(%arg0: i32) -> (i32, i32) {
    %c0_i32 = arith.constant 0 : i32
    %c0_i32_0 = arith.constant 0 : i32
    %c0_i32_1 = arith.constant 0 : i32
    return %c0_i32, %c0_i32_0 : i32, i32
  }
  func.func @transform_12(%arg0: i32) -> (i32, i32) {
    %c0_i32 = arith.constant 0 : i32
    %c0_i32_0 = arith.constant 0 : i32
    %c0_i32_1 = arith.constant 0 : i32
    return %c0_i32, %c0_i32_0 : i32, i32
  }
  func.func @transform_13(%arg0: i32) -> (i32, i32) {
    %c0_i32 = arith.constant 0 : i32
    %c0_i32_0 = arith.constant 0 : i32
    %c0_i32_1 = arith.constant 0 : i32
    return %c0_i32, %c0_i32_0 : i32, i32
  }
  func.func @transform_14(%arg0: i32) -> (i32, i32) {
    %c0_i32 = arith.constant 0 : i32
    %c0_i32_0 = arith.constant 0 : i32
    %c0_i32_1 = arith.constant 0 : i32
    return %c0_i32, %c0_i32_0 : i32, i32
  }
  func.func @transform_15(%arg0: i32) -> (i32, i32) {
    %c0_i32 = arith.constant 0 : i32
    %c0_i32_0 = arith.constant 0 : i32
    %c0_i32_1 = arith.constant 0 : i32
    return %c0_i32, %c0_i32_0 : i32, i32
  }
  func.func @transform_16(%arg0: i32) -> (i32, i32) {
    %c0_i32 = arith.constant 0 : i32
    %c0_i32_0 = arith.constant 0 : i32
    return %arg0, %c0_i32 : i32, i32
  }
  func.func @transform_17(%arg0: i32) -> (i32, i32) {
    %c0_i32 = arith.constant 0 : i32
    %c0_i32_0 = arith.constant 0 : i32
    return %arg0, %c0_i32 : i32, i32
  }
  func.func @transform_18(%arg0: i32) -> (i32, i32) {
    %c0_i32 = arith.constant 0 : i32
    %c0_i32_0 = arith.constant 0 : i32
    return %arg0, %c0_i32 : i32, i32
  }
  func.func @transform_19(%arg0: i32) -> (i32, i32) {
    %c0_i32 = arith.constant 0 : i32
    %c0_i32_0 = arith.constant 0 : i32
    return %arg0, %c0_i32 : i32, i32
  }
}

</mosaic_0001>

<bundles_post_ra>
// kernel: vae_forward.1
= control target key start
LH: loop header
LB: loop body
LE: loop exit
PB: predicated region body
PF: predicated region fallthrough
CT: control target
= control target key end

     0   :  { %s3481_s0 = inlined_call_operand.vmem [shape: f32[2,1024], index: 0, kind: input, shape index: {}]   ;;  %s3482_s1 = inlined_call_operand.hbm [shape: f32[2,20], index: 1, kind: input, shape index: {}]   ;;  %s3483_s2 = inlined_call_operand.hbm [shape: f32[1024,512], index: 2, kind: input, shape index: {}]   ;;  %s3484_s3 = inlined_call_operand.hbm [shape: f32[1,512], index: 3, kind: input, shape index: {}]   ;;  %s3485_s4 = inlined_call_operand.hbm [shape: f32[512,256], index: 4, kind: input, shape index: {}]   ;;  %s3486_s5 = inlined_call_operand.hbm [shape: f32[1,256], index: 5, kind: input, shape index: {}]   ;;  %s3487_s6 = inlined_call_operand.vmem [shape: f32[256,20], index: 6, kind: input, shape index: {}]   ;;  %s3488_s7 = inlined_call_operand.hbm [shape: f32[1,20], index: 7, kind: input, shape index: {}]   ;;  %s3489_s8 = inlined_call_operand.hbm [shape: f32[20,20], index: 8, kind: input, shape index: {}]   ;;  %s3490_s9 = inlined_call_operand.hbm [shape: f32[1,20], index: 9, kind: input, shape index: {}]   ;;  %s3491_s10 = inlined_call_operand.hbm [shape: f32[20,20], index: 10, kind: input, shape index: {}]   ;;  %s3492_s11 = inlined_call_operand.hbm [shape: f32[1,20], index: 11, kind: input, shape index: {}]   ;;  %s3493_s12 = inlined_call_operand.hbm [shape: f32[20,128], index: 12, kind: input, shape index: {}]   ;;  %s3494_s13 = inlined_call_operand.hbm [shape: f32[1,128], index: 13, kind: input, shape index: {}]   ;;  %s3495_s14 = inlined_call_operand.hbm [shape: f32[128,1024], index: 14, kind: input, shape index: {}]   ;;  %s3496_s15 = inlined_call_operand.hbm [shape: f32[1,1024], index: 15, kind: input, shape index: {}]   ;;  %s3497_s16 = inlined_call_operand.vmem [shape: f32[2,1024], index: 16, kind: output, shape index: {0}]   ;;  %s3498_s17 = inlined_call_operand.hbm [shape: f32[2,20], index: 17, kind: output, shape index: {1}]   ;;  %s3499_s18 = inlined_call_operand.hbm [shape: f32[2,20], index: 18, kind: output, shape index: {2}]   ;;  %s3500_s19 = inlined_call_operand.hbm [shape: f32[2,20], index: 19, kind: output, shape index: {3}]  }
   0x1   :  { %3502 = sst [smem:[#allocation39_spill]] %s3481_s0 }
   0x2   :  { %3503 = sst [smem:[#allocation40_spill]] %s3482_s1 }
   0x3   :  { %3504 = sst [smem:[#allocation41_spill]] %s3483_s2 }
   0x4   :  { %3505 = sst [smem:[#allocation42_spill]] %s3484_s3 }
   0x5   :  { %25 = vsyncpa [#allocation3], 0 }
   0x6   :  { %26 = vsyncpa [#allocation6], 0 }
   0x7   :  { %27 = vsyncpa [#allocation9], 0 }
   0x8   :  { %28 = vsyncpa [#allocation12], 0 }
   0x9   :  { %29 = vsyncpa [#allocation15], 0 }
   0xa   :  { %30 = vsyncpa [#allocation18], 0 }
   0xb   :  { %31 = vsyncpa [#allocation21], 0 }
   0xc   :  { %32 = vsyncpa [#allocation24], 0 }
   0xd   :  { %33 = vsyncpa [#allocation4], 0 }
   0xe   :  { %34 = vsyncpa [#allocation27], 0  ;;  %s3075_s0 = smov [#allocation5]  }
   0xf   :  { %s52_s30 = sshll.u32 %s3075_s0, 4  ;;  %s53_s30 = int_to_ptr.vmem [resolvable:$true] %s52_s30 }
  0x10   :  { %s2723_s20 = scalar_lea.vmem %s53_s30, 65536  ;;  %p2728_p1 = scmp.lt.s32.totalorder %s53_s30, %s53_s30 }
  0x11   :  { %p2724_p0 = scmp.ne.s32.totalorder %s53_s30, %s2723_s20  ;;  %p2729_p2 = scmp.lt.s32.totalorder %s2723_s20, %s2723_s20 }
  0x13   :  { %p2730_p3 = por %p2729_p2, %p2728_p1 }
  0x15   :  { %p2731_p4 = pnand %p2730_p3, %p2724_p0 }
  0x17   :  { %2734 = shalt.err (!%p2731_p4)
}
  0x18   :  { %s3076_s21 = smov 512   ;;  %s3077_s1 = smov 32  }
  0x19   :  { %s3506_s23 = sld [smem:[#allocation41_spill]]  ;;  %s3078_s24 = smov [#allocation8]  }
  0x1a   :  { %s74_s25 = sshll.u32 %s3078_s24, 4  ;;  %s75_s25 = int_to_ptr.vmem [resolvable:$true] %s74_s25 }
  0x1b   :  { %s2743_s3 = scalar_lea.vmem %s75_s25, 16384  ;;  %p2748_p6 = scmp.lt.s32.totalorder %s75_s25, %s75_s25 }
  0x1c   :  { %p2744_p5 = scmp.ne.s32.totalorder %s75_s25, %s2743_s3  ;;  %p2749_p7 = scmp.lt.s32.totalorder %s2743_s3, %s2743_s3 }
  0x1e   :  { %p2750_p8 = por %p2749_p7, %p2748_p6 }
  0x1f   :  { %58 = dma.hbm_to_vmem [thread:$0]  %s3506_s23, 65536, %s53_s30, [#allocation6], %s3076_s21, %s3076_s21, %s3077_s1  }
  0x20   :  { %p2751_p9 = pnand %p2750_p8, %p2744_p5 }
  0x22   :  { %2754 = shalt.err (!%p2751_p9)
}
  0x23   :  { %s3079_s26 = smov 256   ;;  %s3080_s27 = smov 16  }
  0x24   :  { %80 = dma.hbm_to_vmem [thread:$0]  %s3485_s4, 16384, %s75_s25, [#allocation9], %s3079_s26, %s3079_s26, %s3080_s27  }
  0x25   :  { %s3081_s0 = smov [#allocation11]   ;;  %s3082_s22 = smov [#allocation14]  }
  0x26   :  { %s99_s20 = sshll.u32 %s3081_s0, 4  ;;  %s121_s30 = sshll.u32 %s3082_s22, 4  ;;  %s100_s20 = int_to_ptr.vmem [resolvable:$true] %s99_s20  ;;  %s122_s30 = int_to_ptr.vmem [resolvable:$true] %s121_s30 }
  0x27   :  { %s2763_s21 = scalar_lea.vmem %s100_s20, 16  ;;  %s2767_s1 = scalar_lea.vmem %s100_s20, 32 }
  0x28   :  { %p2764_p10 = scmp.ne.s32.totalorder %s100_s20, %s2763_s21  ;;  %p2768_p11 = scmp.lt.s32.totalorder %s100_s20, %s100_s20 }
  0x29   :  { %p2769_p12 = scmp.lt.s32.totalorder %s2767_s1, %s2763_s21 }
  0x2b   :  { %p2770_p13 = por %p2769_p12, %p2768_p11 }
  0x2d   :  { %p2771_p0 = pnand %p2770_p13, %p2764_p10 }
  0x2f   :  { %2774 = shalt.err (!%p2771_p0)
}
  0x30   :  { %102 = dma.hbm_to_vmem [thread:$0]  %s3488_s7, 16, %s100_s20, [#allocation12]  }
  0x31   :  { %s2783_s24 = scalar_lea.vmem %s122_s30, 16  ;;  %s2787_s4 = scalar_lea.vmem %s122_s30, 32 }
  0x32   :  { %p2784_p1 = scmp.ne.s32.totalorder %s122_s30, %s2783_s24  ;;  %p2788_p2 = scmp.lt.s32.totalorder %s122_s30, %s122_s30 }
  0x33   :  { %p2789_p3 = scmp.lt.s32.totalorder %s2787_s4, %s2783_s24 }
  0x35   :  { %p2790_p4 = por %p2789_p3, %p2788_p2 }
  0x37   :  { %p2791_p5 = pnand %p2790_p4, %p2784_p1 }
  0x39   :  { %2794 = shalt.err (!%p2791_p5)
}
  0x3a   :  { %124 = dma.hbm_to_vmem [thread:$0]  %s3490_s9, 16, %s122_s30, [#allocation15]  }
  0x3b   :  { %s3083_s26 = smov [#allocation17]   ;;  %s3084_s28 = smov [#allocation20]  }
  0x3c   :  { %s143_s27 = sshll.u32 %s3083_s26, 4  ;;  %s165_s29 = sshll.u32 %s3084_s28, 4  ;;  %s144_s27 = int_to_ptr.vmem [resolvable:$true] %s143_s27  ;;  %s166_s29 = int_to_ptr.vmem [resolvable:$true] %s165_s29 }
  0x3d   :  { %s2803_s0 = scalar_lea.vmem %s144_s27, 16  ;;  %s2807_s7 = scalar_lea.vmem %s144_s27, 32 }
  0x3e   :  { %p2804_p6 = scmp.ne.s32.totalorder %s144_s27, %s2803_s0  ;;  %p2808_p7 = scmp.lt.s32.totalorder %s144_s27, %s144_s27 }
  0x3f   :  { %p2809_p8 = scmp.lt.s32.totalorder %s2807_s7, %s2803_s0 }
  0x41   :  { %p2810_p9 = por %p2809_p8, %p2808_p7 }
  0x43   :  { %p2811_p10 = pnand %p2810_p9, %p2804_p6 }
  0x45   :  { %2814 = shalt.err (!%p2811_p10)
}
  0x46   :  { %146 = dma.hbm_to_vmem [thread:$0]  %s3492_s11, 16, %s144_s27, [#allocation18]  }
  0x47   :  { %s2823_s21 = scalar_lea.vmem %s166_s29, 16  ;;  %s2827_s9 = scalar_lea.vmem %s166_s29, 32 }
  0x48   :  { %p2824_p11 = scmp.ne.s32.totalorder %s166_s29, %s2823_s21  ;;  %p2828_p12 = scmp.lt.s32.totalorder %s166_s29, %s166_s29 }
  0x49   :  { %p2829_p13 = scmp.lt.s32.totalorder %s2827_s9, %s2823_s21 }
  0x4b   :  { %p2830_p0 = por %p2829_p13, %p2828_p12 }
  0x4d   :  { %p2831_p1 = pnand %p2830_p0, %p2824_p11 }
  0x4f   :  { %2834 = shalt.err (!%p2831_p1)
}
  0x50   :  { %168 = dma.hbm_to_vmem [thread:$0]  %s3494_s13, 16, %s166_s29, [#allocation21]  }
  0x51   :  { %s3085_s2 = smov [#allocation2]   ;;  %s3086_s24 = smov [#allocation7]  }
  0x52   :  { %s43_s23 = sshll.u32 %s3085_s2, 4  ;;  %s65_s4 = sshll.u32 %s3086_s24, 4  ;;  %s44_s23 = int_to_ptr.vmem [resolvable:$true] %s43_s23  ;;  %s66_s4 = int_to_ptr.vmem [resolvable:$true] %s65_s4 }
  0x53   :  { %s2843_s25 = scalar_lea.vmem %s44_s23, 32  ;;  %p2848_p3 = scmp.lt.s32.totalorder %s44_s23, %s44_s23 }
  0x54   :  { %p2844_p2 = scmp.ne.s32.totalorder %s44_s23, %s2843_s25  ;;  %p2849_p4 = scmp.lt.s32.totalorder %s2843_s25, %s2843_s25 }
  0x56   :  { %p2850_p5 = por %p2849_p4, %p2848_p3 }
  0x58   :  { %p2851_p6 = pnand %p2850_p5, %p2844_p2 }
  0x5a   :  { %2854 = shalt.err (!%p2851_p6)
}
  0x5b   :  { %s3507_s26 = sld [smem:[#allocation40_spill]]  ;;  %s2863_s27 = scalar_lea.vmem %s66_s4, 64 }
  0x5c   :  { %p2864_p7 = scmp.ne.s32.totalorder %s66_s4, %s2863_s27  ;;  %p2868_p8 = scmp.lt.s32.totalorder %s66_s4, %s66_s4 }
  0x5d   :  { %p2869_p9 = scmp.lt.s32.totalorder %s2863_s27, %s2863_s27 }
  0x5f   :  { %p2870_p10 = por %p2869_p9, %p2868_p8 }
  0x61   :  { %46 = dma.hbm_to_vmem [thread:$0]  %s3507_s26, 32, %s44_s23, [#allocation3]  }
  0x62   :  { %p2871_p11 = pnand %p2870_p10, %p2864_p7 }
  0x64   :  { %2874 = shalt.err (!%p2871_p11)
}
  0x65   :  { %s3508_s29 = sld [smem:[#allocation42_spill]]  ;;  %s3087_s0 = smov [#allocation10]  }
  0x66   :  { %s87_s7 = sshll.u32 %s3087_s0, 4  ;;  %s3088_s20 = smov [#allocation13]   ;;  %s88_s7 = int_to_ptr.vmem [resolvable:$true] %s87_s7 }
  0x67   :  { %s108_s22 = sshll.u32 %s3088_s20, 4  ;;  %s2883_s21 = scalar_lea.vmem %s88_s7, 32  ;;  %s109_s22 = int_to_ptr.vmem [resolvable:$true] %s108_s22 }
  0x68   :  { %p2884_p12 = scmp.ne.s32.totalorder %s88_s7, %s2883_s21  ;;  %p2888_p13 = scmp.lt.s32.totalorder %s88_s7, %s88_s7 }
  0x69   :  { %p2889_p0 = scmp.lt.s32.totalorder %s2883_s21, %s2883_s21 }
  0x6b   :  { %68 = dma.hbm_to_vmem [thread:$0]  %s3508_s29, 64, %s66_s4, [#allocation6]  }
  0x6c   :  { %p2890_p1 = por %p2889_p0, %p2888_p13 }
  0x6e   :  { %p2891_p2 = pnand %p2890_p1, %p2884_p12 }
  0x70   :  { %2894 = shalt.err (!%p2891_p2)
}
  0x71   :  { %90 = dma.hbm_to_vmem [thread:$0]  %s3486_s5, 32, %s88_s7, [#allocation9]  }
  0x72   :  { %s2903_s1 = scalar_lea.vmem %s109_s22, 384  ;;  %p2908_p4 = scmp.lt.s32.totalorder %s109_s22, %s109_s22 }
  0x73   :  { %p2904_p3 = scmp.ne.s32.totalorder %s109_s22, %s2903_s1  ;;  %p2909_p5 = scmp.lt.s32.totalorder %s2903_s1, %s2903_s1 }
  0x75   :  { %p2910_p6 = por %p2909_p5, %p2908_p4 }
  0x77   :  { %p2911_p7 = pnand %p2910_p6, %p2904_p3 }
  0x79   :  { %2914 = shalt.err (!%p2911_p7)
}
  0x7a   :  { %s3089_s2 = smov 128   ;;  %s3090_s23 = smov 8  }
  0x7b   :  { %114 = dma.hbm_to_vmem [thread:$0]  %s3489_s8, 384, %s109_s22, [#allocation12], %s3089_s2, %s3089_s2, %s3090_s23  }
  0x7c   :  { %s3091_s25 = smov [#allocation16]   ;;  %s3092_s3 = smov [#allocation19]  }
  0x7d   :  { %s130_s11 = sshll.u32 %s3091_s25, 4  ;;  %s152_s26 = sshll.u32 %s3092_s3, 4  ;;  %s131_s11 = int_to_ptr.vmem [resolvable:$true] %s130_s11  ;;  %s153_s26 = int_to_ptr.vmem [resolvable:$true] %s152_s26 }
  0x7e   :  { %s2923_s5 = scalar_lea.vmem %s131_s11, 384  ;;  %p2928_p9 = scmp.lt.s32.totalorder %s131_s11, %s131_s11 }
  0x7f   :  { %p2924_p8 = scmp.ne.s32.totalorder %s131_s11, %s2923_s5  ;;  %p2929_p10 = scmp.lt.s32.totalorder %s2923_s5, %s2923_s5 }
  0x81   :  { %p2930_p11 = por %p2929_p10, %p2928_p9 }
  0x83   :  { %p2931_p12 = pnand %p2930_p11, %p2924_p8 }
  0x85   :  { %2934 = shalt.err (!%p2931_p12)
}
  0x86   :  { %136 = dma.hbm_to_vmem [thread:$0]  %s3491_s10, 384, %s131_s11, [#allocation15], %s3089_s2, %s3089_s2, %s3090_s23  }
  0x87   :  { %s2943_s28 = scalar_lea.vmem %s153_s26, 384  ;;  %p2948_p0 = scmp.lt.s32.totalorder %s153_s26, %s153_s26 }
  0x88   :  { %p2944_p13 = scmp.ne.s32.totalorder %s153_s26, %s2943_s28  ;;  %p2949_p1 = scmp.lt.s32.totalorder %s2943_s28, %s2943_s28 }
  0x8a   :  { %p2950_p2 = por %p2949_p1, %p2948_p0 }
  0x8c   :  { %p2951_p3 = pnand %p2950_p2, %p2944_p13 }
  0x8e   :  { %2954 = shalt.err (!%p2951_p3)
}
  0x8f   :  { %158 = dma.hbm_to_vmem [thread:$0]  %s3493_s12, 384, %s153_s26, [#allocation18], %s3089_s2, %s3089_s2, %s3090_s23  }
  0x90   :  { %s3093_s0 = smov [#allocation22]  }
  0x91   :  { %s174_s7 = sshll.u32 %s3093_s0, 4  ;;  %s175_s7 = int_to_ptr.vmem [resolvable:$true] %s174_s7 }
  0x92   :  { %s2963_s20 = scalar_lea.vmem %s175_s7, 16384  ;;  %p2968_p5 = scmp.lt.s32.totalorder %s175_s7, %s175_s7 }
  0x93   :  { %p2964_p4 = scmp.ne.s32.totalorder %s175_s7, %s2963_s20  ;;  %p2969_p6 = scmp.lt.s32.totalorder %s2963_s20, %s2963_s20 }
  0x95   :  { %p2970_p7 = por %p2969_p6, %p2968_p5 }
  0x97   :  { %p2971_p8 = pnand %p2970_p7, %p2964_p4 }
  0x99   :  { %2974 = shalt.err (!%p2971_p8)
}
  0x9a   :  { %s3094_s10 = smov 1024   ;;  %s3095_s22 = smov 64  }
  0x9b   :  { %180 = dma.hbm_to_vmem [thread:$0]  %s3495_s14, 16384, %s175_s7, [#allocation21], %s3094_s10, %s3094_s10, %s3095_s22  }
  0x9c   :  { %s3096_s30 = smov [#allocation23]  }
  0x9d   :  { %s187_s1 = sshll.u32 %s3096_s30, 4  ;;  %s188_s1 = int_to_ptr.vmem [resolvable:$true] %s187_s1 }
  0x9e   :  { %s2983_s12 = scalar_lea.vmem %s188_s1, 128  ;;  %p2988_p10 = scmp.lt.s32.totalorder %s188_s1, %s188_s1 }
  0x9f   :  { %p2984_p9 = scmp.ne.s32.totalorder %s188_s1, %s2983_s12  ;;  %p2989_p11 = scmp.lt.s32.totalorder %s2983_s12, %s2983_s12 }
  0xa1   :  { %p2990_p12 = por %p2989_p11, %p2988_p10 }
  0xa3   :  { %p2991_p13 = pnand %p2990_p12, %p2984_p9 }
  0xa5   :  { %2994 = shalt.err (!%p2991_p13)
}
  0xa6   :  { %190 = dma.hbm_to_vmem [thread:$0]  %s3496_s15, 128, %s188_s1, [#allocation24]  }
  0xa7   :  { %3055 = dma.done.wait [#allocation3], 32  }
  0xa8   :  { %3056 = vsyncadd [#allocation3], 4294967264 }
  0xa9   :  { %3057 = dma.done.wait [#allocation6], 65600  }
  0xaa   :  { %3058 = vsyncadd [#allocation6], 4294901696 }
  0xab   :  { %3059 = dma.done.wait [#allocation9], 16416  }
  0xac   :  { %3060 = vsyncadd [#allocation9], 4294950880 }
  0xad   :  { %3061 = dma.done.wait [#allocation12], 400  }
  0xae   :  { %3062 = vsyncadd [#allocation12], 4294966896 }
  0xaf   :  { %3063 = dma.done.wait [#allocation15], 400  }
  0xb0   :  { %3064 = vsyncadd [#allocation15], 4294966896 }
  0xb1   :  { %3065 = dma.done.wait [#allocation18], 400  }
  0xb2   :  { %3066 = vsyncadd [#allocation18], 4294966896 }
  0xb3   :  { %3067 = dma.done.wait [#allocation21], 16400  }
  0xb4   :  { %3068 = vsyncadd [#allocation21], 4294950896 }
  0xb5   :  { %3069 = dma.done.wait [#allocation24], 128  }
  0xb6   :  { %3070 = vsyncadd [#allocation24], 4294967168  ;;  %v296_v0 = vld [vmem:[#allocation5 + $0x1e8] sm:$0xff]  ;;  %v295_v2 = vld [vmem:[#allocation5 + $0x1e0] sm:$0xff]  ;;  %s3509_s24 = sld [smem:[#allocation39_spill]]  ;;  %vm1792_vm0 = vcmask 1043456  }
  0xb7   :  { %v424_v1 = vld [vmem:[#allocation5 + $0x5e8] sm:$0xff]  ;;  %813 = vmatprep.subr.mxu0 %v296_v0  ;;  %v423_v3 = vld [vmem:[#allocation5 + $0x5e0] sm:$0xff]  ;;  %vm3099_vm1 = vmmov 0   ;;  %vm1788_vm2 = vcmask 162816   ;;  %vm2542_vm3 = vcmask 156672   ;;  %s3101_s22 = smov [#allocation25]  }
  0xb8   :  { %884 = vmatprep.subr.mxu1 %v424_v1  ;;  %v292_v4 = vld [vmem:[#allocation5 + $0x1c8] sm:$0xff]  ;;  %814 = vmatpush1.msra.mxu0 %v295_v2  ;;  %v291_v6 = vld [vmem:[#allocation5 + $0x1c0] sm:$0xff]  ;;  %s2554_s21 = sshll.u32 %s3101_s22, 4  ;;  %s2555_s21 = int_to_ptr.vmem [resolvable:$true] %s2554_s21 }
  0xb9   :  { %v420_v5 = vld [vmem:[#allocation5 + $0x5c8] sm:$0xff]  ;;  %885 = vmatpush1.msra.mxu1 %v423_v3  ;;  %v419_v7 = vld [vmem:[#allocation5 + $0x5c0] sm:$0xff]  ;;  %815 = vmatprep.subr.mxu0 %v292_v4 }
  0xba   :  { %v288_v8 = vld [vmem:[#allocation5 + $0x1a8] sm:$0xff]  ;;  %886 = vmatprep.subr.mxu1 %v420_v5  ;;  %v287_v10 = vld [vmem:[#allocation5 + $0x1a0] sm:$0xff]  ;;  %816 = vmatpush1.msra.mxu0 %v291_v6 }
  0xbb   :  { %v416_v9 = vld [vmem:[#allocation5 + $0x5a8] sm:$0xff]  ;;  %v415_v11 = vld [vmem:[#allocation5 + $0x5a0] sm:$0xff]  ;;  %887 = vmatpush1.msra.mxu1 %v419_v7  ;;  %817 = vmatprep.subr.mxu0 %v288_v8 }
  0xbc   :  { %v284_v12 = vld [vmem:[#allocation5 + $0x188] sm:$0xff]  ;;  %888 = vmatprep.subr.mxu1 %v416_v9  ;;  %v283_v14 = vld [vmem:[#allocation5 + $0x180] sm:$0xff]  ;;  %818 = vmatpush1.msra.mxu0 %v287_v10 }
  0xbd   :  { %v412_v13 = vld [vmem:[#allocation5 + $0x588] sm:$0xff]  ;;  %v411_v15 = vld [vmem:[#allocation5 + $0x580] sm:$0xff]  ;;  %889 = vmatpush1.msra.mxu1 %v415_v11  ;;  %819 = vmatprep.subr.mxu0 %v284_v12 }
  0xbe   :  { %v280_v16 = vld [vmem:[#allocation5 + $0x168] sm:$0xff]  ;;  %890 = vmatprep.subr.mxu1 %v412_v13  ;;  %v279_v18 = vld [vmem:[#allocation5 + $0x160] sm:$0xff]  ;;  %820 = vmatpush1.msra.mxu0 %v283_v14 }
  0xbf   :  { %v408_v17 = vld [vmem:[#allocation5 + $0x568] sm:$0xff]  ;;  %v407_v19 = vld [vmem:[#allocation5 + $0x560] sm:$0xff]  ;;  %891 = vmatpush1.msra.mxu1 %v411_v15  ;;  %821 = vmatprep.subr.mxu0 %v280_v16 }
  0xc0   :  { %v276_v20 = vld [vmem:[#allocation5 + $0x148] sm:$0xff]  ;;  %892 = vmatprep.subr.mxu1 %v408_v17  ;;  %v275_v22 = vld [vmem:[#allocation5 + $0x140] sm:$0xff]  ;;  %822 = vmatpush1.msra.mxu0 %v279_v18 }
  0xc1   :  { %v404_v21 = vld [vmem:[#allocation5 + $0x548] sm:$0xff]  ;;  %v403_v23 = vld [vmem:[#allocation5 + $0x540] sm:$0xff]  ;;  %893 = vmatpush1.msra.mxu1 %v407_v19  ;;  %823 = vmatprep.subr.mxu0 %v276_v20 }
  0xc2   :  { %v272_v24 = vld [vmem:[#allocation5 + $0x128] sm:$0xff]  ;;  %894 = vmatprep.subr.mxu1 %v404_v21  ;;  %v271_v26 = vld [vmem:[#allocation5 + $0x120] sm:$0xff]  ;;  %824 = vmatpush1.msra.mxu0 %v275_v22 }
  0xc3   :  { %v400_v25 = vld [vmem:[#allocation5 + $0x528] sm:$0xff]  ;;  %v399_v27 = vld [vmem:[#allocation5 + $0x520] sm:$0xff]  ;;  %895 = vmatpush1.msra.mxu1 %v403_v23  ;;  %825 = vmatprep.subr.mxu0 %v272_v24 }
  0xc4   :  { %v268_v28 = vld [vmem:[#allocation5 + $0x108] sm:$0xff]  ;;  %896 = vmatprep.subr.mxu1 %v400_v25  ;;  %v267_v30 = vld [vmem:[#allocation5 + $0x100] sm:$0xff]  ;;  %826 = vmatpush1.msra.mxu0 %v271_v26 }
  0xc5   :  { %v396_v29 = vld [vmem:[#allocation5 + $0x508] sm:$0xff]  ;;  %v395_v31 = vld [vmem:[#allocation5 + $0x500] sm:$0xff]  ;;  %897 = vmatpush1.msra.mxu1 %v399_v27  ;;  %827 = vmatprep.subr.mxu0 %v268_v28 }
  0xc6   :  { %v264_v32 = vld [vmem:[#allocation5 + $0xe8] sm:$0xff]  ;;  %898 = vmatprep.subr.mxu1 %v396_v29  ;;  %v263_v34 = vld [vmem:[#allocation5 + $0xe0] sm:$0xff]  ;;  %828 = vmatpush1.msra.mxu0 %v267_v30  ;;  %v749_v30 = vlaneseq }
  0xc7   :  { %v392_v33 = vld [vmem:[#allocation5 + $0x4e8] sm:$0xff]  ;;  %v391_v35 = vld [vmem:[#allocation5 + $0x4e0] sm:$0xff]  ;;  %899 = vmatpush1.msra.mxu1 %v395_v31  ;;  %829 = vmatprep.subr.mxu0 %v264_v32  ;;  %v3097_v31 = vmov 1983009808  }
  0xc8   :  { %v260_v36 = vld [vmem:[#allocation5 + $0xc8] sm:$0xff]  ;;  %900 = vmatprep.subr.mxu1 %v392_v33  ;;  %v259_v38 = vld [vmem:[#allocation5 + $0xc0] sm:$0xff]  ;;  %830 = vmatpush1.msra.mxu0 %v263_v34  ;;  %v773_v32 = vunpack.c.l.s4 %v3097_v31 }
  0xc9   :  { %v388_v37 = vld [vmem:[#allocation5 + $0x4c8] sm:$0xff]  ;;  %v387_v39 = vld [vmem:[#allocation5 + $0x4c0] sm:$0xff]  ;;  %901 = vmatpush1.msra.mxu1 %v391_v35  ;;  %831 = vmatprep.subr.mxu0 %v260_v36 }
  0xca   :  { %v256_v40 = vld [vmem:[#allocation5 + $0xa8] sm:$0xff]  ;;  %902 = vmatprep.subr.mxu1 %v388_v37  ;;  %v255_v42 = vld [vmem:[#allocation5 + $0xa0] sm:$0xff]  ;;  %832 = vmatpush1.msra.mxu0 %v259_v38 }
  0xcb   :  { %v384_v41 = vld [vmem:[#allocation5 + $0x4a8] sm:$0xff]  ;;  %v383_v43 = vld [vmem:[#allocation5 + $0x4a0] sm:$0xff]  ;;  %903 = vmatpush1.msra.mxu1 %v387_v39  ;;  %833 = vmatprep.subr.mxu0 %v256_v40 }
  0xcc   :  { %v252_v44 = vld [vmem:[#allocation5 + $0x88] sm:$0xff]  ;;  %904 = vmatprep.subr.mxu1 %v384_v41  ;;  %v251_v46 = vld [vmem:[#allocation5 + $0x80] sm:$0xff]  ;;  %834 = vmatpush1.msra.mxu0 %v255_v42  ;;  %v3245_v41 = vshrl.u32 %v749_v30, 7  ;;  %v774_v42 = vunpack.c.0.s8 %v773_v32 }
  0xcd   :  { %v380_v45 = vld [vmem:[#allocation5 + $0x488] sm:$0xff]  ;;  %v379_v47 = vld [vmem:[#allocation5 + $0x480] sm:$0xff]  ;;  %905 = vmatpush1.msra.mxu1 %v383_v43  ;;  %835 = vmatprep.subr.mxu0 %v252_v44 }
  0xce   :  { %v248_v48 = vld [vmem:[#allocation5 + $0x68] sm:$0xff]  ;;  %906 = vmatprep.subr.mxu1 %v380_v45  ;;  %v247_v50 = vld [vmem:[#allocation5 + $0x60] sm:$0xff]  ;;  %836 = vmatpush1.msra.mxu0 %v251_v46 }
  0xcf   :  { %v376_v49 = vld [vmem:[#allocation5 + $0x468] sm:$0xff]  ;;  %v375_v51 = vld [vmem:[#allocation5 + $0x460] sm:$0xff]  ;;  %907 = vmatpush1.msra.mxu1 %v379_v47  ;;  %837 = vmatprep.subr.mxu0 %v248_v48 }
  0xd0   :  { %v244_v52 = vld [vmem:[#allocation5 + $0x48] sm:$0xff]  ;;  %908 = vmatprep.subr.mxu1 %v376_v49  ;;  %v243_v54 = vld [vmem:[#allocation5 + $0x40] sm:$0xff]  ;;  %838 = vmatpush1.msra.mxu0 %v247_v50 }
  0xd1   :  { %v372_v53 = vld [vmem:[#allocation5 + $0x448] sm:$0xff]  ;;  %v371_v55 = vld [vmem:[#allocation5 + $0x440] sm:$0xff]  ;;  %909 = vmatpush1.msra.mxu1 %v375_v51  ;;  %839 = vmatprep.subr.mxu0 %v244_v52  ;;  %v3251_v52 = vsub.s32 %v774_v42, %v3245_v41 }
  0xd2   :  { %v240_v56 = vld [vmem:[#allocation5 + $0x28] sm:$0xff]  ;;  %910 = vmatprep.subr.mxu1 %v372_v53  ;;  %v239_v58 = vld [vmem:[#allocation5 + $0x20] sm:$0xff]  ;;  %840 = vmatpush1.msra.mxu0 %v243_v54 }
  0xd3   :  { %v368_v57 = vld [vmem:[#allocation5 + $0x428] sm:$0xff]  ;;  %v367_v59 = vld [vmem:[#allocation5 + $0x420] sm:$0xff]  ;;  %911 = vmatpush1.msra.mxu1 %v371_v55  ;;  %841 = vmatprep.subr.mxu0 %v240_v56 }
  0xd4   :  { %v236_v60 = vld [vmem:[#allocation5 + $0x8] sm:$0xff]  ;;  %912 = vmatprep.subr.mxu1 %v368_v57  ;;  %v235_v62 = vld [vmem:[#allocation5] sm:$0xff]  ;;  %842 = vmatpush1.msra.mxu0 %v239_v58 }
  0xd5   :  { %v364_v61 = vld [vmem:[#allocation5 + $0x408] sm:$0xff]  ;;  %v363_v63 = vld [vmem:[#allocation5 + $0x400] sm:$0xff]  ;;  %913 = vmatpush1.msra.mxu1 %v367_v59  ;;  %843 = vmatprep.subr.mxu0 %v236_v60 }
  0xd6   :  { %v360_v0 = vld [vmem:[#allocation5 + $0x3e8] sm:$0xff]  ;;  %914 = vmatprep.subr.mxu1 %v364_v61  ;;  %v359_v2 = vld [vmem:[#allocation5 + $0x3e0] sm:$0xff]  ;;  %844 = vmatpush1.msra.mxu0 %v235_v62 }
  0xd7   :  { %v488_v1 = vld [vmem:[#allocation5 + $0x7e8] sm:$0xff]  ;;  %v487_v3 = vld [vmem:[#allocation5 + $0x7e0] sm:$0xff]  ;;  %915 = vmatpush1.msra.mxu1 %v363_v63  ;;  %845 = vmatprep.subr.mxu0 %v360_v0 }
  0xd8   :  { %v356_v4 = vld [vmem:[#allocation5 + $0x3c8] sm:$0xff]  ;;  %916 = vmatprep.subr.mxu1 %v488_v1  ;;  %v355_v6 = vld [vmem:[#allocation5 + $0x3c0] sm:$0xff]  ;;  %846 = vmatpush2.msra.mxu0 %v359_v2 }
  0xd9   :  { %v484_v5 = vld [vmem:[#allocation5 + $0x7c8] sm:$0xff]  ;;  %v483_v7 = vld [vmem:[#allocation5 + $0x7c0] sm:$0xff]  ;;  %917 = vmatpush2.msra.mxu1 %v487_v3  ;;  %847 = vmatprep.subr.mxu0 %v356_v4 }
  0xda   :  { %v352_v8 = vld [vmem:[#allocation5 + $0x3a8] sm:$0xff]  ;;  %918 = vmatprep.subr.mxu1 %v484_v5  ;;  %v351_v10 = vld [vmem:[#allocation5 + $0x3a0] sm:$0xff]  ;;  %848 = vmatpush2.msra.mxu0 %v355_v6 }
  0xdb   :  { %v480_v9 = vld [vmem:[#allocation5 + $0x7a8] sm:$0xff]  ;;  %v479_v11 = vld [vmem:[#allocation5 + $0x7a0] sm:$0xff]  ;;  %919 = vmatpush2.msra.mxu1 %v483_v7  ;;  %849 = vmatprep.subr.mxu0 %v352_v8 }
  0xdc   :  { %v348_v12 = vld [vmem:[#allocation5 + $0x388] sm:$0xff]  ;;  %920 = vmatprep.subr.mxu1 %v480_v9  ;;  %v347_v14 = vld [vmem:[#allocation5 + $0x380] sm:$0xff]  ;;  %850 = vmatpush2.msra.mxu0 %v351_v10 }
  0xdd   :  { %v476_v13 = vld [vmem:[#allocation5 + $0x788] sm:$0xff]  ;;  %v475_v15 = vld [vmem:[#allocation5 + $0x780] sm:$0xff]  ;;  %921 = vmatpush2.msra.mxu1 %v479_v11  ;;  %851 = vmatprep.subr.mxu0 %v348_v12 }
  0xde   :  { %v344_v16 = vld [vmem:[#allocation5 + $0x368] sm:$0xff]  ;;  %922 = vmatprep.subr.mxu1 %v476_v13  ;;  %v343_v18 = vld [vmem:[#allocation5 + $0x360] sm:$0xff]  ;;  %852 = vmatpush2.msra.mxu0 %v347_v14 }
  0xdf   :  { %v472_v17 = vld [vmem:[#allocation5 + $0x768] sm:$0xff]  ;;  %v471_v19 = vld [vmem:[#allocation5 + $0x760] sm:$0xff]  ;;  %923 = vmatpush2.msra.mxu1 %v475_v15  ;;  %853 = vmatprep.subr.mxu0 %v344_v16 }
  0xe0   :  { %v340_v20 = vld [vmem:[#allocation5 + $0x348] sm:$0xff]  ;;  %924 = vmatprep.subr.mxu1 %v472_v17  ;;  %v339_v22 = vld [vmem:[#allocation5 + $0x340] sm:$0xff]  ;;  %854 = vmatpush2.msra.mxu0 %v343_v18 }
  0xe1   :  { %v468_v21 = vld [vmem:[#allocation5 + $0x748] sm:$0xff]  ;;  %v467_v23 = vld [vmem:[#allocation5 + $0x740] sm:$0xff]  ;;  %925 = vmatpush2.msra.mxu1 %v471_v19  ;;  %855 = vmatprep.subr.mxu0 %v340_v20 }
  0xe2   :  { %v336_v24 = vld [vmem:[#allocation5 + $0x328] sm:$0xff]  ;;  %926 = vmatprep.subr.mxu1 %v468_v21  ;;  %v335_v26 = vld [vmem:[#allocation5 + $0x320] sm:$0xff]  ;;  %856 = vmatpush2.msra.mxu0 %v339_v22 }
  0xe3   :  { %v464_v25 = vld [vmem:[#allocation5 + $0x728] sm:$0xff]  ;;  %v463_v27 = vld [vmem:[#allocation5 + $0x720] sm:$0xff]  ;;  %927 = vmatpush2.msra.mxu1 %v467_v23  ;;  %857 = vmatprep.subr.mxu0 %v336_v24 }
  0xe4   :  { %v332_v28 = vld [vmem:[#allocation5 + $0x308] sm:$0xff]  ;;  %928 = vmatprep.subr.mxu1 %v464_v25  ;;  %v331_v33 = vld [vmem:[#allocation5 + $0x300] sm:$0xff]  ;;  %858 = vmatpush2.msra.mxu0 %v335_v26 }
  0xe5   :  { %v460_v29 = vld [vmem:[#allocation5 + $0x708] sm:$0xff]  ;;  %v459_v34 = vld [vmem:[#allocation5 + $0x700] sm:$0xff]  ;;  %929 = vmatpush2.msra.mxu1 %v463_v27  ;;  %859 = vmatprep.subr.mxu0 %v332_v28 }
  0xe6   :  { %v328_v35 = vld [vmem:[#allocation5 + $0x2e8] sm:$0xff]  ;;  %930 = vmatprep.subr.mxu1 %v460_v29  ;;  %v327_v37 = vld [vmem:[#allocation5 + $0x2e0] sm:$0xff]  ;;  %860 = vmatpush2.msra.mxu0 %v331_v33 }
  0xe7   :  { %v456_v36 = vld [vmem:[#allocation5 + $0x6e8] sm:$0xff]  ;;  %v455_v38 = vld [vmem:[#allocation5 + $0x6e0] sm:$0xff]  ;;  %931 = vmatpush2.msra.mxu1 %v459_v34  ;;  %861 = vmatprep.subr.mxu0 %v328_v35 }
  0xe8   :  { %v324_v39 = vld [vmem:[#allocation5 + $0x2c8] sm:$0xff]  ;;  %932 = vmatprep.subr.mxu1 %v456_v36  ;;  %v323_v43 = vld [vmem:[#allocation5 + $0x2c0] sm:$0xff]  ;;  %862 = vmatpush2.msra.mxu0 %v327_v37 }
  0xe9   :  { %v452_v40 = vld [vmem:[#allocation5 + $0x6c8] sm:$0xff]  ;;  %v451_v44 = vld [vmem:[#allocation5 + $0x6c0] sm:$0xff]  ;;  %933 = vmatpush2.msra.mxu1 %v455_v38  ;;  %863 = vmatprep.subr.mxu0 %v324_v39 }
  0xea   :  { %v320_v45 = vld [vmem:[#allocation5 + $0x2a8] sm:$0xff]  ;;  %934 = vmatprep.subr.mxu1 %v452_v40  ;;  %v319_v47 = vld [vmem:[#allocation5 + $0x2a0] sm:$0xff]  ;;  %864 = vmatpush2.msra.mxu0 %v323_v43 }
  0xeb   :  { %v448_v46 = vld [vmem:[#allocation5 + $0x6a8] sm:$0xff]  ;;  %v447_v48 = vld [vmem:[#allocation5 + $0x6a0] sm:$0xff]  ;;  %935 = vmatpush2.msra.mxu1 %v451_v44  ;;  %865 = vmatprep.subr.mxu0 %v320_v45 }
  0xec   :  { %v233_v49 = vld [vmem:[%s3509_s24] sm:$0xff]  ;;  %v316_v50 = vld [vmem:[#allocation5 + $0x288] sm:$0xff]  ;;  %936 = vmatprep.subr.mxu1 %v448_v46  ;;  %866 = vmatpush2.msra.mxu0 %v319_v47 }
  0xed   :  { %v444_v51 = vld [vmem:[#allocation5 + $0x688] sm:$0xff]  ;;  %v315_v53 = vld [vmem:[#allocation5 + $0x280] sm:$0xff]  ;;  %937 = vmatpush2.msra.mxu1 %v447_v48  ;;  %v771_v57 = vcombine.high %v233_v49, %v233_v49  ;;  %867 = vmatprep.subr.mxu0 %v316_v50  ;;  %v3254_v62 = vrot.slane %v233_v49, %v3251_v52 }
  0xee   :  { %v443_v54 = vld [vmem:[#allocation5 + $0x680] sm:$0xff]  ;;  %v312_v55 = vld [vmem:[#allocation5 + $0x268] sm:$0xff]  ;;  %938 = vmatprep.subr.mxu1 %v444_v51  ;;  %868 = vmatpush2.msra.mxu0 %v315_v53 }
  0xef   :  { %v440_v56 = vld [vmem:[#allocation5 + $0x668] sm:$0xff]  ;;  %v311_v58 = vld [vmem:[#allocation5 + $0x260] sm:$0xff]  ;;  %939 = vmatpush2.msra.mxu1 %v443_v54  ;;  %869 = vmatprep.subr.mxu0 %v312_v55  ;;  %v3257_v3 = vrot.slane %v771_v57, %v3251_v52  ;;  %v3261_v8 = vcombine.high %v3254_v62, %v3254_v62 }
  0xf0   :  { %v439_v59 = vld [vmem:[#allocation5 + $0x660] sm:$0xff]  ;;  %v308_v60 = vld [vmem:[#allocation5 + $0x248] sm:$0xff]  ;;  %940 = vmatprep.subr.mxu1 %v440_v56  ;;  %870 = vmatpush2.msra.mxu0 %v311_v58 }
  0xf1   :  { %v436_v61 = vld [vmem:[#allocation5 + $0x648] sm:$0xff]  ;;  %v307_v63 = vld [vmem:[#allocation5 + $0x240] sm:$0xff]  ;;  %941 = vmatpush2.msra.mxu1 %v439_v59  ;;  %871 = vmatprep.subr.mxu0 %v308_v60  ;;  %v3265_v11 = vcombine.high %v3257_v3, %v3257_v3 }
  0xf2   :  { %v435_v0 = vld [vmem:[#allocation5 + $0x640] sm:$0xff]  ;;  %v304_v1 = vld [vmem:[#allocation5 + $0x228] sm:$0xff]  ;;  %942 = vmatprep.subr.mxu1 %v436_v61  ;;  %872 = vmatpush2.msra.mxu0 %v307_v63 }
  0xf3   :  { %v432_v2 = vld [vmem:[#allocation5 + $0x628] sm:$0xff]  ;;  %v303_v4 = vld [vmem:[#allocation5 + $0x220] sm:$0xff]  ;;  %943 = vmatpush2.msra.mxu1 %v435_v0  ;;  %873 = vmatprep.subr.mxu0 %v304_v1 }
  0xf4   :  { %v431_v5 = vld [vmem:[#allocation5 + $0x620] sm:$0xff]  ;;  %v300_v6 = vld [vmem:[#allocation5 + $0x208] sm:$0xff]  ;;  %944 = vmatprep.subr.mxu1 %v432_v2  ;;  %874 = vmatpush2.msra.mxu0 %v303_v4 }
  0xf5   :  { %v428_v7 = vld [vmem:[#allocation5 + $0x608] sm:$0xff]  ;;  %v299_v9 = vld [vmem:[#allocation5 + $0x200] sm:$0xff]  ;;  %945 = vmatpush2.msra.mxu1 %v431_v5  ;;  %875 = vmatprep.subr.mxu0 %v300_v6 }
  0xf6   :  { %v427_v10 = vld [vmem:[#allocation5 + $0x600] sm:$0xff]  ;;  %946 = vmatprep.subr.mxu1 %v428_v7  ;;  %v552_v12 = vld [vmem:[#allocation5 + $0x9e8] sm:$0xff]  ;;  %876 = vmatpush2.msra.mxu0 %v299_v9 }
  0xf7   :  { %877 = vmatprep.mubr.f32.mxu0 %v3261_v8  ;;  %v680_v13 = vld [vmem:[#allocation5 + $0xde8] sm:$0xff]  ;;  %947 = vmatpush2.msra.mxu1 %v427_v10  ;;  %v551_v14 = vld [vmem:[#allocation5 + $0x9e0] sm:$0xff] }
  0xf8   :  { %878 = vmatmul.mubr.f32.vlgmr.msra.gmra.mxu0 %v3254_v62  ;;  %v679_v15 = vld [vmem:[#allocation5 + $0xde0] sm:$0xff]  ;;  %948 = vmatprep.mubr.f32.mxu1 %v3265_v11  ;;  %v548_v16 = vld [vmem:[#allocation5 + $0x9c8] sm:$0xff] }
  0xf9   :  { %955 = vmatprep.subr.mxu0 %v552_v12  ;;  %v676_v17 = vld [vmem:[#allocation5 + $0xdc8] sm:$0xff]  ;;  %1026 = vmatprep.subr.mxu1 %v680_v13  ;;  %v547_v18 = vld [vmem:[#allocation5 + $0x9c0] sm:$0xff] }
  0xfa   :  { %949 = vmatmul.mubr.f32.vlgmr.msra.gmra.mxu1 %v3257_v3  ;;  %v675_v19 = vld [vmem:[#allocation5 + $0xdc0] sm:$0xff]  ;;  %956 = vmatpush1.msra.mxu0 %v551_v14  ;;  %v544_v20 = vld [vmem:[#allocation5 + $0x9a8] sm:$0xff] }
  0xfb   :  { %1027 = vmatpush1.msra.mxu1 %v679_v15  ;;  %v672_v21 = vld [vmem:[#allocation5 + $0xda8] sm:$0xff]  ;;  %957 = vmatprep.subr.mxu0 %v548_v16  ;;  %v543_v22 = vld [vmem:[#allocation5 + $0x9a0] sm:$0xff] }
  0xfc   :  { %1028 = vmatprep.subr.mxu1 %v676_v17  ;;  %v671_v23 = vld [vmem:[#allocation5 + $0xda0] sm:$0xff]  ;;  %958 = vmatpush1.msra.mxu0 %v547_v18  ;;  %v540_v24 = vld [vmem:[#allocation5 + $0x988] sm:$0xff] }
  0xfd   :  { %1029 = vmatpush1.msra.mxu1 %v675_v19  ;;  %v668_v25 = vld [vmem:[#allocation5 + $0xd88] sm:$0xff]  ;;  %959 = vmatprep.subr.mxu0 %v544_v20  ;;  %v539_v26 = vld [vmem:[#allocation5 + $0x980] sm:$0xff] }
  0xfe   :  { %1030 = vmatprep.subr.mxu1 %v672_v21  ;;  %v667_v27 = vld [vmem:[#allocation5 + $0xd80] sm:$0xff]  ;;  %960 = vmatpush1.msra.mxu0 %v543_v22  ;;  %v536_v28 = vld [vmem:[#allocation5 + $0x968] sm:$0xff] }
  0xff   :  { %1031 = vmatpush1.msra.mxu1 %v671_v23  ;;  %v664_v29 = vld [vmem:[#allocation5 + $0xd68] sm:$0xff]  ;;  %961 = vmatprep.subr.mxu0 %v540_v24  ;;  %v535_v30 = vld [vmem:[#allocation5 + $0x960] sm:$0xff] }
 0x100   :  { %1032 = vmatprep.subr.mxu1 %v668_v25  ;;  %v663_v31 = vld [vmem:[#allocation5 + $0xd60] sm:$0xff]  ;;  %962 = vmatpush1.msra.mxu0 %v539_v26  ;;  %v532_v32 = vld [vmem:[#allocation5 + $0x948] sm:$0xff] }
 0x101   :  { %1033 = vmatpush1.msra.mxu1 %v667_v27  ;;  %v660_v33 = vld [vmem:[#allocation5 + $0xd48] sm:$0xff]  ;;  %963 = vmatprep.subr.mxu0 %v536_v28  ;;  %v531_v34 = vld [vmem:[#allocation5 + $0x940] sm:$0xff] }
 0x102   :  { %1034 = vmatprep.subr.mxu1 %v664_v29  ;;  %v659_v35 = vld [vmem:[#allocation5 + $0xd40] sm:$0xff]  ;;  %964 = vmatpush1.msra.mxu0 %v535_v30  ;;  %v528_v36 = vld [vmem:[#allocation5 + $0x928] sm:$0xff] }
 0x103   :  { %1035 = vmatpush1.msra.mxu1 %v663_v31  ;;  %v656_v37 = vld [vmem:[#allocation5 + $0xd28] sm:$0xff]  ;;  %965 = vmatprep.subr.mxu0 %v532_v32  ;;  %v527_v38 = vld [vmem:[#allocation5 + $0x920] sm:$0xff] }
 0x104   :  { %1036 = vmatprep.subr.mxu1 %v660_v33  ;;  %v655_v39 = vld [vmem:[#allocation5 + $0xd20] sm:$0xff]  ;;  %966 = vmatpush1.msra.mxu0 %v531_v34  ;;  %v524_v40 = vld [vmem:[#allocation5 + $0x908] sm:$0xff] }
 0x105   :  { %1037 = vmatpush1.msra.mxu1 %v659_v35  ;;  %v652_v42 = vld [vmem:[#allocation5 + $0xd08] sm:$0xff]  ;;  %967 = vmatprep.subr.mxu0 %v528_v36  ;;  %v523_v43 = vld [vmem:[#allocation5 + $0x900] sm:$0xff] }
 0x106   :  { %1038 = vmatprep.subr.mxu1 %v656_v37  ;;  %v651_v44 = vld [vmem:[#allocation5 + $0xd00] sm:$0xff]  ;;  %968 = vmatpush1.msra.mxu0 %v527_v38  ;;  %v520_v45 = vld [vmem:[#allocation5 + $0x8e8] sm:$0xff] }
 0x107   :  { %1039 = vmatpush1.msra.mxu1 %v655_v39  ;;  %v648_v46 = vld [vmem:[#allocation5 + $0xce8] sm:$0xff]  ;;  %969 = vmatprep.subr.mxu0 %v524_v40  ;;  %v519_v47 = vld [vmem:[#allocation5 + $0x8e0] sm:$0xff] }
 0x108   :  { %1040 = vmatprep.subr.mxu1 %v652_v42  ;;  %v647_v48 = vld [vmem:[#allocation5 + $0xce0] sm:$0xff]  ;;  %970 = vmatpush1.msra.mxu0 %v523_v43  ;;  %v516_v49 = vld [vmem:[#allocation5 + $0x8c8] sm:$0xff] }
 0x109   :  { %1041 = vmatpush1.msra.mxu1 %v651_v44  ;;  %v644_v50 = vld [vmem:[#allocation5 + $0xcc8] sm:$0xff]  ;;  %971 = vmatprep.subr.mxu0 %v520_v45  ;;  %v515_v51 = vld [vmem:[#allocation5 + $0x8c0] sm:$0xff] }
 0x10a   :  { %1042 = vmatprep.subr.mxu1 %v648_v46  ;;  %v643_v53 = vld [vmem:[#allocation5 + $0xcc0] sm:$0xff]  ;;  %972 = vmatpush1.msra.mxu0 %v519_v47  ;;  %v512_v54 = vld [vmem:[#allocation5 + $0x8a8] sm:$0xff] }
 0x10b   :  { %1043 = vmatpush1.msra.mxu1 %v647_v48  ;;  %v640_v55 = vld [vmem:[#allocation5 + $0xca8] sm:$0xff]  ;;  %973 = vmatprep.subr.mxu0 %v516_v49  ;;  %v511_v56 = vld [vmem:[#allocation5 + $0x8a0] sm:$0xff] }
 0x10c   :  { %1044 = vmatprep.subr.mxu1 %v644_v50  ;;  %v639_v57 = vld [vmem:[#allocation5 + $0xca0] sm:$0xff]  ;;  %974 = vmatpush1.msra.mxu0 %v515_v51  ;;  %v508_v58 = vld [vmem:[#allocation5 + $0x888] sm:$0xff] }
 0x10d   :  { %1045 = vmatpush1.msra.mxu1 %v643_v53  ;;  %v636_v59 = vld [vmem:[#allocation5 + $0xc88] sm:$0xff]  ;;  %975 = vmatprep.subr.mxu0 %v512_v54  ;;  %v507_v60 = vld [vmem:[#allocation5 + $0x880] sm:$0xff] }
 0x10e   :  { %1046 = vmatprep.subr.mxu1 %v640_v55  ;;  %v635_v61 = vld [vmem:[#allocation5 + $0xc80] sm:$0xff]  ;;  %976 = vmatpush1.msra.mxu0 %v511_v56  ;;  %v504_v63 = vld [vmem:[#allocation5 + $0x868] sm:$0xff] }
 0x10f   :  { %1047 = vmatpush1.msra.mxu1 %v639_v57  ;;  %v632_v0 = vld [vmem:[#allocation5 + $0xc68] sm:$0xff]  ;;  %977 = vmatprep.subr.mxu0 %v508_v58  ;;  %v503_v1 = vld [vmem:[#allocation5 + $0x860] sm:$0xff] }
 0x110   :  { %1048 = vmatprep.subr.mxu1 %v636_v59  ;;  %v631_v2 = vld [vmem:[#allocation5 + $0xc60] sm:$0xff]  ;;  %978 = vmatpush1.msra.mxu0 %v507_v60  ;;  %v500_v4 = vld [vmem:[#allocation5 + $0x848] sm:$0xff] }
 0x111   :  { %1049 = vmatpush1.msra.mxu1 %v635_v61  ;;  %v628_v5 = vld [vmem:[#allocation5 + $0xc48] sm:$0xff]  ;;  %979 = vmatprep.subr.mxu0 %v504_v63  ;;  %v499_v6 = vld [vmem:[#allocation5 + $0x840] sm:$0xff] }
 0x112   :  { %1050 = vmatprep.subr.mxu1 %v632_v0  ;;  %v627_v7 = vld [vmem:[#allocation5 + $0xc40] sm:$0xff]  ;;  %980 = vmatpush1.msra.mxu0 %v503_v1  ;;  %v496_v9 = vld [vmem:[#allocation5 + $0x828] sm:$0xff] }
 0x113   :  { %1051 = vmatpush1.msra.mxu1 %v631_v2  ;;  %v624_v10 = vld [vmem:[#allocation5 + $0xc28] sm:$0xff]  ;;  %981 = vmatprep.subr.mxu0 %v500_v4  ;;  %v495_v12 = vld [vmem:[#allocation5 + $0x820] sm:$0xff] }
 0x114   :  { %1052 = vmatprep.subr.mxu1 %v628_v5  ;;  %v623_v13 = vld [vmem:[#allocation5 + $0xc20] sm:$0xff]  ;;  %982 = vmatpush1.msra.mxu0 %v499_v6  ;;  %v492_v14 = vld [vmem:[#allocation5 + $0x808] sm:$0xff] }
 0x115   :  { %1053 = vmatpush1.msra.mxu1 %v627_v7  ;;  %v620_v15 = vld [vmem:[#allocation5 + $0xc08] sm:$0xff]  ;;  %983 = vmatprep.subr.mxu0 %v496_v9  ;;  %v491_v16 = vld [vmem:[#allocation5 + $0x800] sm:$0xff] }
 0x116   :  { %1054 = vmatprep.subr.mxu1 %v624_v10  ;;  %v619_v17 = vld [vmem:[#allocation5 + $0xc00] sm:$0xff]  ;;  %984 = vmatpush1.msra.mxu0 %v495_v12  ;;  %v616_v18 = vld [vmem:[#allocation5 + $0xbe8] sm:$0xff] }
 0x117   :  { %1055 = vmatpush1.msra.mxu1 %v623_v13  ;;  %v744_v19 = vld [vmem:[#allocation5 + $0xfe8] sm:$0xff]  ;;  %985 = vmatprep.subr.mxu0 %v492_v14  ;;  %v615_v20 = vld [vmem:[#allocation5 + $0xbe0] sm:$0xff] }
 0x118   :  { %1056 = vmatprep.subr.mxu1 %v620_v15  ;;  %v743_v21 = vld [vmem:[#allocation5 + $0xfe0] sm:$0xff]  ;;  %986 = vmatpush1.msra.mxu0 %v491_v16  ;;  %v612_v22 = vld [vmem:[#allocation5 + $0xbc8] sm:$0xff] }
 0x119   :  { %1057 = vmatpush1.msra.mxu1 %v619_v17  ;;  %v740_v23 = vld [vmem:[#allocation5 + $0xfc8] sm:$0xff]  ;;  %987 = vmatprep.subr.mxu0 %v616_v18  ;;  %v611_v24 = vld [vmem:[#allocation5 + $0xbc0] sm:$0xff] }
 0x11a   :  { %1058 = vmatprep.subr.mxu1 %v744_v19  ;;  %v739_v25 = vld [vmem:[#allocation5 + $0xfc0] sm:$0xff]  ;;  %988 = vmatpush2.msra.mxu0 %v615_v20  ;;  %v608_v26 = vld [vmem:[#allocation5 + $0xba8] sm:$0xff] }
 0x11b   :  { %1059 = vmatpush2.msra.mxu1 %v743_v21  ;;  %v736_v27 = vld [vmem:[#allocation5 + $0xfa8] sm:$0xff]  ;;  %989 = vmatprep.subr.mxu0 %v612_v22  ;;  %v607_v28 = vld [vmem:[#allocation5 + $0xba0] sm:$0xff] }
 0x11c   :  { %1060 = vmatprep.subr.mxu1 %v740_v23  ;;  %v735_v29 = vld [vmem:[#allocation5 + $0xfa0] sm:$0xff]  ;;  %990 = vmatpush2.msra.mxu0 %v611_v24  ;;  %v604_v30 = vld [vmem:[#allocation5 + $0xb88] sm:$0xff] }
 0x11d   :  { %1061 = vmatpush2.msra.mxu1 %v739_v25  ;;  %v732_v31 = vld [vmem:[#allocation5 + $0xf88] sm:$0xff]  ;;  %991 = vmatprep.subr.mxu0 %v608_v26  ;;  %v603_v32 = vld [vmem:[#allocation5 + $0xb80] sm:$0xff] }
 0x11e   :  { %1062 = vmatprep.subr.mxu1 %v736_v27  ;;  %v731_v33 = vld [vmem:[#allocation5 + $0xf80] sm:$0xff]  ;;  %992 = vmatpush2.msra.mxu0 %v607_v28  ;;  %v600_v34 = vld [vmem:[#allocation5 + $0xb68] sm:$0xff] }
 0x11f   :  { %1063 = vmatpush2.msra.mxu1 %v735_v29  ;;  %v728_v35 = vld [vmem:[#allocation5 + $0xf68] sm:$0xff]  ;;  %993 = vmatprep.subr.mxu0 %v604_v30  ;;  %v599_v36 = vld [vmem:[#allocation5 + $0xb60] sm:$0xff]  ;;  %v298_v30 = vld [vmem:[#allocation5 + $0x1f8] sm:$0xff] }
 0x120   :  { %1064 = vmatprep.subr.mxu1 %v732_v31  ;;  %v727_v37 = vld [vmem:[#allocation5 + $0xf60] sm:$0xff]  ;;  %994 = vmatpush2.msra.mxu0 %v603_v32  ;;  %v596_v38 = vld [vmem:[#allocation5 + $0xb48] sm:$0xff]  ;;  %v426_v31 = vld [vmem:[#allocation5 + $0x5f8] sm:$0xff] }
 0x121   :  { %1065 = vmatpush2.msra.mxu1 %v731_v33  ;;  %v724_v39 = vld [vmem:[#allocation5 + $0xf48] sm:$0xff]  ;;  %995 = vmatprep.subr.mxu0 %v600_v34  ;;  %v595_v40 = vld [vmem:[#allocation5 + $0xb40] sm:$0xff]  ;;  %v297_v32 = vld [vmem:[#allocation5 + $0x1f0] sm:$0xff] }
 0x122   :  { %1066 = vmatprep.subr.mxu1 %v728_v35  ;;  %v723_v42 = vld [vmem:[#allocation5 + $0xf40] sm:$0xff]  ;;  %996 = vmatpush2.msra.mxu0 %v599_v36  ;;  %v592_v43 = vld [vmem:[#allocation5 + $0xb28] sm:$0xff]  ;;  %v425_v33 = vld [vmem:[#allocation5 + $0x5f0] sm:$0xff] }
 0x123   :  { %1067 = vmatpush2.msra.mxu1 %v727_v37  ;;  %v720_v44 = vld [vmem:[#allocation5 + $0xf28] sm:$0xff]  ;;  %997 = vmatprep.subr.mxu0 %v596_v38  ;;  %v591_v45 = vld [vmem:[#allocation5 + $0xb20] sm:$0xff]  ;;  %v294_v34 = vld [vmem:[#allocation5 + $0x1d8] sm:$0xff] }
 0x124   :  { %1068 = vmatprep.subr.mxu1 %v724_v39  ;;  %v719_v46 = vld [vmem:[#allocation5 + $0xf20] sm:$0xff]  ;;  %998 = vmatpush2.msra.mxu0 %v595_v40  ;;  %v588_v47 = vld [vmem:[#allocation5 + $0xb08] sm:$0xff]  ;;  %v422_v35 = vld [vmem:[#allocation5 + $0x5d8] sm:$0xff] }
 0x125   :  { %1069 = vmatpush2.msra.mxu1 %v723_v42  ;;  %v716_v48 = vld [vmem:[#allocation5 + $0xf08] sm:$0xff]  ;;  %999 = vmatprep.subr.mxu0 %v592_v43  ;;  %v587_v49 = vld [vmem:[#allocation5 + $0xb00] sm:$0xff]  ;;  %v293_v36 = vld [vmem:[#allocation5 + $0x1d0] sm:$0xff] }
 0x126   :  { %1070 = vmatprep.subr.mxu1 %v720_v44  ;;  %v715_v50 = vld [vmem:[#allocation5 + $0xf00] sm:$0xff]  ;;  %1000 = vmatpush2.msra.mxu0 %v591_v45  ;;  %v584_v51 = vld [vmem:[#allocation5 + $0xae8] sm:$0xff]  ;;  %v421_v37 = vld [vmem:[#allocation5 + $0x5d0] sm:$0xff] }
 0x127   :  { %1071 = vmatpush2.msra.mxu1 %v719_v46  ;;  %v712_v53 = vld [vmem:[#allocation5 + $0xee8] sm:$0xff]  ;;  %1001 = vmatprep.subr.mxu0 %v588_v47  ;;  %v583_v54 = vld [vmem:[#allocation5 + $0xae0] sm:$0xff]  ;;  %v290_v38 = vld [vmem:[#allocation5 + $0x1b8] sm:$0xff] }
 0x128   :  { %1072 = vmatprep.subr.mxu1 %v716_v48  ;;  %v711_v55 = vld [vmem:[#allocation5 + $0xee0] sm:$0xff]  ;;  %1002 = vmatpush2.msra.mxu0 %v587_v49  ;;  %v580_v56 = vld [vmem:[#allocation5 + $0xac8] sm:$0xff]  ;;  %v418_v39 = vld [vmem:[#allocation5 + $0x5b8] sm:$0xff] }
 0x129   :  { %1073 = vmatpush2.msra.mxu1 %v715_v50  ;;  %v708_v57 = vld [vmem:[#allocation5 + $0xec8] sm:$0xff]  ;;  %1003 = vmatprep.subr.mxu0 %v584_v51  ;;  %v579_v58 = vld [vmem:[#allocation5 + $0xac0] sm:$0xff]  ;;  %v289_v40 = vld [vmem:[#allocation5 + $0x1b0] sm:$0xff] }
 0x12a   :  { %1074 = vmatprep.subr.mxu1 %v712_v53  ;;  %v707_v59 = vld [vmem:[#allocation5 + $0xec0] sm:$0xff]  ;;  %1004 = vmatpush2.msra.mxu0 %v583_v54  ;;  %v576_v60 = vld [vmem:[#allocation5 + $0xaa8] sm:$0xff]  ;;  %v417_v42 = vld [vmem:[#allocation5 + $0x5b0] sm:$0xff] }
 0x12b   :  { %1075 = vmatpush2.msra.mxu1 %v711_v55  ;;  %v704_v61 = vld [vmem:[#allocation5 + $0xea8] sm:$0xff]  ;;  %1005 = vmatprep.subr.mxu0 %v580_v56  ;;  %v575_v63 = vld [vmem:[#allocation5 + $0xaa0] sm:$0xff]  ;;  %v286_v43 = vld [vmem:[#allocation5 + $0x198] sm:$0xff] }
 0x12c   :  { %1076 = vmatprep.subr.mxu1 %v708_v57  ;;  %v703_v0 = vld [vmem:[#allocation5 + $0xea0] sm:$0xff]  ;;  %1006 = vmatpush2.msra.mxu0 %v579_v58  ;;  %v572_v2 = vld [vmem:[#allocation5 + $0xa88] sm:$0xff]  ;;  %v414_v44 = vld [vmem:[#allocation5 + $0x598] sm:$0xff] }
 0x12d   :  { %v234_v1 = vld [vmem:[%s3509_s24 + $0x8] sm:$0xff]  ;;  %1077 = vmatpush2.msra.mxu1 %v707_v59  ;;  %1007 = vmatprep.subr.mxu0 %v576_v60  ;;  %v285_v45 = vld [vmem:[#allocation5 + $0x190] sm:$0xff]  ;;  %v282_v47 = vld [vmem:[#allocation5 + $0x178] sm:$0xff] }
 0x12e   :  { %v700_v4 = vld [vmem:[#allocation5 + $0xe88] sm:$0xff]  ;;  %1078 = vmatprep.subr.mxu1 %v704_v61  ;;  %v571_v5 = vld [vmem:[#allocation5 + $0xa80] sm:$0xff]  ;;  %1008 = vmatpush2.msra.mxu0 %v575_v63  ;;  %v788_v10 = vcombine.high %v234_v1, %v234_v1  ;;  %v3275_v16 = vrot.slane %v234_v1, %v3251_v52  ;;  %v413_v46 = vld [vmem:[#allocation5 + $0x590] sm:$0xff] }
 0x12f   :  { %v699_v6 = vld [vmem:[#allocation5 + $0xe80] sm:$0xff]  ;;  %1079 = vmatpush2.msra.mxu1 %v703_v0  ;;  %v568_v7 = vld [vmem:[#allocation5 + $0xa68] sm:$0xff]  ;;  %1009 = vmatprep.subr.mxu0 %v572_v2  ;;  %v410_v48 = vld [vmem:[#allocation5 + $0x578] sm:$0xff] }
 0x130   :  { %v696_v9 = vld [vmem:[#allocation5 + $0xe68] sm:$0xff]  ;;  %1080 = vmatprep.subr.mxu1 %v700_v4  ;;  %v567_v12 = vld [vmem:[#allocation5 + $0xa60] sm:$0xff]  ;;  %1010 = vmatpush2.msra.mxu0 %v571_v5  ;;  %v3278_v21 = vrot.slane %v788_v10, %v3251_v52  ;;  %v3282_v26 = vcombine.high %v3275_v16, %v3275_v16  ;;  %v281_v49 = vld [vmem:[#allocation5 + $0x170] sm:$0xff] }
 0x131   :  { %v695_v13 = vld [vmem:[#allocation5 + $0xe60] sm:$0xff]  ;;  %1081 = vmatpush2.msra.mxu1 %v699_v6  ;;  %v564_v14 = vld [vmem:[#allocation5 + $0xa48] sm:$0xff]  ;;  %1011 = vmatprep.subr.mxu0 %v568_v7  ;;  %v409_v50 = vld [vmem:[#allocation5 + $0x570] sm:$0xff] }
 0x132   :  { %v692_v15 = vld [vmem:[#allocation5 + $0xe48] sm:$0xff]  ;;  %1082 = vmatprep.subr.mxu1 %v696_v9  ;;  %v563_v17 = vld [vmem:[#allocation5 + $0xa40] sm:$0xff]  ;;  %1012 = vmatpush2.msra.mxu0 %v567_v12  ;;  %v3286_v29 = vcombine.high %v3278_v21, %v3278_v21  ;;  %v278_v51 = vld [vmem:[#allocation5 + $0x158] sm:$0xff] }
 0x133   :  { %v691_v18 = vld [vmem:[#allocation5 + $0xe40] sm:$0xff]  ;;  %1083 = vmatpush2.msra.mxu1 %v695_v13  ;;  %v560_v19 = vld [vmem:[#allocation5 + $0xa28] sm:$0xff]  ;;  %1013 = vmatprep.subr.mxu0 %v564_v14  ;;  %v406_v53 = vld [vmem:[#allocation5 + $0x558] sm:$0xff] }
 0x134   :  { %v688_v20 = vld [vmem:[#allocation5 + $0xe28] sm:$0xff]  ;;  %1084 = vmatprep.subr.mxu1 %v692_v15  ;;  %v559_v22 = vld [vmem:[#allocation5 + $0xa20] sm:$0xff]  ;;  %1014 = vmatpush2.msra.mxu0 %v563_v17  ;;  %v277_v54 = vld [vmem:[#allocation5 + $0x150] sm:$0xff] }
 0x135   :  { %v687_v23 = vld [vmem:[#allocation5 + $0xe20] sm:$0xff]  ;;  %1085 = vmatpush2.msra.mxu1 %v691_v18  ;;  %v556_v24 = vld [vmem:[#allocation5 + $0xa08] sm:$0xff]  ;;  %1015 = vmatprep.subr.mxu0 %v560_v19  ;;  %v405_v55 = vld [vmem:[#allocation5 + $0x550] sm:$0xff] }
 0x136   :  { %v684_v25 = vld [vmem:[#allocation5 + $0xe08] sm:$0xff]  ;;  %1086 = vmatprep.subr.mxu1 %v688_v20  ;;  %v555_v27 = vld [vmem:[#allocation5 + $0xa00] sm:$0xff]  ;;  %1016 = vmatpush2.msra.mxu0 %v559_v22  ;;  %v274_v56 = vld [vmem:[#allocation5 + $0x138] sm:$0xff] }
 0x137   :  { %1087 = vmatpush2.msra.mxu1 %v687_v23  ;;  %v683_v28 = vld [vmem:[#allocation5 + $0xe00] sm:$0xff]  ;;  %1017 = vmatprep.subr.mxu0 %v556_v24  ;;  %v402_v57 = vld [vmem:[#allocation5 + $0x538] sm:$0xff]  ;;  %v273_v58 = vld [vmem:[#allocation5 + $0x130] sm:$0xff] }
 0x138   :  { %1088 = vmatprep.subr.mxu1 %v684_v25  ;;  %1018 = vmatpush2.msra.mxu0 %v555_v27  ;;  %v401_v59 = vld [vmem:[#allocation5 + $0x530] sm:$0xff]  ;;  %v270_v60 = vld [vmem:[#allocation5 + $0x118] sm:$0xff] }
 0x139   :  { %1019 = vmatprep.mubr.f32.mxu0 %v3282_v26  ;;  %1089 = vmatpush2.msra.mxu1 %v683_v28  ;;  %v398_v61 = vld [vmem:[#allocation5 + $0x518] sm:$0xff]  ;;  %v269_v63 = vld [vmem:[#allocation5 + $0x110] sm:$0xff] }
 0x13a   :  { %1020 = vmatmul.mubr.f32.vlgmr.msra.gmra.mxu0 %v3275_v16  ;;  %1090 = vmatprep.mubr.f32.mxu1 %v3286_v29  ;;  %v397_v0 = vld [vmem:[#allocation5 + $0x510] sm:$0xff]  ;;  %v266_v1 = vld [vmem:[#allocation5 + $0xf8] sm:$0xff] }
 0x13b   :  { %1097 = vmatprep.subr.mxu0 %v298_v30  ;;  %1168 = vmatprep.subr.mxu1 %v426_v31  ;;  %v394_v2 = vld [vmem:[#allocation5 + $0x4f8] sm:$0xff]  ;;  %v265_v4 = vld [vmem:[#allocation5 + $0xf0] sm:$0xff] }
 0x13c   :  { %1091 = vmatmul.mubr.f32.vlgmr.msra.gmra.mxu1 %v3278_v21  ;;  %1098 = vmatpush1.msra.mxu0 %v297_v32  ;;  %v393_v5 = vld [vmem:[#allocation5 + $0x4f0] sm:$0xff]  ;;  %v262_v6 = vld [vmem:[#allocation5 + $0xd8] sm:$0xff] }
 0x13d   :  { %1169 = vmatpush1.msra.mxu1 %v425_v33  ;;  %1099 = vmatprep.subr.mxu0 %v294_v34  ;;  %v390_v7 = vld [vmem:[#allocation5 + $0x4d8] sm:$0xff]  ;;  %v261_v9 = vld [vmem:[#allocation5 + $0xd0] sm:$0xff] }
 0x13e   :  { %1170 = vmatprep.subr.mxu1 %v422_v35  ;;  %1100 = vmatpush1.msra.mxu0 %v293_v36  ;;  %v389_v10 = vld [vmem:[#allocation5 + $0x4d0] sm:$0xff]  ;;  %v258_v12 = vld [vmem:[#allocation5 + $0xb8] sm:$0xff] }
 0x13f   :  { %1171 = vmatpush1.msra.mxu1 %v421_v37  ;;  %1101 = vmatprep.subr.mxu0 %v290_v38  ;;  %v386_v13 = vld [vmem:[#allocation5 + $0x4b8] sm:$0xff]  ;;  %v257_v14 = vld [vmem:[#allocation5 + $0xb0] sm:$0xff] }
 0x140   :  { %1172 = vmatprep.subr.mxu1 %v418_v39  ;;  %1102 = vmatpush1.msra.mxu0 %v289_v40  ;;  %v385_v15 = vld [vmem:[#allocation5 + $0x4b0] sm:$0xff]  ;;  %v254_v17 = vld [vmem:[#allocation5 + $0x98] sm:$0xff] }
 0x141   :  { %1173 = vmatpush1.msra.mxu1 %v417_v42  ;;  %1103 = vmatprep.subr.mxu0 %v286_v43  ;;  %v382_v18 = vld [vmem:[#allocation5 + $0x498] sm:$0xff]  ;;  %v253_v19 = vld [vmem:[#allocation5 + $0x90] sm:$0xff] }
 0x142   :  { %1174 = vmatprep.subr.mxu1 %v414_v44  ;;  %1104 = vmatpush1.msra.mxu0 %v285_v45  ;;  %v381_v20 = vld [vmem:[#allocation5 + $0x490] sm:$0xff]  ;;  %v250_v22 = vld [vmem:[#allocation5 + $0x78] sm:$0xff] }
 0x143   :  { %1175 = vmatpush1.msra.mxu1 %v413_v46  ;;  %1105 = vmatprep.subr.mxu0 %v282_v47  ;;  %v378_v23 = vld [vmem:[#allocation5 + $0x478] sm:$0xff]  ;;  %v249_v24 = vld [vmem:[#allocation5 + $0x70] sm:$0xff] }
 0x144   :  { %1176 = vmatprep.subr.mxu1 %v410_v48  ;;  %1106 = vmatpush1.msra.mxu0 %v281_v49  ;;  %v377_v25 = vld [vmem:[#allocation5 + $0x470] sm:$0xff]  ;;  %v246_v27 = vld [vmem:[#allocation5 + $0x58] sm:$0xff] }
 0x145   :  { %1177 = vmatpush1.msra.mxu1 %v409_v50  ;;  %1107 = vmatprep.subr.mxu0 %v278_v51  ;;  %v374_v28 = vld [vmem:[#allocation5 + $0x458] sm:$0xff]  ;;  %v245_v30 = vld [vmem:[#allocation5 + $0x50] sm:$0xff] }
 0x146   :  { %1178 = vmatprep.subr.mxu1 %v406_v53  ;;  %1108 = vmatpush1.msra.mxu0 %v277_v54  ;;  %v373_v31 = vld [vmem:[#allocation5 + $0x450] sm:$0xff]  ;;  %v242_v32 = vld [vmem:[#allocation5 + $0x38] sm:$0xff] }
 0x147   :  { %1179 = vmatpush1.msra.mxu1 %v405_v55  ;;  %1109 = vmatprep.subr.mxu0 %v274_v56  ;;  %v370_v33 = vld [vmem:[#allocation5 + $0x438] sm:$0xff]  ;;  %v241_v34 = vld [vmem:[#allocation5 + $0x30] sm:$0xff] }
 0x148   :  { %1180 = vmatprep.subr.mxu1 %v402_v57  ;;  %1110 = vmatpush1.msra.mxu0 %v273_v58  ;;  %v369_v35 = vld [vmem:[#allocation5 + $0x430] sm:$0xff]  ;;  %v238_v36 = vld [vmem:[#allocation5 + $0x18] sm:$0xff] }
 0x149   :  { %1181 = vmatpush1.msra.mxu1 %v401_v59  ;;  %1111 = vmatprep.subr.mxu0 %v270_v60  ;;  %v366_v37 = vld [vmem:[#allocation5 + $0x418] sm:$0xff]  ;;  %v237_v38 = vld [vmem:[#allocation5 + $0x10] sm:$0xff] }
 0x14a   :  { %1182 = vmatprep.subr.mxu1 %v398_v61  ;;  %1112 = vmatpush1.msra.mxu0 %v269_v63  ;;  %v365_v39 = vld [vmem:[#allocation5 + $0x410] sm:$0xff]  ;;  %v362_v40 = vld [vmem:[#allocation5 + $0x3f8] sm:$0xff] }
 0x14b   :  { %1183 = vmatpush1.msra.mxu1 %v397_v0  ;;  %1113 = vmatprep.subr.mxu0 %v266_v1  ;;  %v490_v42 = vld [vmem:[#allocation5 + $0x7f8] sm:$0xff]  ;;  %v361_v43 = vld [vmem:[#allocation5 + $0x3f0] sm:$0xff] }
 0x14c   :  { %1184 = vmatprep.subr.mxu1 %v394_v2  ;;  %1114 = vmatpush1.msra.mxu0 %v265_v4  ;;  %v489_v44 = vld [vmem:[#allocation5 + $0x7f0] sm:$0xff]  ;;  %v358_v45 = vld [vmem:[#allocation5 + $0x3d8] sm:$0xff] }
 0x14d   :  { %1185 = vmatpush1.msra.mxu1 %v393_v5  ;;  %1115 = vmatprep.subr.mxu0 %v262_v6  ;;  %v486_v46 = vld [vmem:[#allocation5 + $0x7d8] sm:$0xff]  ;;  %v357_v47 = vld [vmem:[#allocation5 + $0x3d0] sm:$0xff] }
 0x14e   :  { %1186 = vmatprep.subr.mxu1 %v390_v7  ;;  %1116 = vmatpush1.msra.mxu0 %v261_v9  ;;  %v485_v48 = vld [vmem:[#allocation5 + $0x7d0] sm:$0xff]  ;;  %v354_v49 = vld [vmem:[#allocation5 + $0x3b8] sm:$0xff] }
 0x14f   :  { %1187 = vmatpush1.msra.mxu1 %v389_v10  ;;  %1117 = vmatprep.subr.mxu0 %v258_v12  ;;  %v482_v50 = vld [vmem:[#allocation5 + $0x7b8] sm:$0xff]  ;;  %v353_v51 = vld [vmem:[#allocation5 + $0x3b0] sm:$0xff] }
 0x150   :  { %1188 = vmatprep.subr.mxu1 %v386_v13  ;;  %1118 = vmatpush1.msra.mxu0 %v257_v14  ;;  %v481_v53 = vld [vmem:[#allocation5 + $0x7b0] sm:$0xff]  ;;  %v350_v54 = vld [vmem:[#allocation5 + $0x398] sm:$0xff] }
 0x151   :  { %1189 = vmatpush1.msra.mxu1 %v385_v15  ;;  %1119 = vmatprep.subr.mxu0 %v254_v17  ;;  %v478_v55 = vld [vmem:[#allocation5 + $0x798] sm:$0xff]  ;;  %v349_v56 = vld [vmem:[#allocation5 + $0x390] sm:$0xff] }
 0x152   :  { %1190 = vmatprep.subr.mxu1 %v382_v18  ;;  %1120 = vmatpush1.msra.mxu0 %v253_v19  ;;  %v477_v57 = vld [vmem:[#allocation5 + $0x790] sm:$0xff]  ;;  %v346_v58 = vld [vmem:[#allocation5 + $0x378] sm:$0xff] }
 0x153   :  { %1191 = vmatpush1.msra.mxu1 %v381_v20  ;;  %1121 = vmatprep.subr.mxu0 %v250_v22  ;;  %v474_v59 = vld [vmem:[#allocation5 + $0x778] sm:$0xff]  ;;  %v345_v60 = vld [vmem:[#allocation5 + $0x370] sm:$0xff] }
 0x154   :  { %1192 = vmatprep.subr.mxu1 %v378_v23  ;;  %1122 = vmatpush1.msra.mxu0 %v249_v24  ;;  %v473_v61 = vld [vmem:[#allocation5 + $0x770] sm:$0xff]  ;;  %v342_v63 = vld [vmem:[#allocation5 + $0x358] sm:$0xff] }
 0x155   :  { %1193 = vmatpush1.msra.mxu1 %v377_v25  ;;  %1123 = vmatprep.subr.mxu0 %v246_v27  ;;  %v470_v0 = vld [vmem:[#allocation5 + $0x758] sm:$0xff]  ;;  %v341_v1 = vld [vmem:[#allocation5 + $0x350] sm:$0xff] }
 0x156   :  { %1194 = vmatprep.subr.mxu1 %v374_v28  ;;  %1124 = vmatpush1.msra.mxu0 %v245_v30  ;;  %v469_v2 = vld [vmem:[#allocation5 + $0x750] sm:$0xff]  ;;  %v338_v4 = vld [vmem:[#allocation5 + $0x338] sm:$0xff] }
 0x157   :  { %1195 = vmatpush1.msra.mxu1 %v373_v31  ;;  %1125 = vmatprep.subr.mxu0 %v242_v32  ;;  %v466_v5 = vld [vmem:[#allocation5 + $0x738] sm:$0xff]  ;;  %v337_v6 = vld [vmem:[#allocation5 + $0x330] sm:$0xff] }
 0x158   :  { %1196 = vmatprep.subr.mxu1 %v370_v33  ;;  %1126 = vmatpush1.msra.mxu0 %v241_v34  ;;  %v465_v7 = vld [vmem:[#allocation5 + $0x730] sm:$0xff]  ;;  %v334_v9 = vld [vmem:[#allocation5 + $0x318] sm:$0xff] }
 0x159   :  { %1197 = vmatpush1.msra.mxu1 %v369_v35  ;;  %1127 = vmatprep.subr.mxu0 %v238_v36  ;;  %v462_v10 = vld [vmem:[#allocation5 + $0x718] sm:$0xff]  ;;  %v333_v12 = vld [vmem:[#allocation5 + $0x310] sm:$0xff] }
 0x15a   :  { %1198 = vmatprep.subr.mxu1 %v366_v37  ;;  %1128 = vmatpush1.msra.mxu0 %v237_v38  ;;  %v461_v13 = vld [vmem:[#allocation5 + $0x710] sm:$0xff]  ;;  %v330_v14 = vld [vmem:[#allocation5 + $0x2f8] sm:$0xff] }
 0x15b   :  { %1199 = vmatpush1.msra.mxu1 %v365_v39  ;;  %1129 = vmatprep.subr.mxu0 %v362_v40  ;;  %v458_v15 = vld [vmem:[#allocation5 + $0x6f8] sm:$0xff]  ;;  %v329_v17 = vld [vmem:[#allocation5 + $0x2f0] sm:$0xff] }
 0x15c   :  { %1200 = vmatprep.subr.mxu1 %v490_v42  ;;  %1130 = vmatpush2.msra.mxu0 %v361_v43  ;;  %v457_v18 = vld [vmem:[#allocation5 + $0x6f0] sm:$0xff]  ;;  %v326_v19 = vld [vmem:[#allocation5 + $0x2d8] sm:$0xff] }
 0x15d   :  { %1201 = vmatpush2.msra.mxu1 %v489_v44  ;;  %1131 = vmatprep.subr.mxu0 %v358_v45  ;;  %v454_v20 = vld [vmem:[#allocation5 + $0x6d8] sm:$0xff]  ;;  %v325_v22 = vld [vmem:[#allocation5 + $0x2d0] sm:$0xff] }
 0x15e   :  { %1202 = vmatprep.subr.mxu1 %v486_v46  ;;  %1132 = vmatpush2.msra.mxu0 %v357_v47  ;;  %v453_v23 = vld [vmem:[#allocation5 + $0x6d0] sm:$0xff]  ;;  %v322_v24 = vld [vmem:[#allocation5 + $0x2b8] sm:$0xff] }
 0x15f   :  { %1203 = vmatpush2.msra.mxu1 %v485_v48  ;;  %1133 = vmatprep.subr.mxu0 %v354_v49  ;;  %v450_v25 = vld [vmem:[#allocation5 + $0x6b8] sm:$0xff]  ;;  %v321_v27 = vld [vmem:[#allocation5 + $0x2b0] sm:$0xff] }
 0x160   :  { %1204 = vmatprep.subr.mxu1 %v482_v50  ;;  %1134 = vmatpush2.msra.mxu0 %v353_v51  ;;  %v449_v28 = vld [vmem:[#allocation5 + $0x6b0] sm:$0xff]  ;;  %v318_v30 = vld [vmem:[#allocation5 + $0x298] sm:$0xff] }
 0x161   :  { %1205 = vmatpush2.msra.mxu1 %v481_v53  ;;  %1135 = vmatprep.subr.mxu0 %v350_v54  ;;  %v446_v31 = vld [vmem:[#allocation5 + $0x698] sm:$0xff]  ;;  %v317_v32 = vld [vmem:[#allocation5 + $0x290] sm:$0xff] }
 0x162   :  { %1206 = vmatprep.subr.mxu1 %v478_v55  ;;  %1136 = vmatpush2.msra.mxu0 %v349_v56  ;;  %v445_v33 = vld [vmem:[#allocation5 + $0x690] sm:$0xff]  ;;  %v314_v34 = vld [vmem:[#allocation5 + $0x278] sm:$0xff] }
 0x163   :  { %1207 = vmatpush2.msra.mxu1 %v477_v57  ;;  %1137 = vmatprep.subr.mxu0 %v346_v58  ;;  %v442_v35 = vld [vmem:[#allocation5 + $0x678] sm:$0xff]  ;;  %v313_v36 = vld [vmem:[#allocation5 + $0x270] sm:$0xff] }
 0x164   :  { %1208 = vmatprep.subr.mxu1 %v474_v59  ;;  %1138 = vmatpush2.msra.mxu0 %v345_v60  ;;  %v441_v37 = vld [vmem:[#allocation5 + $0x670] sm:$0xff]  ;;  %v310_v38 = vld [vmem:[#allocation5 + $0x258] sm:$0xff] }
 0x165   :  { %1209 = vmatpush2.msra.mxu1 %v473_v61  ;;  %1139 = vmatprep.subr.mxu0 %v342_v63  ;;  %v438_v39 = vld [vmem:[#allocation5 + $0x658] sm:$0xff]  ;;  %v309_v40 = vld [vmem:[#allocation5 + $0x250] sm:$0xff] }
 0x166   :  { %1210 = vmatprep.subr.mxu1 %v470_v0  ;;  %1140 = vmatpush2.msra.mxu0 %v341_v1  ;;  %v437_v42 = vld [vmem:[#allocation5 + $0x650] sm:$0xff]  ;;  %v306_v43 = vld [vmem:[#allocation5 + $0x238] sm:$0xff] }
 0x167   :  { %1211 = vmatpush2.msra.mxu1 %v469_v2  ;;  %1141 = vmatprep.subr.mxu0 %v338_v4  ;;  %v434_v44 = vld [vmem:[#allocation5 + $0x638] sm:$0xff]  ;;  %v305_v45 = vld [vmem:[#allocation5 + $0x230] sm:$0xff] }
 0x168   :  { %1212 = vmatprep.subr.mxu1 %v466_v5  ;;  %1142 = vmatpush2.msra.mxu0 %v337_v6  ;;  %v433_v46 = vld [vmem:[#allocation5 + $0x630] sm:$0xff]  ;;  %v302_v47 = vld [vmem:[#allocation5 + $0x218] sm:$0xff] }
 0x169   :  { %1213 = vmatpush2.msra.mxu1 %v465_v7  ;;  %1143 = vmatprep.subr.mxu0 %v334_v9  ;;  %v430_v48 = vld [vmem:[#allocation5 + $0x618] sm:$0xff]  ;;  %v301_v49 = vld [vmem:[#allocation5 + $0x210] sm:$0xff] }
 0x16a   :  { %1214 = vmatprep.subr.mxu1 %v462_v10  ;;  %1144 = vmatpush2.msra.mxu0 %v333_v12  ;;  %v429_v50 = vld [vmem:[#allocation5 + $0x610] sm:$0xff]  ;;  %v554_v51 = vld [vmem:[#allocation5 + $0x9f8] sm:$0xff] }
 0x16b   :  { %1215 = vmatpush2.msra.mxu1 %v461_v13  ;;  %1145 = vmatprep.subr.mxu0 %v330_v14  ;;  %v682_v53 = vld [vmem:[#allocation5 + $0xdf8] sm:$0xff]  ;;  %v553_v54 = vld [vmem:[#allocation5 + $0x9f0] sm:$0xff] }
 0x16c   :  { %1216 = vmatprep.subr.mxu1 %v458_v15  ;;  %1146 = vmatpush2.msra.mxu0 %v329_v17  ;;  %v681_v55 = vld [vmem:[#allocation5 + $0xdf0] sm:$0xff]  ;;  %v550_v56 = vld [vmem:[#allocation5 + $0x9d8] sm:$0xff] }
 0x16d   :  { %1217 = vmatpush2.msra.mxu1 %v457_v18  ;;  %1147 = vmatprep.subr.mxu0 %v326_v19  ;;  %v678_v57 = vld [vmem:[#allocation5 + $0xdd8] sm:$0xff]  ;;  %v549_v58 = vld [vmem:[#allocation5 + $0x9d0] sm:$0xff] }
 0x16e   :  { %1218 = vmatprep.subr.mxu1 %v454_v20  ;;  %1148 = vmatpush2.msra.mxu0 %v325_v22  ;;  %v677_v59 = vld [vmem:[#allocation5 + $0xdd0] sm:$0xff]  ;;  %v546_v60 = vld [vmem:[#allocation5 + $0x9b8] sm:$0xff] }
 0x16f   :  { %1219 = vmatpush2.msra.mxu1 %v453_v23  ;;  %1149 = vmatprep.subr.mxu0 %v322_v24  ;;  %v545_v61 = vld [vmem:[#allocation5 + $0x9b0] sm:$0xff]  ;;  %v542_v63 = vld [vmem:[#allocation5 + $0x998] sm:$0xff] }
 0x170   :  { %1220 = vmatprep.subr.mxu1 %v450_v25  ;;  %1150 = vmatpush2.msra.mxu0 %v321_v27  ;;  %v541_v0 = vld [vmem:[#allocation5 + $0x990] sm:$0xff]  ;;  %v666_v2 = vld [vmem:[#allocation5 + $0xd78] sm:$0xff] }
 0x171   :  { %1221 = vmatpush2.msra.mxu1 %v449_v28  ;;  %1151 = vmatprep.subr.mxu0 %v318_v30  ;;  %v669_v1 = vld [vmem:[#allocation5 + $0xd90] sm:$0xff]  ;;  %v534_v6 = vld [vmem:[#allocation5 + $0x958] sm:$0xff] }
 0x172   :  { %1222 = vmatprep.subr.mxu1 %v446_v31  ;;  %1152 = vmatpush2.msra.mxu0 %v317_v32  ;;  %v537_v4 = vld [vmem:[#allocation5 + $0x970] sm:$0xff]  ;;  %v662_v7 = vld [vmem:[#allocation5 + $0xd58] sm:$0xff] }
 0x173   :  { %1223 = vmatpush2.msra.mxu1 %v445_v33  ;;  %1153 = vmatprep.subr.mxu0 %v314_v34  ;;  %v665_v5 = vld [vmem:[#allocation5 + $0xd70] sm:$0xff]  ;;  %v530_v12 = vld [vmem:[#allocation5 + $0x938] sm:$0xff] }
 0x174   :  { %1224 = vmatprep.subr.mxu1 %v442_v35  ;;  %1154 = vmatpush2.msra.mxu0 %v313_v36  ;;  %v533_v9 = vld [vmem:[#allocation5 + $0x950] sm:$0xff]  ;;  %v658_v13 = vld [vmem:[#allocation5 + $0xd38] sm:$0xff] }
 0x175   :  { %1225 = vmatpush2.msra.mxu1 %v441_v37  ;;  %1155 = vmatprep.subr.mxu0 %v310_v38  ;;  %v661_v10 = vld [vmem:[#allocation5 + $0xd50] sm:$0xff]  ;;  %v526_v17 = vld [vmem:[#allocation5 + $0x918] sm:$0xff] }
 0x176   :  { %1226 = vmatprep.subr.mxu1 %v438_v39  ;;  %1156 = vmatpush2.msra.mxu0 %v309_v40  ;;  %v529_v14 = vld [vmem:[#allocation5 + $0x930] sm:$0xff]  ;;  %v654_v18 = vld [vmem:[#allocation5 + $0xd18] sm:$0xff] }
 0x177   :  { %1227 = vmatpush2.msra.mxu1 %v437_v42  ;;  %1157 = vmatprep.subr.mxu0 %v306_v43  ;;  %v657_v15 = vld [vmem:[#allocation5 + $0xd30] sm:$0xff]  ;;  %v522_v22 = vld [vmem:[#allocation5 + $0x8f8] sm:$0xff] }
 0x178   :  { %1228 = vmatprep.subr.mxu1 %v434_v44  ;;  %1158 = vmatpush2.msra.mxu0 %v305_v45  ;;  %v525_v19 = vld [vmem:[#allocation5 + $0x910] sm:$0xff]  ;;  %v650_v23 = vld [vmem:[#allocation5 + $0xcf8] sm:$0xff] }
 0x179   :  { %1229 = vmatpush2.msra.mxu1 %v433_v46  ;;  %1159 = vmatprep.subr.mxu0 %v302_v47  ;;  %v653_v20 = vld [vmem:[#allocation5 + $0xd10] sm:$0xff]  ;;  %v518_v27 = vld [vmem:[#allocation5 + $0x8d8] sm:$0xff] }
 0x17a   :  { %1230 = vmatprep.subr.mxu1 %v430_v48  ;;  %1160 = vmatpush2.msra.mxu0 %v301_v49  ;;  %v521_v24 = vld [vmem:[#allocation5 + $0x8f0] sm:$0xff]  ;;  %v646_v28 = vld [vmem:[#allocation5 + $0xcd8] sm:$0xff] }
 0x17b   :  { %1161 = vmatprep.mubr.f32.mxu0 %v3261_v8  ;;  %1231 = vmatpush2.msra.mxu1 %v429_v50  ;;  %v674_v8 = vld [vmem:[#allocation5 + $0xdb8] sm:$0xff]  ;;  %v649_v25 = vld [vmem:[#allocation5 + $0xcf0] sm:$0xff] }
 0x17c   :  { %1162 = vmatmul.mubr.f32.vlgmr.msra.gmra.mxu0 %v3254_v62  ;;  %1232 = vmatprep.mubr.f32.mxu1 %v3265_v11  ;;  %v673_v62 = vld [vmem:[#allocation5 + $0xdb0] sm:$0xff]  ;;  %v670_v11 = vld [vmem:[#allocation5 + $0xd98] sm:$0xff] }
 0x17d   :  { %1239 = vmatprep.subr.mxu0 %v554_v51  ;;  %1310 = vmatprep.subr.mxu1 %v682_v53  ;;  %v517_v30 = vld [vmem:[#allocation5 + $0x8d0] sm:$0xff]  ;;  %v514_v32 = vld [vmem:[#allocation5 + $0x8b8] sm:$0xff] }
 0x17e   :  { %1233 = vmatmul.mubr.f32.vlgmr.msra.gmra.mxu1 %v3257_v3  ;;  %1240 = vmatpush1.msra.mxu0 %v553_v54  ;;  %v538_v3 = vld [vmem:[#allocation5 + $0x978] sm:$0xff]  ;;  %v645_v31 = vld [vmem:[#allocation5 + $0xcd0] sm:$0xff] }
 0x17f   :  { %1311 = vmatpush1.msra.mxu1 %v681_v55  ;;  %1241 = vmatprep.subr.mxu0 %v550_v56  ;;  %v642_v33 = vld [vmem:[#allocation5 + $0xcb8] sm:$0xff]  ;;  %v513_v34 = vld [vmem:[#allocation5 + $0x8b0] sm:$0xff] }
 0x180   :  { %1312 = vmatprep.subr.mxu1 %v678_v57  ;;  %1242 = vmatpush1.msra.mxu0 %v549_v58  ;;  %v641_v35 = vld [vmem:[#allocation5 + $0xcb0] sm:$0xff]  ;;  %v510_v36 = vld [vmem:[#allocation5 + $0x898] sm:$0xff] }
 0x181   :  { %1313 = vmatpush1.msra.mxu1 %v677_v59  ;;  %1243 = vmatprep.subr.mxu0 %v546_v60  ;;  %v638_v37 = vld [vmem:[#allocation5 + $0xc98] sm:$0xff]  ;;  %v509_v38 = vld [vmem:[#allocation5 + $0x890] sm:$0xff] }
 0x182   :  { %1314 = vmatprep.subr.mxu1 %v674_v8  ;;  %1244 = vmatpush1.msra.mxu0 %v545_v61  ;;  %v637_v39 = vld [vmem:[#allocation5 + $0xc90] sm:$0xff]  ;;  %v506_v40 = vld [vmem:[#allocation5 + $0x878] sm:$0xff] }
 0x183   :  { %1315 = vmatpush1.msra.mxu1 %v673_v62  ;;  %1245 = vmatprep.subr.mxu0 %v542_v63  ;;  %v634_v42 = vld [vmem:[#allocation5 + $0xc78] sm:$0xff]  ;;  %v505_v43 = vld [vmem:[#allocation5 + $0x870] sm:$0xff] }
 0x184   :  { %1316 = vmatprep.subr.mxu1 %v670_v11  ;;  %1246 = vmatpush1.msra.mxu0 %v541_v0  ;;  %v633_v44 = vld [vmem:[#allocation5 + $0xc70] sm:$0xff]  ;;  %v502_v45 = vld [vmem:[#allocation5 + $0x858] sm:$0xff] }
 0x185   :  { %1317 = vmatpush1.msra.mxu1 %v669_v1  ;;  %1247 = vmatprep.subr.mxu0 %v538_v3  ;;  %v630_v46 = vld [vmem:[#allocation5 + $0xc58] sm:$0xff]  ;;  %v501_v47 = vld [vmem:[#allocation5 + $0x850] sm:$0xff] }
 0x186   :  { %1318 = vmatprep.subr.mxu1 %v666_v2  ;;  %1248 = vmatpush1.msra.mxu0 %v537_v4  ;;  %v629_v48 = vld [vmem:[#allocation5 + $0xc50] sm:$0xff]  ;;  %v498_v49 = vld [vmem:[#allocation5 + $0x838] sm:$0xff] }
 0x187   :  { %1319 = vmatpush1.msra.mxu1 %v665_v5  ;;  %1249 = vmatprep.subr.mxu0 %v534_v6  ;;  %v626_v50 = vld [vmem:[#allocation5 + $0xc38] sm:$0xff]  ;;  %v497_v51 = vld [vmem:[#allocation5 + $0x830] sm:$0xff] }
 0x188   :  { %1320 = vmatprep.subr.mxu1 %v662_v7  ;;  %1250 = vmatpush1.msra.mxu0 %v533_v9  ;;  %v625_v53 = vld [vmem:[#allocation5 + $0xc30] sm:$0xff]  ;;  %v494_v54 = vld [vmem:[#allocation5 + $0x818] sm:$0xff] }
 0x189   :  { %1321 = vmatpush1.msra.mxu1 %v661_v10  ;;  %1251 = vmatprep.subr.mxu0 %v530_v12  ;;  %v622_v55 = vld [vmem:[#allocation5 + $0xc18] sm:$0xff]  ;;  %v493_v56 = vld [vmem:[#allocation5 + $0x810] sm:$0xff] }
 0x18a   :  { %1322 = vmatprep.subr.mxu1 %v658_v13  ;;  %1252 = vmatpush1.msra.mxu0 %v529_v14  ;;  %v621_v57 = vld [vmem:[#allocation5 + $0xc10] sm:$0xff]  ;;  %v618_v58 = vld [vmem:[#allocation5 + $0xbf8] sm:$0xff] }
 0x18b   :  { %1323 = vmatpush1.msra.mxu1 %v657_v15  ;;  %1253 = vmatprep.subr.mxu0 %v526_v17  ;;  %v746_v59 = vld [vmem:[#allocation5 + $0xff8] sm:$0xff]  ;;  %v617_v60 = vld [vmem:[#allocation5 + $0xbf0] sm:$0xff] }
 0x18c   :  { %1324 = vmatprep.subr.mxu1 %v654_v18  ;;  %1254 = vmatpush1.msra.mxu0 %v525_v19  ;;  %v745_v8 = vld [vmem:[#allocation5 + $0xff0] sm:$0xff]  ;;  %v614_v61 = vld [vmem:[#allocation5 + $0xbd8] sm:$0xff] }
 0x18d   :  { %1325 = vmatpush1.msra.mxu1 %v653_v20  ;;  %1255 = vmatprep.subr.mxu0 %v522_v22  ;;  %v742_v62 = vld [vmem:[#allocation5 + $0xfd8] sm:$0xff]  ;;  %v613_v63 = vld [vmem:[#allocation5 + $0xbd0] sm:$0xff] }
 0x18e   :  { %1326 = vmatprep.subr.mxu1 %v650_v23  ;;  %1256 = vmatpush1.msra.mxu0 %v521_v24  ;;  %v741_v11 = vld [vmem:[#allocation5 + $0xfd0] sm:$0xff]  ;;  %v610_v0 = vld [vmem:[#allocation5 + $0xbb8] sm:$0xff] }
 0x18f   :  { %1327 = vmatpush1.msra.mxu1 %v649_v25  ;;  %1257 = vmatprep.subr.mxu0 %v518_v27  ;;  %v738_v1 = vld [vmem:[#allocation5 + $0xfb8] sm:$0xff]  ;;  %v609_v3 = vld [vmem:[#allocation5 + $0xbb0] sm:$0xff] }
 0x190   :  { %1328 = vmatprep.subr.mxu1 %v646_v28  ;;  %1258 = vmatpush1.msra.mxu0 %v517_v30  ;;  %v737_v2 = vld [vmem:[#allocation5 + $0xfb0] sm:$0xff]  ;;  %v606_v4 = vld [vmem:[#allocation5 + $0xb98] sm:$0xff] }
 0x191   :  { %1329 = vmatpush1.msra.mxu1 %v645_v31  ;;  %1259 = vmatprep.subr.mxu0 %v514_v32  ;;  %v734_v5 = vld [vmem:[#allocation5 + $0xf98] sm:$0xff]  ;;  %v605_v6 = vld [vmem:[#allocation5 + $0xb90] sm:$0xff] }
 0x192   :  { %1330 = vmatprep.subr.mxu1 %v642_v33  ;;  %1260 = vmatpush1.msra.mxu0 %v513_v34  ;;  %v733_v7 = vld [vmem:[#allocation5 + $0xf90] sm:$0xff]  ;;  %v602_v9 = vld [vmem:[#allocation5 + $0xb78] sm:$0xff] }
 0x193   :  { %1331 = vmatpush1.msra.mxu1 %v641_v35  ;;  %1261 = vmatprep.subr.mxu0 %v510_v36  ;;  %v730_v10 = vld [vmem:[#allocation5 + $0xf78] sm:$0xff]  ;;  %v601_v12 = vld [vmem:[#allocation5 + $0xb70] sm:$0xff] }
 0x194   :  { %1332 = vmatprep.subr.mxu1 %v638_v37  ;;  %1262 = vmatpush1.msra.mxu0 %v509_v38  ;;  %v729_v13 = vld [vmem:[#allocation5 + $0xf70] sm:$0xff]  ;;  %v598_v14 = vld [vmem:[#allocation5 + $0xb58] sm:$0xff] }
 0x195   :  { %1333 = vmatpush1.msra.mxu1 %v637_v39  ;;  %1263 = vmatprep.subr.mxu0 %v506_v40  ;;  %v726_v15 = vld [vmem:[#allocation5 + $0xf58] sm:$0xff]  ;;  %v597_v17 = vld [vmem:[#allocation5 + $0xb50] sm:$0xff] }
 0x196   :  { %1334 = vmatprep.subr.mxu1 %v634_v42  ;;  %1264 = vmatpush1.msra.mxu0 %v505_v43  ;;  %v725_v18 = vld [vmem:[#allocation5 + $0xf50] sm:$0xff]  ;;  %v594_v19 = vld [vmem:[#allocation5 + $0xb38] sm:$0xff] }
 0x197   :  { %1335 = vmatpush1.msra.mxu1 %v633_v44  ;;  %1265 = vmatprep.subr.mxu0 %v502_v45  ;;  %v722_v20 = vld [vmem:[#allocation5 + $0xf38] sm:$0xff]  ;;  %v593_v22 = vld [vmem:[#allocation5 + $0xb30] sm:$0xff] }
 0x198   :  { %1336 = vmatprep.subr.mxu1 %v630_v46  ;;  %1266 = vmatpush1.msra.mxu0 %v501_v47  ;;  %v721_v23 = vld [vmem:[#allocation5 + $0xf30] sm:$0xff]  ;;  %v590_v24 = vld [vmem:[#allocation5 + $0xb18] sm:$0xff] }
 0x199   :  { %1337 = vmatpush1.msra.mxu1 %v629_v48  ;;  %1267 = vmatprep.subr.mxu0 %v498_v49  ;;  %v718_v25 = vld [vmem:[#allocation5 + $0xf18] sm:$0xff]  ;;  %v589_v27 = vld [vmem:[#allocation5 + $0xb10] sm:$0xff] }
 0x19a   :  { %1338 = vmatprep.subr.mxu1 %v626_v50  ;;  %1268 = vmatpush1.msra.mxu0 %v497_v51  ;;  %v717_v28 = vld [vmem:[#allocation5 + $0xf10] sm:$0xff]  ;;  %v586_v30 = vld [vmem:[#allocation5 + $0xaf8] sm:$0xff] }
 0x19b   :  { %1339 = vmatpush1.msra.mxu1 %v625_v53  ;;  %1269 = vmatprep.subr.mxu0 %v494_v54  ;;  %v714_v31 = vld [vmem:[#allocation5 + $0xef8] sm:$0xff]  ;;  %v585_v32 = vld [vmem:[#allocation5 + $0xaf0] sm:$0xff] }
 0x19c   :  { %1340 = vmatprep.subr.mxu1 %v622_v55  ;;  %1270 = vmatpush1.msra.mxu0 %v493_v56  ;;  %v713_v33 = vld [vmem:[#allocation5 + $0xef0] sm:$0xff]  ;;  %v582_v34 = vld [vmem:[#allocation5 + $0xad8] sm:$0xff] }
 0x19d   :  { %1341 = vmatpush1.msra.mxu1 %v621_v57  ;;  %1271 = vmatprep.subr.mxu0 %v618_v58  ;;  %v710_v35 = vld [vmem:[#allocation5 + $0xed8] sm:$0xff]  ;;  %v581_v36 = vld [vmem:[#allocation5 + $0xad0] sm:$0xff] }
 0x19e   :  { %1342 = vmatprep.subr.mxu1 %v746_v59  ;;  %1272 = vmatpush2.msra.mxu0 %v617_v60  ;;  %v709_v37 = vld [vmem:[#allocation5 + $0xed0] sm:$0xff]  ;;  %v578_v38 = vld [vmem:[#allocation5 + $0xab8] sm:$0xff] }
 0x19f   :  { %1343 = vmatpush2.msra.mxu1 %v745_v8  ;;  %1273 = vmatprep.subr.mxu0 %v614_v61  ;;  %v706_v39 = vld [vmem:[#allocation5 + $0xeb8] sm:$0xff]  ;;  %v577_v40 = vld [vmem:[#allocation5 + $0xab0] sm:$0xff] }
 0x1a0   :  { %1344 = vmatprep.subr.mxu1 %v742_v62  ;;  %1274 = vmatpush2.msra.mxu0 %v613_v63  ;;  %v705_v42 = vld [vmem:[#allocation5 + $0xeb0] sm:$0xff]  ;;  %v574_v43 = vld [vmem:[#allocation5 + $0xa98] sm:$0xff] }
 0x1a1   :  { %1345 = vmatpush2.msra.mxu1 %v741_v11  ;;  %1275 = vmatprep.subr.mxu0 %v610_v0  ;;  %v702_v44 = vld [vmem:[#allocation5 + $0xe98] sm:$0xff]  ;;  %v573_v45 = vld [vmem:[#allocation5 + $0xa90] sm:$0xff] }
 0x1a2   :  { %1346 = vmatprep.subr.mxu1 %v738_v1  ;;  %1276 = vmatpush2.msra.mxu0 %v609_v3  ;;  %v701_v46 = vld [vmem:[#allocation5 + $0xe90] sm:$0xff]  ;;  %v570_v47 = vld [vmem:[#allocation5 + $0xa78] sm:$0xff]  ;;  %v1413_v1 = vld [vmem:[#allocation8 + $0xe0] sm:$0xff] }
 0x1a3   :  { %1347 = vmatpush2.msra.mxu1 %v737_v2  ;;  %1277 = vmatprep.subr.mxu0 %v606_v4  ;;  %v698_v48 = vld [vmem:[#allocation5 + $0xe78] sm:$0xff]  ;;  %v569_v49 = vld [vmem:[#allocation5 + $0xa70] sm:$0xff] }
 0x1a4   :  { %1348 = vmatprep.subr.mxu1 %v734_v5  ;;  %1278 = vmatpush2.msra.mxu0 %v605_v6  ;;  %v697_v50 = vld [vmem:[#allocation5 + $0xe70] sm:$0xff]  ;;  %v566_v51 = vld [vmem:[#allocation5 + $0xa58] sm:$0xff] }
 0x1a5   :  { %1349 = vmatpush2.msra.mxu1 %v733_v7  ;;  %1279 = vmatprep.subr.mxu0 %v602_v9  ;;  %v694_v53 = vld [vmem:[#allocation5 + $0xe58] sm:$0xff]  ;;  %v565_v54 = vld [vmem:[#allocation5 + $0xa50] sm:$0xff] }
 0x1a6   :  { %1350 = vmatprep.subr.mxu1 %v730_v10  ;;  %1280 = vmatpush2.msra.mxu0 %v601_v12  ;;  %v693_v55 = vld [vmem:[#allocation5 + $0xe50] sm:$0xff]  ;;  %v562_v56 = vld [vmem:[#allocation5 + $0xa38] sm:$0xff] }
 0x1a7   :  { %1351 = vmatpush2.msra.mxu1 %v729_v13  ;;  %1281 = vmatprep.subr.mxu0 %v598_v14  ;;  %v690_v57 = vld [vmem:[#allocation5 + $0xe38] sm:$0xff]  ;;  %v561_v58 = vld [vmem:[#allocation5 + $0xa30] sm:$0xff]  ;;  %v1473_v13 = vld [vmem:[#allocation8 + $0x2c0] sm:$0xff] }
 0x1a8   :  { %1352 = vmatprep.subr.mxu1 %v726_v15  ;;  %1282 = vmatpush2.msra.mxu0 %v597_v17  ;;  %v689_v59 = vld [vmem:[#allocation5 + $0xe30] sm:$0xff]  ;;  %v558_v60 = vld [vmem:[#allocation5 + $0xa18] sm:$0xff]  ;;  %v1405_v17 = vld [vmem:[#allocation8 + $0xa0] sm:$0xff] }
 0x1a9   :  { %1353 = vmatpush2.msra.mxu1 %v725_v18  ;;  %1283 = vmatprep.subr.mxu0 %v594_v19  ;;  %v686_v8 = vld [vmem:[#allocation5 + $0xe18] sm:$0xff]  ;;  %v557_v61 = vld [vmem:[#allocation5 + $0xa10] sm:$0xff] }
 0x1aa   :  { %1354 = vmatprep.subr.mxu1 %v722_v20  ;;  %1284 = vmatpush2.msra.mxu0 %v593_v22  ;;  %v685_v62 = vld [vmem:[#allocation5 + $0xe10] sm:$0xff]  ;;  %v1416_v63 = vld [vmem:[#allocation8 + $0xf8] sm:$0xff] }
 0x1ab   :  { %1355 = vmatpush2.msra.mxu1 %v721_v23  ;;  %1285 = vmatprep.subr.mxu0 %v590_v24  ;;  %v1415_v11 = vld [vmem:[#allocation8 + $0xf0] sm:$0xff]  ;;  %v1414_v0 = vld [vmem:[#allocation8 + $0xe8] sm:$0xff]  ;;  %v1412_v3 = vld [vmem:[#allocation8 + $0xd8] sm:$0xff] }
 0x1ac   :  { %1356 = vmatprep.subr.mxu1 %v718_v25  ;;  %1286 = vmatpush2.msra.mxu0 %v589_v27  ;;  %v1480_v2 = vld [vmem:[#allocation8 + $0x2f8] sm:$0xff]  ;;  %v1479_v4 = vld [vmem:[#allocation8 + $0x2f0] sm:$0xff]  ;;  %v1478_v5 = vld [vmem:[#allocation8 + $0x2e8] sm:$0xff] }
 0x1ad   :  { %1357 = vmatpush2.msra.mxu1 %v717_v28  ;;  %1287 = vmatprep.subr.mxu0 %v586_v30  ;;  %v1411_v6 = vld [vmem:[#allocation8 + $0xd0] sm:$0xff]  ;;  %v1410_v7 = vld [vmem:[#allocation8 + $0xc8] sm:$0xff]  ;;  %v1408_v9 = vld [vmem:[#allocation8 + $0xb8] sm:$0xff] }
 0x1ae   :  { %1358 = vmatprep.subr.mxu1 %v714_v31  ;;  %1288 = vmatpush2.msra.mxu0 %v585_v32  ;;  %v1474_v10 = vld [vmem:[#allocation8 + $0x2c8] sm:$0xff]  ;;  %v1407_v12 = vld [vmem:[#allocation8 + $0xb0] sm:$0xff]  ;;  %v1472_v15 = vld [vmem:[#allocation8 + $0x2b8] sm:$0xff] }
 0x1af   :  { %1359 = vmatpush2.msra.mxu1 %v713_v33  ;;  %1289 = vmatprep.subr.mxu0 %v582_v34  ;;  %v1406_v14 = vld [vmem:[#allocation8 + $0xa8] sm:$0xff]  ;;  %v1471_v18 = vld [vmem:[#allocation8 + $0x2b0] sm:$0xff]  ;;  %v1404_v19 = vld [vmem:[#allocation8 + $0x98] sm:$0xff] }
 0x1b0   :  { %1360 = vmatprep.subr.mxu1 %v710_v35  ;;  %1290 = vmatpush2.msra.mxu0 %v581_v36  ;;  %v1470_v20 = vld [vmem:[#allocation8 + $0x2a8] sm:$0xff]  ;;  %v1403_v22 = vld [vmem:[#allocation8 + $0x90] sm:$0xff]  ;;  %v1469_v23 = vld [vmem:[#allocation8 + $0x2a0] sm:$0xff] }
 0x1b1   :  { %1361 = vmatpush2.msra.mxu1 %v709_v37  ;;  %1291 = vmatprep.subr.mxu0 %v578_v38  ;;  %v1402_v24 = vld [vmem:[#allocation8 + $0x88] sm:$0xff]  ;;  %v1468_v25 = vld [vmem:[#allocation8 + $0x298] sm:$0xff]  ;;  %v1401_v27 = vld [vmem:[#allocation8 + $0x80] sm:$0xff] }
 0x1b2   :  { %1362 = vmatprep.subr.mxu1 %v706_v39  ;;  %1292 = vmatpush2.msra.mxu0 %v577_v40  ;;  %v1467_v28 = vld [vmem:[#allocation8 + $0x290] sm:$0xff]  ;;  %v1400_v30 = vld [vmem:[#allocation8 + $0x78] sm:$0xff]  ;;  %v1466_v31 = vld [vmem:[#allocation8 + $0x288] sm:$0xff] }
 0x1b3   :  { %1363 = vmatpush2.msra.mxu1 %v705_v42  ;;  %1293 = vmatprep.subr.mxu0 %v574_v43  ;;  %v1399_v32 = vld [vmem:[#allocation8 + $0x70] sm:$0xff]  ;;  %v1465_v33 = vld [vmem:[#allocation8 + $0x280] sm:$0xff]  ;;  %v1398_v34 = vld [vmem:[#allocation8 + $0x68] sm:$0xff] }
 0x1b4   :  { %1364 = vmatprep.subr.mxu1 %v702_v44  ;;  %1294 = vmatpush2.msra.mxu0 %v573_v45  ;;  %v1464_v35 = vld [vmem:[#allocation8 + $0x278] sm:$0xff]  ;;  %v1397_v36 = vld [vmem:[#allocation8 + $0x60] sm:$0xff]  ;;  %v1463_v37 = vld [vmem:[#allocation8 + $0x270] sm:$0xff] }
 0x1b5   :  { %1365 = vmatpush2.msra.mxu1 %v701_v46  ;;  %1295 = vmatprep.subr.mxu0 %v570_v47  ;;  %v1396_v38 = vld [vmem:[#allocation8 + $0x58] sm:$0xff]  ;;  %v1462_v39 = vld [vmem:[#allocation8 + $0x268] sm:$0xff]  ;;  %v1395_v40 = vld [vmem:[#allocation8 + $0x50] sm:$0xff] }
 0x1b6   :  { %1366 = vmatprep.subr.mxu1 %v698_v48  ;;  %1296 = vmatpush2.msra.mxu0 %v569_v49  ;;  %v1461_v42 = vld [vmem:[#allocation8 + $0x260] sm:$0xff]  ;;  %v1394_v43 = vld [vmem:[#allocation8 + $0x48] sm:$0xff]  ;;  %v1460_v44 = vld [vmem:[#allocation8 + $0x258] sm:$0xff] }
 0x1b7   :  { %1367 = vmatpush2.msra.mxu1 %v697_v50  ;;  %1297 = vmatprep.subr.mxu0 %v566_v51  ;;  %v1393_v45 = vld [vmem:[#allocation8 + $0x40] sm:$0xff]  ;;  %v1459_v46 = vld [vmem:[#allocation8 + $0x250] sm:$0xff]  ;;  %v1392_v47 = vld [vmem:[#allocation8 + $0x38] sm:$0xff] }
 0x1b8   :  { %1368 = vmatprep.subr.mxu1 %v694_v53  ;;  %1298 = vmatpush2.msra.mxu0 %v565_v54  ;;  %v1458_v48 = vld [vmem:[#allocation8 + $0x248] sm:$0xff]  ;;  %v1391_v49 = vld [vmem:[#allocation8 + $0x30] sm:$0xff]  ;;  %v1457_v50 = vld [vmem:[#allocation8 + $0x240] sm:$0xff] }
 0x1b9   :  { %1369 = vmatpush2.msra.mxu1 %v693_v55  ;;  %1299 = vmatprep.subr.mxu0 %v562_v56  ;;  %v1390_v51 = vld [vmem:[#allocation8 + $0x28] sm:$0xff]  ;;  %v1456_v53 = vld [vmem:[#allocation8 + $0x238] sm:$0xff]  ;;  %v1389_v54 = vld [vmem:[#allocation8 + $0x20] sm:$0xff] }
 0x1ba   :  { %1370 = vmatprep.subr.mxu1 %v690_v57  ;;  %1300 = vmatpush2.msra.mxu0 %v561_v58  ;;  %v1455_v55 = vld [vmem:[#allocation8 + $0x230] sm:$0xff]  ;;  %v1388_v56 = vld [vmem:[#allocation8 + $0x18] sm:$0xff]  ;;  %v1454_v57 = vld [vmem:[#allocation8 + $0x228] sm:$0xff] }
 0x1bb   :  { %1371 = vmatpush2.msra.mxu1 %v689_v59  ;;  %1301 = vmatprep.subr.mxu0 %v558_v60  ;;  %v1387_v58 = vld [vmem:[#allocation8 + $0x10] sm:$0xff]  ;;  %v1453_v59 = vld [vmem:[#allocation8 + $0x220] sm:$0xff]  ;;  %v1386_v60 = vld [vmem:[#allocation8 + $0x8] sm:$0xff] }
 0x1bc   :  { %1372 = vmatprep.subr.mxu1 %v686_v8  ;;  %1302 = vmatpush2.msra.mxu0 %v557_v61  ;;  %v1452_v8 = vld [vmem:[#allocation8 + $0x218] sm:$0xff]  ;;  %v1385_v61 = vld [vmem:[#allocation8] sm:$0xff] }
 0x1bd   :  { %1303 = vmatprep.mubr.f32.mxu0 %v3282_v26  ;;  %1373 = vmatpush2.msra.mxu1 %v685_v62  ;;  %v1477_v26 = vld [vmem:[#allocation8 + $0x2e0] sm:$0xff]  ;;  %v1451_v62 = vld [vmem:[#allocation8 + $0x210] sm:$0xff] }
 0x1be   :  { %1374 = vmatprep.mubr.f32.mxu1 %v3286_v29  ;;  %1304 = vmatmul.mubr.f32.vlgmr.msra.gmra.mxu0 %v3275_v16  ;;  %v1476_v29 = vld [vmem:[#allocation8 + $0x2d8] sm:$0xff]  ;;  %v1409_v16 = vld [vmem:[#allocation8 + $0xc0] sm:$0xff] }
 0x1bf   :  { %1375 = vmatmul.mubr.f32.vlgmr.msra.gmra.mxu1 %v3278_v21  ;;  %1525 = vmatprep.subr.mxu0 %v1416_v63  ;;  %v1475_v21 = vld [vmem:[#allocation8 + $0x2d0] sm:$0xff]  ;;  %v1448_v63 = vld [vmem:[#allocation8 + $0x1f8] sm:$0xff] }
 0x1c0   :  { %1526 = vmatpush1.msra.mxu0 %v1415_v11  ;;  %1596 = vmatprep.subr.mxu1 %v1480_v2  ;;  %v1450_v11 = vld [vmem:[#allocation8 + $0x208] sm:$0xff]  ;;  %v1512_v2 = vld [vmem:[#allocation8 + $0x3f8] sm:$0xff] }
 0x1c1   :  { %1527 = vmatprep.subr.mxu0 %v1414_v0  ;;  %1597 = vmatpush1.msra.mxu1 %v1479_v4  ;;  %v1447_v0 = vld [vmem:[#allocation8 + $0x1f0] sm:$0xff]  ;;  %v1445_v4 = vld [vmem:[#allocation8 + $0x1e0] sm:$0xff] }
 0x1c2   :  { %1528 = vmatpush1.msra.mxu0 %v1413_v1  ;;  %1598 = vmatprep.subr.mxu1 %v1478_v5  ;;  %v1449_v1 = vld [vmem:[#allocation8 + $0x200] sm:$0xff]  ;;  %v1511_v5 = vld [vmem:[#allocation8 + $0x3f0] sm:$0xff] }
 0x1c3   :  { %1529 = vmatprep.subr.mxu0 %v1412_v3  ;;  %1599 = vmatpush1.msra.mxu1 %v1477_v26  ;;  %v1446_v3 = vld [vmem:[#allocation8 + $0x1e8] sm:$0xff] }
 0x1c4   :  { %1530 = vmatpush1.msra.mxu0 %v1411_v6  ;;  %1600 = vmatprep.subr.mxu1 %v1476_v29  ;;  %v1444_v6 = vld [vmem:[#allocation8 + $0x1d8] sm:$0xff]  ;;  %v1510_v26 = vld [vmem:[#allocation8 + $0x3e8] sm:$0xff]  ;;  %v1509_v29 = vld [vmem:[#allocation8 + $0x3e0] sm:$0xff] }
 0x1c5   :  { %1531 = vmatprep.subr.mxu0 %v1410_v7  ;;  %1601 = vmatpush1.msra.mxu1 %v1475_v21  ;;  %v1443_v7 = vld [vmem:[#allocation8 + $0x1d0] sm:$0xff]  ;;  %v1508_v21 = vld [vmem:[#allocation8 + $0x3d8] sm:$0xff] }
 0x1c6   :  { %1532 = vmatpush1.msra.mxu0 %v1409_v16  ;;  %1602 = vmatprep.subr.mxu1 %v1474_v10  ;;  %v1442_v16 = vld [vmem:[#allocation8 + $0x1c8] sm:$0xff]  ;;  %v1507_v10 = vld [vmem:[#allocation8 + $0x3d0] sm:$0xff] }
 0x1c7   :  { %1533 = vmatprep.subr.mxu0 %v1408_v9  ;;  %1603 = vmatpush1.msra.mxu1 %v1473_v13  ;;  %v1441_v9 = vld [vmem:[#allocation8 + $0x1c0] sm:$0xff]  ;;  %v1506_v13 = vld [vmem:[#allocation8 + $0x3c8] sm:$0xff] }
 0x1c8   :  { %1534 = vmatpush1.msra.mxu0 %v1407_v12  ;;  %1604 = vmatprep.subr.mxu1 %v1472_v15  ;;  %v1440_v12 = vld [vmem:[#allocation8 + $0x1b8] sm:$0xff]  ;;  %v1505_v15 = vld [vmem:[#allocation8 + $0x3c0] sm:$0xff] }
 0x1c9   :  { %1535 = vmatprep.subr.mxu0 %v1406_v14  ;;  %1605 = vmatpush1.msra.mxu1 %v1471_v18  ;;  %v1439_v14 = vld [vmem:[#allocation8 + $0x1b0] sm:$0xff]  ;;  %v1504_v18 = vld [vmem:[#allocation8 + $0x3b8] sm:$0xff] }
 0x1ca   :  { %1536 = vmatpush1.msra.mxu0 %v1405_v17  ;;  %1606 = vmatprep.subr.mxu1 %v1470_v20  ;;  %v1438_v17 = vld [vmem:[#allocation8 + $0x1a8] sm:$0xff]  ;;  %v1503_v20 = vld [vmem:[#allocation8 + $0x3b0] sm:$0xff] }
 0x1cb   :  { %1537 = vmatprep.subr.mxu0 %v1404_v19  ;;  %1607 = vmatpush1.msra.mxu1 %v1469_v23  ;;  %v1437_v19 = vld [vmem:[#allocation8 + $0x1a0] sm:$0xff]  ;;  %v1502_v23 = vld [vmem:[#allocation8 + $0x3a8] sm:$0xff] }
 0x1cc   :  { %1538 = vmatpush1.msra.mxu0 %v1403_v22  ;;  %1608 = vmatprep.subr.mxu1 %v1468_v25  ;;  %v1436_v22 = vld [vmem:[#allocation8 + $0x198] sm:$0xff]  ;;  %v1501_v25 = vld [vmem:[#allocation8 + $0x3a0] sm:$0xff] }
 0x1cd   :  { %1539 = vmatprep.subr.mxu0 %v1402_v24  ;;  %1609 = vmatpush1.msra.mxu1 %v1467_v28  ;;  %v1435_v24 = vld [vmem:[#allocation8 + $0x190] sm:$0xff]  ;;  %v1500_v28 = vld [vmem:[#allocation8 + $0x398] sm:$0xff] }
 0x1ce   :  { %1540 = vmatpush1.msra.mxu0 %v1401_v27  ;;  %1610 = vmatprep.subr.mxu1 %v1466_v31  ;;  %v1434_v27 = vld [vmem:[#allocation8 + $0x188] sm:$0xff]  ;;  %v1499_v31 = vld [vmem:[#allocation8 + $0x390] sm:$0xff] }
 0x1cf   :  { %1541 = vmatprep.subr.mxu0 %v1400_v30  ;;  %1611 = vmatpush1.msra.mxu1 %v1465_v33  ;;  %v1433_v30 = vld [vmem:[#allocation8 + $0x180] sm:$0xff]  ;;  %v1432_v33 = vld [vmem:[#allocation8 + $0x178] sm:$0xff] }
 0x1d0   :  { %1542 = vmatpush1.msra.mxu0 %v1399_v32  ;;  %1612 = vmatprep.subr.mxu1 %v1464_v35  ;;  %v3301_v32 = vsub.s32 0, %v3245_v41  ;;  %v3303_v35 = vld [vmem:[#allocation7] sm:$0xf] }
 0x1d1   :  { %1543 = vmatprep.subr.mxu0 %v1398_v34  ;;  %1613 = vmatpush1.msra.mxu1 %v1463_v37  ;;  %v1498_v34 = vld [vmem:[#allocation8 + $0x388] sm:$0xff]  ;;  %v1497_v37 = vld [vmem:[#allocation8 + $0x380] sm:$0xff] }
 0x1d2   :  { %1544 = vmatpush1.msra.mxu0 %v1397_v36  ;;  %1614 = vmatprep.subr.mxu1 %v1462_v39  ;;  %v1431_v36 = vld [vmem:[#allocation8 + $0x170] sm:$0xff]  ;;  %v1430_v39 = vld [vmem:[#allocation8 + $0x168] sm:$0xff] }
 0x1d3   :  { %1545 = vmatprep.subr.mxu0 %v1396_v38  ;;  %1615 = vmatpush1.msra.mxu1 %v1461_v42  ;;  %v3306_v38 = vsub.s32 1, %v3245_v41  ;;  %v879_v42 = vpop.f32.mrf.mxu0 }
 0x1d4   :  { %1546 = vmatpush1.msra.mxu0 %v1395_v40  ;;  %1616 = vmatprep.subr.mxu1 %v1460_v44  ;;  %v1496_v40 = vld [vmem:[#allocation8 + $0x378] sm:$0xff]  ;;  %v1495_v44 = vld [vmem:[#allocation8 + $0x370] sm:$0xff] }
 0x1d5   :  { %1547 = vmatprep.subr.mxu0 %v1394_v43  ;;  %1617 = vmatpush1.msra.mxu1 %v1459_v46  ;;  %v1429_v43 = vld [vmem:[#allocation8 + $0x160] sm:$0xff]  ;;  %v1428_v46 = vld [vmem:[#allocation8 + $0x158] sm:$0xff] }
 0x1d6   :  { %1548 = vmatpush1.msra.mxu0 %v1393_v45  ;;  %1618 = vmatprep.subr.mxu1 %v1458_v48  ;;  %v752_v45 = vrot.slane %v3303_v35, %v3301_v32  ;;  %v1427_v48 = vld [vmem:[#allocation8 + $0x150] sm:$0xff] }
 0x1d7   :  { %1549 = vmatprep.subr.mxu0 %v1392_v47  ;;  %1619 = vmatpush1.msra.mxu1 %v1457_v50  ;;  %v1494_v47 = vld [vmem:[#allocation8 + $0x368] sm:$0xff]  ;;  %v756_v50 = vrot.slane %v3303_v35, %v3306_v38 }
 0x1d8   :  { %1550 = vmatpush1.msra.mxu0 %v1391_v49  ;;  %1620 = vmatprep.subr.mxu1 %v1456_v53  ;;  %v1493_v49 = vld [vmem:[#allocation8 + $0x360] sm:$0xff]  ;;  %v1492_v53 = vld [vmem:[#allocation8 + $0x358] sm:$0xff] }
 0x1d9   :  { %1551 = vmatprep.subr.mxu0 %v1390_v51  ;;  %1621 = vmatpush1.msra.mxu1 %v1455_v55  ;;  %v1426_v51 = vld [vmem:[#allocation8 + $0x148] sm:$0xff]  ;;  %v881_v55 = vpop.f32.mrf.mxu0 }
 0x1da   :  { %1552 = vmatpush1.msra.mxu0 %v1389_v54  ;;  %1622 = vmatprep.subr.mxu1 %v1454_v57  ;;  %v950_v54 = vpop.f32.mrf.mxu1  ;;  %v1491_v57 = vld [vmem:[#allocation8 + $0x350] sm:$0xff] }
 0x1db   :  { %1553 = vmatprep.subr.mxu0 %v1388_v56  ;;  %1623 = vmatpush1.msra.mxu1 %v1453_v59  ;;  %v1425_v56 = vld [vmem:[#allocation8 + $0x140] sm:$0xff]  ;;  %v1424_v59 = vld [vmem:[#allocation8 + $0x138] sm:$0xff] }
 0x1dc   :  { %1554 = vmatpush1.msra.mxu0 %v1387_v58  ;;  %1624 = vmatprep.subr.mxu1 %v1452_v8  ;;  %v880_v58 = vadd.f32 %v879_v42, %v752_v45  ;;  %v882_v8 = vadd.f32 %v881_v55, %v756_v50  ;;  %v1679_v42 = vld [vmem:[%s3487_s6 + $0x50] sm:$0xff]  ;;  %v1693_v45 = vld [vmem:[%s3487_s6 + $0xc0] sm:$0xff] }
 0x1dd   :  { %1555 = vmatprep.subr.mxu0 %v1386_v60  ;;  %1625 = vmatpush1.msra.mxu1 %v1451_v62  ;;  %v1423_v60 = vld [vmem:[#allocation8 + $0x130] sm:$0xff]  ;;  %v952_v62 = vpop.f32.mrf.mxu1  ;;  %v1673_v55 = vld [vmem:[%s3487_s6 + $0x20] sm:$0xff] }
 0x1de   :  { %1556 = vmatpush1.msra.mxu0 %v1385_v61  ;;  %1626 = vmatprep.subr.mxu1 %v1450_v11  ;;  %v1422_v61 = vld [vmem:[#allocation8 + $0x128] sm:$0xff]  ;;  %v951_v11 = vadd.f32 %v950_v54, %v880_v58  ;;  %v1689_v54 = vld [vmem:[%s3487_s6 + $0xa0] sm:$0xff] }
 0x1df   :  { %1557 = vmatprep.subr.mxu0 %v1448_v63  ;;  %1627 = vmatpush1.msra.mxu1 %v1449_v1  ;;  %v1421_v63 = vld [vmem:[#allocation8 + $0x120] sm:$0xff]  ;;  %v1675_v50 = vld [vmem:[%s3487_s6 + $0x30] sm:$0xff] }
 0x1e0   :  { %1558 = vmatpush2.msra.mxu0 %v1447_v0  ;;  %1628 = vmatprep.subr.mxu1 %v1512_v2  ;;  %v1420_v0 = vld [vmem:[#allocation8 + $0x118] sm:$0xff]  ;;  %v953_v2 = vadd.f32 %v952_v62, %v882_v8 }
 0x1e1   :  { %1559 = vmatprep.subr.mxu0 %v1446_v3  ;;  %1629 = vmatpush2.msra.mxu1 %v1511_v5  ;;  %v1419_v3 = vld [vmem:[#allocation8 + $0x110] sm:$0xff]  ;;  %v1418_v5 = vld [vmem:[#allocation8 + $0x108] sm:$0xff] }
 0x1e2   :  { %1560 = vmatpush2.msra.mxu0 %v1445_v4  ;;  %1630 = vmatprep.subr.mxu1 %v1510_v26 }
 0x1e3   :  { %1561 = vmatprep.subr.mxu0 %v1444_v6  ;;  %1631 = vmatpush2.msra.mxu1 %v1509_v29 }
 0x1e4   :  { %1562 = vmatpush2.msra.mxu0 %v1443_v7  ;;  %1632 = vmatprep.subr.mxu1 %v1508_v21  ;;  %v1417_v7 = vld [vmem:[#allocation8 + $0x100] sm:$0xff] }
 0x1e5   :  { %1563 = vmatprep.subr.mxu0 %v1442_v16  ;;  %1633 = vmatpush2.msra.mxu1 %v1507_v10 }
 0x1e6   :  { %1564 = vmatpush2.msra.mxu0 %v1441_v9  ;;  %1634 = vmatprep.subr.mxu1 %v1506_v13  ;;  %v1490_v9 = vld [vmem:[#allocation8 + $0x348] sm:$0xff]  ;;  %v1488_v13 = vld [vmem:[#allocation8 + $0x338] sm:$0xff] }
 0x1e7   :  { %1565 = vmatprep.subr.mxu0 %v1440_v12  ;;  %1635 = vmatpush2.msra.mxu1 %v1505_v15  ;;  %v1489_v12 = vld [vmem:[#allocation8 + $0x340] sm:$0xff]  ;;  %v1487_v15 = vld [vmem:[#allocation8 + $0x330] sm:$0xff] }
 0x1e8   :  { %1566 = vmatpush2.msra.mxu0 %v1439_v14  ;;  %1636 = vmatprep.subr.mxu1 %v1504_v18  ;;  %v1486_v18 = vld [vmem:[#allocation8 + $0x328] sm:$0xff] }
 0x1e9   :  { %1567 = vmatprep.subr.mxu0 %v1438_v17  ;;  %1637 = vmatpush2.msra.mxu1 %v1503_v20  ;;  %v1484_v20 = vld [vmem:[#allocation8 + $0x318] sm:$0xff] }
 0x1ea   :  { %1568 = vmatpush2.msra.mxu0 %v1437_v19  ;;  %1638 = vmatprep.subr.mxu1 %v1502_v23  ;;  %v1485_v19 = vld [vmem:[#allocation8 + $0x320] sm:$0xff]  ;;  %v1482_v23 = vld [vmem:[#allocation8 + $0x308] sm:$0xff] }
 0x1eb   :  { %1569 = vmatprep.subr.mxu0 %v1436_v22  ;;  %1639 = vmatpush2.msra.mxu1 %v1501_v25  ;;  %v1483_v22 = vld [vmem:[#allocation8 + $0x310] sm:$0xff] }
 0x1ec   :  { %1570 = vmatpush2.msra.mxu0 %v1435_v24  ;;  %1640 = vmatprep.subr.mxu1 %v1500_v28  ;;  %v1481_v24 = vld [vmem:[#allocation8 + $0x300] sm:$0xff]  ;;  %v1700_v25 = vld [vmem:[%s3487_s6 + $0xf8] sm:$0xff]  ;;  %v1699_v28 = vld [vmem:[%s3487_s6 + $0xf0] sm:$0xff] }
 0x1ed   :  { %1571 = vmatprep.subr.mxu0 %v1434_v27  ;;  %1641 = vmatpush2.msra.mxu1 %v1499_v31  ;;  %v1684_v27 = vld [vmem:[%s3487_s6 + $0x78] sm:$0xff]  ;;  %v1698_v31 = vld [vmem:[%s3487_s6 + $0xe8] sm:$0xff] }
 0x1ee   :  { %1572 = vmatpush2.msra.mxu0 %v1433_v30  ;;  %1642 = vmatprep.subr.mxu1 %v1498_v34  ;;  %v1683_v30 = vld [vmem:[%s3487_s6 + $0x70] sm:$0xff]  ;;  %v1697_v34 = vld [vmem:[%s3487_s6 + $0xe0] sm:$0xff] }
 0x1ef   :  { %1573 = vmatprep.subr.mxu0 %v1432_v33  ;;  %1643 = vmatpush2.msra.mxu1 %v1497_v37  ;;  %v1682_v33 = vld [vmem:[%s3487_s6 + $0x68] sm:$0xff]  ;;  %v1696_v37 = vld [vmem:[%s3487_s6 + $0xd8] sm:$0xff] }
 0x1f0   :  { %1574 = vmatpush2.msra.mxu0 %v1431_v36  ;;  %1644 = vmatprep.subr.mxu1 %v1496_v40  ;;  %v1681_v36 = vld [vmem:[%s3487_s6 + $0x60] sm:$0xff]  ;;  %v1695_v40 = vld [vmem:[%s3487_s6 + $0xd0] sm:$0xff] }
 0x1f1   :  { %1575 = vmatprep.subr.mxu0 %v1430_v39  ;;  %1645 = vmatpush2.msra.mxu1 %v1495_v44  ;;  %v1680_v39 = vld [vmem:[%s3487_s6 + $0x58] sm:$0xff]  ;;  %v1678_v44 = vld [vmem:[%s3487_s6 + $0x48] sm:$0xff] }
 0x1f2   :  { %1576 = vmatpush2.msra.mxu0 %v1429_v43  ;;  %1646 = vmatprep.subr.mxu1 %v1494_v47  ;;  %v1694_v43 = vld [vmem:[%s3487_s6 + $0xc8] sm:$0xff]  ;;  %v1692_v47 = vld [vmem:[%s3487_s6 + $0xb8] sm:$0xff] }
 0x1f3   :  { %1577 = vmatprep.subr.mxu0 %v1428_v46  ;;  %1647 = vmatpush2.msra.mxu1 %v1493_v49  ;;  %v1677_v46 = vld [vmem:[%s3487_s6 + $0x40] sm:$0xff]  ;;  %v1691_v49 = vld [vmem:[%s3487_s6 + $0xb0] sm:$0xff] }
 0x1f4   :  { %1578 = vmatpush2.msra.mxu0 %v1427_v48  ;;  %1648 = vmatprep.subr.mxu1 %v1492_v53  ;;  %v1676_v48 = vld [vmem:[%s3487_s6 + $0x38] sm:$0xff]  ;;  %v1674_v53 = vld [vmem:[%s3487_s6 + $0x28] sm:$0xff] }
 0x1f5   :  { %1579 = vmatprep.subr.mxu0 %v1426_v51  ;;  %1649 = vmatpush2.msra.mxu1 %v1491_v57  ;;  %v1690_v51 = vld [vmem:[%s3487_s6 + $0xa8] sm:$0xff]  ;;  %v763_v57 = vsub.s32 3, %v3245_v41 }
 0x1f6   :  { %1580 = vmatpush2.msra.mxu0 %v1425_v56  ;;  %1650 = vmatprep.subr.mxu1 %v1490_v9  ;;  %v759_v56 = vsub.s32 2, %v3245_v41  ;;  %v1672_v9 = vld [vmem:[%s3487_s6 + $0x18] sm:$0xff] }
 0x1f7   :  { %1581 = vmatprep.subr.mxu0 %v1424_v59  ;;  %1651 = vmatpush2.msra.mxu1 %v1489_v12  ;;  %v1671_v12 = vld [vmem:[%s3487_s6 + $0x10] sm:$0xff] }
 0x1f8   :  { %1582 = vmatpush2.msra.mxu0 %v1423_v60  ;;  %1652 = vmatprep.subr.mxu1 %v1488_v13  ;;  %v760_v59 = vrot.slane %v3303_v35, %v759_v56  ;;  %v764_v60 = vrot.slane %v3303_v35, %v763_v57  ;;  %v1688_v35 = vld [vmem:[%s3487_s6 + $0x98] sm:$0xff]  ;;  %v1686_v13 = vld [vmem:[%s3487_s6 + $0x88] sm:$0xff] }
 0x1f9   :  { %1583 = vmatprep.subr.mxu0 %v1422_v61  ;;  %1653 = vmatpush2.msra.mxu1 %v1487_v15  ;;  %v1685_v15 = vld [vmem:[%s3487_s6 + $0x80] sm:$0xff] }
 0x1fa   :  { %v1021_v1 = vpop.f32.mrf.mxu0  ;;  %1584 = vmatpush2.msra.mxu0 %v1421_v63  ;;  %1654 = vmatprep.subr.mxu1 %v1486_v18  ;;  %v1513_v18 = vld [vmem:[#allocation10] sm:$0x3] }
 0x1fb   :  { %v1022_v4 = vadd.f32 %v1021_v1, %v951_v11  ;;  %1585 = vmatprep.subr.mxu0 %v1420_v0  ;;  %1655 = vmatpush2.msra.mxu1 %v1485_v19 }
 0x1fc   :  { %v1092_v6 = vpop.f32.mrf.mxu1  ;;  %v1023_v26 = vpop.f32.mrf.mxu0  ;;  %1586 = vmatpush2.msra.mxu0 %v1419_v3  ;;  %1656 = vmatprep.subr.mxu1 %v1484_v20  ;;  %v1518_v20 = vrot.slane %v1513_v18, %v3301_v32 }
 0x1fd   :  { %v1024_v29 = vadd.f32 %v1023_v26, %v953_v2  ;;  %v1093_v16 = vadd.f32 %v1092_v6, %v1022_v4  ;;  %1587 = vmatprep.subr.mxu0 %v1418_v5  ;;  %1657 = vmatpush2.msra.mxu1 %v1483_v22  ;;  %v1522_v22 = vrot.slane %v1513_v18, %v3306_v38 }
 0x1fe   :  { %v1094_v21 = vpop.f32.mrf.mxu1  ;;  %1588 = vmatpush2.msra.mxu0 %v1417_v7  ;;  %1658 = vmatprep.subr.mxu1 %v1482_v23 }
 0x1ff   :  { %v1095_v10 = vadd.f32 %v1094_v21, %v1024_v29  ;;  %v1381_v17 = vmax.f32 %v1093_v16, 0.0  ;;  %1659 = vmatpush2.msra.mxu1 %v1481_v24  ;;  %2609 = vmatprep.subr.mxu0 %v1700_v25 }
 0x201   :  { %v1382_v14 = vmax.f32 %v1095_v10, 0.0  ;;  %v1687_v10 = vld [vmem:[%s3487_s6 + $0x90] sm:$0xff] }
 0x203   :  { %1589 = vmatprep.mubr.f32.mxu0 %v1382_v14  ;;  %v1670_v14 = vld [vmem:[%s3487_s6 + $0x8] sm:$0xff] }
 0x204   :  { %1590 = vmatmul.mubr.f32.vlgmr.msra.gmra.mxu0 %v1381_v17  ;;  %v1669_v17 = vld [vmem:[%s3487_s6] sm:$0xff]  ;;  %s3100_s6 = smov [#allocation26]  }
 0x205   :  { %2610 = vmatpush3.msra.mxu0 %v1684_v27  ;;  %s2564_s10 = sshll.u32 %s3100_s6, 4  ;;  %s2565_s10 = int_to_ptr.vmem [resolvable:$true] %s2564_s10 }
 0x206   :  { %2611 = vmatprep.subr.mxu0 %v1699_v28  ;;  %s2995_s9 = scalar_lea.vmem %s2565_s10, 32  ;;  %p3000_p1 = scmp.lt.s32.totalorder %s2565_s10, %s2565_s10 }
 0x207   :  { %2612 = vmatpush3.msra.mxu0 %v1683_v30  ;;  %p2996_p0 = scmp.ne.s32.totalorder %s2565_s10, %s2995_s9  ;;  %p3001_p2 = scmp.lt.s32.totalorder %s2995_s9, %s2995_s9 }
 0x208   :  { %2613 = vmatprep.subr.mxu0 %v1698_v31 }
 0x209   :  { %2614 = vmatpush3.msra.mxu0 %v1682_v33  ;;  %p3002_p3 = por %p3001_p2, %p3000_p1 }
 0x20a   :  { %2615 = vmatprep.subr.mxu0 %v1697_v34 }
 0x20b   :  { %2616 = vmatpush3.msra.mxu0 %v1681_v36  ;;  %v3098_v36 = vmov 0.0   ;;  %p3003_p4 = pnand %p3002_p3, %p2996_p0 }
 0x20c   :  { %2617 = vmatprep.subr.mxu0 %v1696_v37  ;;  %2656 = vmatprep.subr.mxu1 %v3098_v36  ;;  %v1780_v37 = vld [vmem:[#allocation13 + $0x10] sm:$0xf] }
 0x20d   :  { %2618 = vmatpush3.msra.mxu0 %v1680_v39  ;;  %v1779_v39 = vld [vmem:[#allocation13 + $0x8] sm:$0xff] }
 0x20e   :  { %2619 = vmatprep.subr.mxu0 %v1695_v40  ;;  %v1778_v40 = vld [vmem:[#allocation13] sm:$0xff] }
 0x20f   :  { %2620 = vmatpush3.msra.mxu0 %v1679_v42 }
 0x210   :  { %2621 = vmatprep.subr.mxu0 %v1694_v43  ;;  %v2599_v43 = vld [vmem:[#allocation11] ss:$0 sm:$0xff] }
 0x211   :  { %2622 = vmatpush3.msra.mxu0 %v1678_v44 }
 0x212   :  { %2623 = vmatprep.subr.mxu0 %v1693_v45 }
 0x213   :  { %2624 = vmatpush3.msra.mxu0 %v1677_v46 }
 0x214   :  { %2625 = vmatprep.subr.mxu0 %v1692_v47  ;;  %v1868_v47 = vld [vmem:[#allocation16 + $0x10] sm:$0xf] }
 0x215   :  { %2626 = vmatpush3.msra.mxu0 %v1676_v48  ;;  %v1867_v48 = vld [vmem:[#allocation16 + $0x8] sm:$0xff] }
 0x216   :  { %2627 = vmatprep.subr.mxu0 %v1691_v49  ;;  %v1866_v49 = vld [vmem:[#allocation16] sm:$0xff] }
 0x217   :  { %2628 = vmatpush3.msra.mxu0 %v1675_v50  ;;  %v1957_v50 = vld [vmem:[#allocation19 + $0x10] sm:$0xf] }
 0x218   :  { %2629 = vmatprep.subr.mxu0 %v1690_v51  ;;  %v1956_v51 = vld [vmem:[#allocation19 + $0x8] sm:$0xff] }
 0x219   :  { %2630 = vmatpush3.msra.mxu0 %v1674_v53  ;;  %v1955_v53 = vld [vmem:[#allocation19] sm:$0xff] }
 0x21a   :  { %2631 = vmatprep.subr.mxu0 %v1689_v54  ;;  %v2163_v54 = vld [vmem:[#allocation22 + $0x3c8] sm:$0xff] }
 0x21b   :  { %2632 = vmatpush3.msra.mxu0 %v1673_v55  ;;  %v2165_v55 = vld [vmem:[#allocation22 + $0x3d8] sm:$0xff] }
 0x21c   :  { %2633 = vmatprep.subr.mxu0 %v1688_v35  ;;  %v2084_v35 = vld [vmem:[#allocation22 + $0x150] sm:$0xff] }
 0x21d   :  { %2634 = vmatpush3.msra.mxu0 %v1672_v9  ;;  %v2077_v9 = vld [vmem:[#allocation22 + $0x118] sm:$0xff] }
 0x21e   :  { %2635 = vmatprep.subr.mxu0 %v1687_v10  ;;  %v2076_v10 = vld [vmem:[#allocation22 + $0x110] sm:$0xff] }
 0x21f   :  { %2636 = vmatpush3.msra.mxu0 %v1671_v12  ;;  %v2069_v12 = vld [vmem:[#allocation22 + $0xd8] sm:$0xff] }
 0x220   :  { %2637 = vmatprep.subr.mxu0 %v1686_v13  ;;  %v2068_v13 = vld [vmem:[#allocation22 + $0xd0] sm:$0xff] }
 0x221   :  { %2638 = vmatpush3.msra.mxu0 %v1670_v14  ;;  %v2061_v14 = vld [vmem:[#allocation22 + $0x98] sm:$0xff] }
 0x222   :  { %2639 = vmatprep.subr.mxu0 %v1685_v15  ;;  %v2060_v15 = vld [vmem:[#allocation22 + $0x90] sm:$0xff] }
 0x223   :  { %2640 = vmatpush3.msra.mxu0 %v1669_v17  ;;  %v2600_v17 = vld [vmem:[#allocation14] ss:$0 sm:$0xff] }
 0x224   :  { %2283 = vmatprep.subr.mxu0 %v2165_v55  ;;  %v2099_v55 = vld [vmem:[#allocation22 + $0x1c8] sm:$0xff] }
 0x23c   :  { %v1163_v58 = vpop.f32.mrf.mxu0 }
 0x23d   :  { %v1164_v62 = vadd.f32 %v1163_v58, %v760_v59  ;;  %v2164_v58 = vld [vmem:[#allocation22 + $0x3d0] sm:$0xff]  ;;  %v2157_v59 = vld [vmem:[#allocation22 + $0x398] sm:$0xff] }
 0x23e   :  { %v1234_v8 = vpop.f32.mrf.mxu1  ;;  %v1165_v61 = vpop.f32.mrf.mxu0 }
 0x23f   :  { %v1166_v63 = vadd.f32 %v1165_v61, %v764_v60  ;;  %v1235_v0 = vadd.f32 %v1234_v8, %v1164_v62  ;;  %v2156_v60 = vld [vmem:[#allocation22 + $0x390] sm:$0xff]  ;;  %v2149_v8 = vld [vmem:[#allocation22 + $0x358] sm:$0xff] }
 0x240   :  { %v1236_v11 = vpop.f32.mrf.mxu1  ;;  %v2148_v61 = vld [vmem:[#allocation22 + $0x350] sm:$0xff]  ;;  %v2141_v62 = vld [vmem:[#allocation22 + $0x318] sm:$0xff] }
 0x241   :  { %v1237_v2 = vadd.f32 %v1236_v11, %v1166_v63  ;;  %v2140_v63 = vld [vmem:[#allocation22 + $0x310] sm:$0xff]  ;;  %v2133_v11 = vld [vmem:[#allocation22 + $0x2d8] sm:$0xff] }
 0x27e   :  { %v1305_v1 = vpop.f32.mrf.mxu0 }
 0x27f   :  { %v1376_v3 = vpop.f32.mrf.mxu1  ;;  %v1306_v4 = vadd.f32 %v1305_v1, %v1235_v0  ;;  %v2132_v0 = vld [vmem:[#allocation22 + $0x2d0] sm:$0xff]  ;;  %v2125_v1 = vld [vmem:[#allocation22 + $0x298] sm:$0xff] }
 0x280   :  { %v1307_v5 = vpop.f32.mrf.mxu0 }
 0x281   :  { %v1308_v6 = vadd.f32 %v1307_v5, %v1237_v2  ;;  %v1377_v26 = vadd.f32 %v1376_v3, %v1306_v4  ;;  %v1378_v7 = vpop.f32.mrf.mxu1  ;;  %v2124_v3 = vld [vmem:[#allocation22 + $0x290] sm:$0xff]  ;;  %v2117_v2 = vld [vmem:[#allocation22 + $0x258] sm:$0xff] }
 0x282   :  { %v2116_v4 = vld [vmem:[#allocation22 + $0x250] sm:$0xff]  ;;  %v2109_v5 = vld [vmem:[#allocation22 + $0x218] sm:$0xff] }
 0x283   :  { %v1379_v29 = vadd.f32 %v1378_v7, %v1308_v6  ;;  %v1383_v21 = vmax.f32 %v1377_v26, 0.0  ;;  %v2108_v6 = vld [vmem:[#allocation22 + $0x210] sm:$0xff]  ;;  %v2101_v26 = vld [vmem:[#allocation22 + $0x1d8] sm:$0xff] }
 0x284   :  { %v2100_v7 = vld [vmem:[#allocation22 + $0x1d0] sm:$0xff] }
 0x285   :  { %v1384_v16 = vmax.f32 %v1379_v29, 0.0  ;;  %v2093_v29 = vld [vmem:[#allocation22 + $0x198] sm:$0xff] }
 0x287   :  { %1660 = vmatprep.mubr.f32.mxu1 %v1384_v16  ;;  %v2092_v16 = vld [vmem:[#allocation22 + $0x190] sm:$0xff] }
 0x288   :  { %1661 = vmatmul.mubr.f32.vlgmr.msra.gmra.mxu1 %v1383_v21  ;;  %v2085_v21 = vld [vmem:[#allocation22 + $0x158] sm:$0xff] }
 0x289   :  { %2657 = vmatpush3.msk.msra.mxu1 %vm1792_vm0, %v1780_v37  ;;  %2662 = vmatprep.mubr.msk.f32.mxu1 %vm3099_vm1, %v3098_v36  ;;  %v2162_v37 = vld [vmem:[#allocation22 + $0x3c0] sm:$0xff] }
 0x28a   :  { %2658 = vmatprep.subr.mxu1 %v3098_v36 }
 0x28b   :  { %2659 = vmatpush3.msra.mxu1 %v1779_v39  ;;  %v2155_v39 = vld [vmem:[#allocation22 + $0x388] sm:$0xff] }
 0x28c   :  { %2660 = vmatprep.subr.mxu1 %v3098_v36 }
 0x28d   :  { %2661 = vmatpush3.msra.mxu1 %v1778_v40  ;;  %v2154_v40 = vld [vmem:[#allocation22 + $0x380] sm:$0xff] }
 0x28e   :  { %2665 = vmatprep.subr.mxu1 %v3098_v36 }
 0x2c4   :  { %v1591_v19 = vpop.f32.mrf.mxu0 }
 0x2c5   :  { %v1592_v24 = vadd.f32 %v1591_v19, %v1518_v20 }
 0x2c6   :  { %v1593_v23 = vpop.f32.mrf.mxu0 }
 0x2c7   :  { %v1594_v27 = vadd.f32 %v1593_v23, %v1522_v22  ;;  %v2603_v22 = vld [vmem:[#allocation17] ss:$0 sm:$0xff] }
 0x348   :  { %v1662_v25 = vpop.f32.mrf.mxu1 }
 0x349   :  { %v1663_v28 = vadd.f32 %v1662_v25, %v1592_v24 }
 0x34a   :  { %v1664_v30 = vpop.f32.mrf.mxu1 }
 0x34b   :  { %v1665_v31 = vadd.f32 %v1664_v30, %v1594_v27  ;;  %v1667_v34 = vmax.f32 %v1663_v28, 0.0  ;;  %v1952_v30 = vld [vmem:[#allocation2] sm:$0x3] }
 0x34d   :  { %v1668_v33 = vmax.f32 %v1665_v31, 0.0 }
 0x34f   :  { %1772 = vmatprep.mubr.f32.mxu0 %v1668_v33 }
 0x350   :  { %1773 = vmatmul.mubr.f32.vlgmr.msra.gmra.mxu0 %v1667_v34 }
 0x351   :  { %2347 = vmatprep.mubr.f32.mxu0 %v3098_v36  ;;  %2284 = vmatpush1.msra.mxu0 %v2164_v58  ;;  %v2098_v58 = vld [vmem:[#allocation22 + $0x1c0] sm:$0xff] }
 0x352   :  { %2285 = vmatprep.subr.mxu0 %v2157_v59  ;;  %v2091_v59 = vld [vmem:[#allocation22 + $0x188] sm:$0xff] }
 0x353   :  { %2286 = vmatpush1.msra.mxu0 %v2156_v60  ;;  %v2090_v60 = vld [vmem:[#allocation22 + $0x180] sm:$0xff] }
 0x354   :  { %2287 = vmatprep.subr.mxu0 %v2149_v8  ;;  %v2083_v8 = vld [vmem:[#allocation22 + $0x148] sm:$0xff] }
 0x355   :  { %2288 = vmatpush1.msra.mxu0 %v2148_v61  ;;  %v2082_v61 = vld [vmem:[#allocation22 + $0x140] sm:$0xff] }
 0x356   :  { %2289 = vmatprep.subr.mxu0 %v2141_v62  ;;  %v2075_v62 = vld [vmem:[#allocation22 + $0x108] sm:$0xff] }
 0x357   :  { %2290 = vmatpush1.msra.mxu0 %v2140_v63  ;;  %v2074_v63 = vld [vmem:[#allocation22 + $0x100] sm:$0xff] }
 0x358   :  { %2291 = vmatprep.subr.mxu0 %v2133_v11  ;;  %v2067_v11 = vld [vmem:[#allocation22 + $0xc8] sm:$0xff] }
 0x359   :  { %2292 = vmatpush1.msra.mxu0 %v2132_v0  ;;  %v2066_v0 = vld [vmem:[#allocation22 + $0xc0] sm:$0xff] }
 0x35a   :  { %2293 = vmatprep.subr.mxu0 %v2125_v1  ;;  %v2059_v1 = vld [vmem:[#allocation22 + $0x88] sm:$0xff] }
 0x35b   :  { %2294 = vmatpush1.msra.mxu0 %v2124_v3  ;;  %v2058_v3 = vld [vmem:[#allocation22 + $0x80] sm:$0xff] }
 0x35c   :  { %2295 = vmatprep.subr.mxu0 %v2117_v2  ;;  %v2051_v2 = vld [vmem:[#allocation22 + $0x48] sm:$0xff] }
 0x35d   :  { %2296 = vmatpush1.msra.mxu0 %v2116_v4  ;;  %v2053_v4 = vld [vmem:[#allocation22 + $0x58] sm:$0xff] }
 0x35e   :  { %2297 = vmatprep.subr.mxu0 %v2109_v5  ;;  %v2050_v5 = vld [vmem:[#allocation22 + $0x40] sm:$0xff] }
 0x35f   :  { %2298 = vmatpush1.msra.mxu0 %v2108_v6  ;;  %v2052_v6 = vld [vmem:[#allocation22 + $0x50] sm:$0xff] }
 0x360   :  { %2299 = vmatprep.subr.mxu0 %v2101_v26  ;;  %v2043_v26 = vld [vmem:[#allocation22 + $0x8] sm:$0xff] }
 0x361   :  { %2300 = vmatpush1.msra.mxu0 %v2100_v7  ;;  %v2045_v7 = vld [vmem:[#allocation22 + $0x18] sm:$0xff] }
 0x362   :  { %2301 = vmatprep.subr.mxu0 %v2093_v29  ;;  %v2042_v29 = vld [vmem:[#allocation22] sm:$0xff] }
 0x363   :  { %2302 = vmatpush1.msra.mxu0 %v2092_v16  ;;  %v2044_v16 = vld [vmem:[#allocation22 + $0x10] sm:$0xff] }
 0x364   :  { %2303 = vmatprep.subr.mxu0 %v2085_v21  ;;  %v2167_v21 = vld [vmem:[#allocation22 + $0x3e8] sm:$0xff] }
 0x365   :  { %2304 = vmatpush1.msra.mxu0 %v2084_v35  ;;  %v2169_v35 = vld [vmem:[#allocation22 + $0x3f8] sm:$0xff] }
 0x366   :  { %2305 = vmatprep.subr.mxu0 %v2077_v9  ;;  %v2606_v9 = vld [vmem:[#allocation20] ss:$0 sm:$0xff] }
 0x367   :  { %2306 = vmatpush1.msra.mxu0 %v2076_v10 }
 0x368   :  { %2307 = vmatprep.subr.mxu0 %v2069_v12 }
 0x369   :  { %2308 = vmatpush1.msra.mxu0 %v2068_v13 }
 0x36a   :  { %2309 = vmatprep.subr.mxu0 %v2061_v14 }
 0x36b   :  { %2310 = vmatpush1.msra.mxu0 %v2060_v15  ;;  %v2166_v15 = vld [vmem:[#allocation22 + $0x3e0] sm:$0xff] }
 0x36c   :  { %2311 = vmatprep.subr.mxu0 %v2053_v4  ;;  %v2081_v4 = vld [vmem:[#allocation22 + $0x138] sm:$0xff] }
 0x36d   :  { %2312 = vmatpush1.msra.mxu0 %v2052_v6  ;;  %v2080_v6 = vld [vmem:[#allocation22 + $0x130] sm:$0xff] }
 0x36e   :  { %2313 = vmatprep.subr.mxu0 %v2045_v7  ;;  %v2073_v7 = vld [vmem:[#allocation22 + $0xf8] sm:$0xff] }
 0x36f   :  { %2314 = vmatpush1.msra.mxu0 %v2044_v16  ;;  %v2072_v16 = vld [vmem:[#allocation22 + $0xf0] sm:$0xff] }
 0x370   :  { %2425 = vmatprep.subr.mxu0 %v2169_v35  ;;  %v2065_v35 = vld [vmem:[#allocation22 + $0xb8] sm:$0xff] }
 0x410   :  { %v2641_v42 = vpop.f32.mrf.mxu0 }
 0x412   :  { %v2642_v44 = vpop.f32.mrf.mxu0 }
 0x413   :  { %v2643_v45 = vadd.f32 %v2642_v44, %v2641_v42  ;;  %v2147_v42 = vld [vmem:[#allocation22 + $0x348] sm:$0xff] }
 0x414   :  { %v2139_v44 = vld [vmem:[#allocation22 + $0x308] sm:$0xff] }
 0x415   :  { %v1775_v46 = vadd.f32 %v2643_v45, %v2599_v43  ;;  %v2146_v43 = vld [vmem:[#allocation22 + $0x340] sm:$0xff] }
 0x416   :  { %v2138_v45 = vld [vmem:[#allocation22 + $0x300] sm:$0xff] }
 0x417   :  { %2663 = vmatmul.mubr.msk.f32.vlgmr.msra.gmra.mxu1 %vm1788_vm2, %v1775_v46 }
 0x418   :  { %2666 = vmatpush3.msk.msra.mxu1 %vm1792_vm0, %v1868_v47  ;;  %2671 = vmatprep.mubr.msk.f32.mxu1 %vm3099_vm1, %v3098_v36  ;;  %v2130_v47 = vld [vmem:[#allocation22 + $0x2c0] sm:$0xff] }
 0x419   :  { %2667 = vmatprep.subr.mxu1 %v3098_v36 }
 0x41a   :  { %2668 = vmatpush3.msra.mxu1 %v1867_v48  ;;  %v2123_v48 = vld [vmem:[#allocation22 + $0x288] sm:$0xff] }
 0x41b   :  { %2669 = vmatprep.subr.mxu1 %v3098_v36 }
 0x41c   :  { %2670 = vmatpush3.msra.mxu1 %v1866_v49  ;;  %v2122_v49 = vld [vmem:[#allocation22 + $0x280] sm:$0xff] }
 0x41d   :  { %2672 = vmatmul.mubr.msk.f32.vlgmr.msra.gmra.mxu1 %vm1788_vm2, %v1775_v46  ;;  %2674 = vmatprep.subr.mxu1 %v3098_v36  ;;  %v2131_v46 = vld [vmem:[#allocation22 + $0x2c8] sm:$0xff] }
 0x41e   :  { %2680 = vmatprep.mubr.msk.f32.mxu1 %vm3099_vm1, %v3098_v36  ;;  %2675 = vmatpush3.msk.msra.mxu1 %vm1792_vm0, %v1957_v50  ;;  %v2115_v50 = vld [vmem:[#allocation22 + $0x248] sm:$0xff] }
 0x41f   :  { %2676 = vmatprep.subr.mxu1 %v3098_v36 }
 0x420   :  { %2677 = vmatpush3.msra.mxu1 %v1956_v51  ;;  %v2114_v51 = vld [vmem:[#allocation22 + $0x240] sm:$0xff] }
 0x421   :  { %2678 = vmatprep.subr.mxu1 %v3098_v36 }
 0x422   :  { %2679 = vmatpush3.msra.mxu1 %v1955_v53  ;;  %v2107_v53 = vld [vmem:[#allocation22 + $0x208] sm:$0xff] }
 0x423   :  { %2212 = vmatprep.subr.mxu1 %v2163_v54  ;;  %v2106_v54 = vld [vmem:[#allocation22 + $0x200] sm:$0xff] }
 0x4d7   :  { %v1862_v18 = vpop.f32.mrf.mxu1 }
 0x4d8   :  { %v1863_v19 = vadd.f32 %v2600_v17, %v1862_v18  ;;  %v2168_v17 = vld [vmem:[#allocation22 + $0x3f0] sm:$0xff]  ;;  %v2159_v18 = vld [vmem:[#allocation22 + $0x3a8] sm:$0xff] }
 0x4d9   :  { %v2664_v20 = vpop.f32.mrf.mxu1 }
 0x4da   :  { %2544 = vst.msk [vmem:[#allocation26] sm:$0x3] %vm2542_vm3, %v1863_v19  ;;  %v2158_v20 = vld [vmem:[#allocation22 + $0x3a0] sm:$0xff] }
 0x4dd   :  { %v1945_v23 = vpop.f32.mrf.mxu1 }
 0x4de   :  { %v1946_v24 = vadd.f32 %v2603_v22, %v1945_v23  ;;  %v2160_v22 = vld [vmem:[#allocation22 + $0x3b0] sm:$0xff]  ;;  %v2151_v23 = vld [vmem:[#allocation22 + $0x368] sm:$0xff] }
 0x4df   :  { %v2673_v25 = vpop.f32.mrf.mxu1 }
 0x4e0   :  { %v1949_v27 = vmul.f32 0.5, %v1946_v24  ;;  %2545 = vst.msk [vmem:[#allocation28] sm:$0x3] %vm2542_vm3, %v1946_v24  ;;  %v2153_v24 = vld [vmem:[#allocation22 + $0x378] sm:$0xff]  ;;  %v2150_v25 = vld [vmem:[#allocation22 + $0x360] sm:$0xff] }
 0x4e2   :  { %v1950_v28 = vmul.f32 1.442695, %v1949_v27  ;;  %v2152_v27 = vld [vmem:[#allocation22 + $0x370] sm:$0xff] }
 0x4e4   :  { %2713 = vpow2.f32 %v1950_v28  ;;  %v2143_v28 = vld [vmem:[#allocation22 + $0x328] sm:$0xff] }
 0x4f1   :  { %v2714_v31 = vpop.eup %2713 }
 0x4f2   :  { %v1953_v33 = vmul.f32 %v2714_v31, %v1952_v30  ;;  %v2145_v30 = vld [vmem:[#allocation22 + $0x338] sm:$0xff]  ;;  %v2142_v31 = vld [vmem:[#allocation22 + $0x320] sm:$0xff] }
 0x4f4   :  { %v1954_v34 = vadd.f32 %v1953_v33, %v1863_v19  ;;  %v2161_v19 = vld [vmem:[#allocation22 + $0x3b8] sm:$0xff]  ;;  %v2144_v33 = vld [vmem:[#allocation22 + $0x330] sm:$0xff] }
 0x4f6   :  { %2681 = vmatmul.mubr.msk.f32.vlgmr.msra.gmra.mxu1 %vm1788_vm2, %v1954_v34  ;;  %2543 = vst.msk [vmem:[#allocation25] sm:$0x3] %vm2542_vm3, %v1954_v34  ;;  %v2135_v34 = vld [vmem:[#allocation22 + $0x2e8] sm:$0xff] }
 0x4f7   :  { %2213 = vmatpush1.msra.mxu1 %v2162_v37  ;;  %2276 = vmatprep.mubr.f32.mxu1 %v3098_v36  ;;  %v2137_v37 = vld [vmem:[#allocation22 + $0x2f8] sm:$0xff] }
 0x4f8   :  { %2214 = vmatprep.subr.mxu1 %v2155_v39  ;;  %v2134_v39 = vld [vmem:[#allocation22 + $0x2e0] sm:$0xff] }
 0x4f9   :  { %2215 = vmatpush1.msra.mxu1 %v2154_v40  ;;  %v2136_v40 = vld [vmem:[#allocation22 + $0x2f0] sm:$0xff] }
 0x4fa   :  { %2216 = vmatprep.subr.mxu1 %v2147_v42  ;;  %v2127_v42 = vld [vmem:[#allocation22 + $0x2a8] sm:$0xff] }
 0x4fb   :  { %2217 = vmatpush1.msra.mxu1 %v2146_v43  ;;  %v2129_v43 = vld [vmem:[#allocation22 + $0x2b8] sm:$0xff] }
 0x4fc   :  { %2218 = vmatprep.subr.mxu1 %v2139_v44  ;;  %v2126_v44 = vld [vmem:[#allocation22 + $0x2a0] sm:$0xff] }
 0x4fd   :  { %2219 = vmatpush1.msra.mxu1 %v2138_v45  ;;  %v2128_v45 = vld [vmem:[#allocation22 + $0x2b0] sm:$0xff] }
 0x4fe   :  { %2220 = vmatprep.subr.mxu1 %v2131_v46  ;;  %v2119_v46 = vld [vmem:[#allocation22 + $0x268] sm:$0xff] }
 0x4ff   :  { %2221 = vmatpush1.msra.mxu1 %v2130_v47  ;;  %v2121_v47 = vld [vmem:[#allocation22 + $0x278] sm:$0xff] }
 0x500   :  { %2222 = vmatprep.subr.mxu1 %v2123_v48  ;;  %v2118_v48 = vld [vmem:[#allocation22 + $0x260] sm:$0xff] }
 0x501   :  { %2223 = vmatpush1.msra.mxu1 %v2122_v49  ;;  %v2120_v49 = vld [vmem:[#allocation22 + $0x270] sm:$0xff] }
 0x502   :  { %2224 = vmatprep.subr.mxu1 %v2115_v50  ;;  %v2111_v50 = vld [vmem:[#allocation22 + $0x228] sm:$0xff] }
 0x503   :  { %2225 = vmatpush1.msra.mxu1 %v2114_v51  ;;  %v2113_v51 = vld [vmem:[#allocation22 + $0x238] sm:$0xff] }
 0x504   :  { %2226 = vmatprep.subr.mxu1 %v2107_v53  ;;  %v2110_v53 = vld [vmem:[#allocation22 + $0x220] sm:$0xff] }
 0x505   :  { %2227 = vmatpush1.msra.mxu1 %v2106_v54  ;;  %v2112_v54 = vld [vmem:[#allocation22 + $0x230] sm:$0xff] }
 0x506   :  { %2228 = vmatprep.subr.mxu1 %v2099_v55  ;;  %v2103_v55 = vld [vmem:[#allocation22 + $0x1e8] sm:$0xff] }
 0x507   :  { %2229 = vmatpush1.msra.mxu1 %v2098_v58  ;;  %v2105_v58 = vld [vmem:[#allocation22 + $0x1f8] sm:$0xff] }
 0x508   :  { %2230 = vmatprep.subr.mxu1 %v2091_v59  ;;  %v2102_v59 = vld [vmem:[#allocation22 + $0x1e0] sm:$0xff] }
 0x509   :  { %2231 = vmatpush1.msra.mxu1 %v2090_v60  ;;  %v2104_v60 = vld [vmem:[#allocation22 + $0x1f0] sm:$0xff] }
 0x50a   :  { %2232 = vmatprep.subr.mxu1 %v2083_v8  ;;  %v2095_v8 = vld [vmem:[#allocation22 + $0x1a8] sm:$0xff] }
 0x50b   :  { %2233 = vmatpush1.msra.mxu1 %v2082_v61  ;;  %v2097_v61 = vld [vmem:[#allocation22 + $0x1b8] sm:$0xff] }
 0x50c   :  { %2234 = vmatprep.subr.mxu1 %v2075_v62  ;;  %v2094_v62 = vld [vmem:[#allocation22 + $0x1a0] sm:$0xff] }
 0x50d   :  { %2235 = vmatpush1.msra.mxu1 %v2074_v63  ;;  %v2096_v63 = vld [vmem:[#allocation22 + $0x1b0] sm:$0xff] }
 0x50e   :  { %2236 = vmatprep.subr.mxu1 %v2067_v11  ;;  %v2087_v11 = vld [vmem:[#allocation22 + $0x168] sm:$0xff] }
 0x50f   :  { %2237 = vmatpush1.msra.mxu1 %v2066_v0  ;;  %v2089_v0 = vld [vmem:[#allocation22 + $0x178] sm:$0xff] }
 0x510   :  { %2238 = vmatprep.subr.mxu1 %v2059_v1  ;;  %v2086_v1 = vld [vmem:[#allocation22 + $0x160] sm:$0xff] }
 0x511   :  { %2239 = vmatpush1.msra.mxu1 %v2058_v3  ;;  %v2088_v3 = vld [vmem:[#allocation22 + $0x170] sm:$0xff] }
 0x512   :  { %2240 = vmatprep.subr.mxu1 %v2051_v2  ;;  %v2079_v2 = vld [vmem:[#allocation22 + $0x128] sm:$0xff] }
 0x513   :  { %2241 = vmatpush1.msra.mxu1 %v2050_v5  ;;  %v2078_v5 = vld [vmem:[#allocation22 + $0x120] sm:$0xff] }
 0x514   :  { %2242 = vmatprep.subr.mxu1 %v2043_v26  ;;  %v2071_v26 = vld [vmem:[#allocation22 + $0xe8] sm:$0xff] }
 0x515   :  { %2243 = vmatpush1.msra.mxu1 %v2042_v29  ;;  %v2070_v29 = vld [vmem:[#allocation22 + $0xe0] sm:$0xff] }
 0x516   :  { %2354 = vmatprep.subr.mxu1 %v2167_v21  ;;  %v2063_v21 = vld [vmem:[#allocation22 + $0xa8] sm:$0xff] }
 0x5b6   :  { %v2037_v10 = vpop.f32.mrf.mxu1 }
 0x5b7   :  { %v2038_v12 = vadd.f32 %v2606_v9, %v2037_v10  ;;  %v2062_v9 = vld [vmem:[#allocation22 + $0xa0] sm:$0xff]  ;;  %v2064_v10 = vld [vmem:[#allocation22 + $0xb0] sm:$0xff] }
 0x5b8   :  { %v2682_v13 = vpop.f32.mrf.mxu1 }
 0x5b9   :  { %v3444_v14 = vmax.f32 %v2038_v12, 0.0  ;;  %v2055_v12 = vld [vmem:[#allocation22 + $0x68] sm:$0xff]  ;;  %v2057_v13 = vld [vmem:[#allocation22 + $0x78] sm:$0xff] }
 0x5bb   :  { %2277 = vmatmul.mubr.f32.vlgmr.msra.gmra.mxu1 %v3444_v14  ;;  %2348 = vmatmul.mubr.f32.vlgmr.msra.gmra.mxu0 %v3444_v14 }
 0x5bc   :  { %2355 = vmatpush1.msra.mxu1 %v2166_v15  ;;  %2426 = vmatpush1.msra.mxu0 %v2168_v17  ;;  %v2054_v15 = vld [vmem:[#allocation22 + $0x60] sm:$0xff]  ;;  %v2056_v17 = vld [vmem:[#allocation22 + $0x70] sm:$0xff] }
 0x5bd   :  { %2356 = vmatprep.subr.mxu1 %v2159_v18  ;;  %2427 = vmatprep.subr.mxu0 %v2161_v19  ;;  %v2047_v18 = vld [vmem:[#allocation22 + $0x28] sm:$0xff]  ;;  %v2049_v19 = vld [vmem:[#allocation22 + $0x38] sm:$0xff] }
 0x5be   :  { %2357 = vmatpush1.msra.mxu1 %v2158_v20  ;;  %2428 = vmatpush1.msra.mxu0 %v2160_v22  ;;  %v2046_v20 = vld [vmem:[#allocation22 + $0x20] sm:$0xff]  ;;  %v2048_v22 = vld [vmem:[#allocation22 + $0x30] sm:$0xff] }
 0x5bf   :  { %2358 = vmatprep.subr.mxu1 %v2151_v23  ;;  %2429 = vmatprep.subr.mxu0 %v2153_v24 }
 0x5c0   :  { %2359 = vmatpush1.msra.mxu1 %v2150_v25  ;;  %2430 = vmatpush1.msra.mxu0 %v2152_v27 }
 0x5c1   :  { %2360 = vmatprep.subr.mxu1 %v2143_v28  ;;  %2431 = vmatprep.subr.mxu0 %v2145_v30 }
 0x5c2   :  { %2361 = vmatpush1.msra.mxu1 %v2142_v31  ;;  %2432 = vmatpush1.msra.mxu0 %v2144_v33 }
 0x5c3   :  { %2362 = vmatprep.subr.mxu1 %v2135_v34  ;;  %2433 = vmatprep.subr.mxu0 %v2137_v37 }
 0x5c4   :  { %2363 = vmatpush1.msra.mxu1 %v2134_v39  ;;  %2434 = vmatpush1.msra.mxu0 %v2136_v40 }
 0x5c5   :  { %2364 = vmatprep.subr.mxu1 %v2127_v42  ;;  %2435 = vmatprep.subr.mxu0 %v2129_v43 }
 0x5c6   :  { %2365 = vmatpush1.msra.mxu1 %v2126_v44  ;;  %2436 = vmatpush1.msra.mxu0 %v2128_v45 }
 0x5c7   :  { %2366 = vmatprep.subr.mxu1 %v2119_v46  ;;  %2437 = vmatprep.subr.mxu0 %v2121_v47 }
 0x5c8   :  { %2367 = vmatpush1.msra.mxu1 %v2118_v48  ;;  %2438 = vmatpush1.msra.mxu0 %v2120_v49 }
 0x5c9   :  { %2368 = vmatprep.subr.mxu1 %v2111_v50  ;;  %2439 = vmatprep.subr.mxu0 %v2113_v51 }
 0x5ca   :  { %2369 = vmatpush1.msra.mxu1 %v2110_v53  ;;  %2440 = vmatpush1.msra.mxu0 %v2112_v54 }
 0x5cb   :  { %2370 = vmatprep.subr.mxu1 %v2103_v55  ;;  %2441 = vmatprep.subr.mxu0 %v2105_v58 }
 0x5cc   :  { %2371 = vmatpush1.msra.mxu1 %v2102_v59  ;;  %2442 = vmatpush1.msra.mxu0 %v2104_v60 }
 0x5cd   :  { %2372 = vmatprep.subr.mxu1 %v2095_v8  ;;  %2443 = vmatprep.subr.mxu0 %v2097_v61 }
 0x5ce   :  { %2373 = vmatpush1.msra.mxu1 %v2094_v62  ;;  %2444 = vmatpush1.msra.mxu0 %v2096_v63 }
 0x5cf   :  { %2374 = vmatprep.subr.mxu1 %v2087_v11  ;;  %2445 = vmatprep.subr.mxu0 %v2089_v0 }
 0x5d0   :  { %2375 = vmatpush1.msra.mxu1 %v2086_v1  ;;  %2446 = vmatpush1.msra.mxu0 %v2088_v3 }
 0x5d1   :  { %2376 = vmatprep.subr.mxu1 %v2079_v2  ;;  %2447 = vmatprep.subr.mxu0 %v2081_v4 }
 0x5d2   :  { %2377 = vmatpush1.msra.mxu1 %v2078_v5  ;;  %2448 = vmatpush1.msra.mxu0 %v2080_v6 }
 0x5d3   :  { %2378 = vmatprep.subr.mxu1 %v2071_v26  ;;  %2449 = vmatprep.subr.mxu0 %v2073_v7 }
 0x5d4   :  { %2379 = vmatpush1.msra.mxu1 %v2070_v29  ;;  %2450 = vmatpush1.msra.mxu0 %v2072_v16 }
 0x5d5   :  { %2380 = vmatprep.subr.mxu1 %v2063_v21  ;;  %2451 = vmatprep.subr.mxu0 %v2065_v35 }
 0x5d6   :  { %2381 = vmatpush1.msra.mxu1 %v2062_v9  ;;  %2452 = vmatpush1.msra.mxu0 %v2064_v10 }
 0x5d7   :  { %2382 = vmatprep.subr.mxu1 %v2055_v12  ;;  %2453 = vmatprep.subr.mxu0 %v2057_v13 }
 0x5d8   :  { %2383 = vmatpush1.msra.mxu1 %v2054_v15  ;;  %2454 = vmatpush1.msra.mxu0 %v2056_v17 }
 0x5d9   :  { %2384 = vmatprep.subr.mxu1 %v2047_v18  ;;  %2455 = vmatprep.subr.mxu0 %v2049_v19 }
 0x5da   :  { %2385 = vmatpush1.msra.mxu1 %v2046_v20  ;;  %2418 = vmatprep.mubr.f32.mxu1 %v3098_v36 }
 0x5db   :  { %2456 = vmatpush1.msra.mxu0 %v2048_v22  ;;  %2489 = vmatprep.mubr.f32.mxu0 %v3098_v36 }
 0x5dc   :  { %2419 = vmatmul.mubr.f32.vlgmr.msra.gmra.mxu1 %v3444_v14  ;;  %2490 = vmatmul.mubr.f32.vlgmr.msra.gmra.mxu0 %v3444_v14 }
 0x5dd   :  { %3006 = shalt.err (!%p3003_p4)
}
 0x5de   :  { %2567 = dma.vmem_to_hbm [thread:$0]  %s2565_s10, 32, %s3499_s18, [#allocation27]  }
 0x5df   :  { %s3015_s12 = scalar_lea.vmem %s2555_s21, 32  ;;  %p3020_p6 = scmp.lt.s32.totalorder %s2555_s21, %s2555_s21 }
 0x5e0   :  { %p3016_p5 = scmp.ne.s32.totalorder %s2555_s21, %s3015_s12  ;;  %p3021_p7 = scmp.lt.s32.totalorder %s3015_s12, %s3015_s12 }
 0x5e2   :  { %p3022_p8 = por %p3021_p7, %p3020_p6 }
 0x5e4   :  { %p3023_p9 = pnand %p3022_p8, %p3016_p5 }
 0x5e6   :  { %3026 = shalt.err (!%p3023_p9)
}
 0x5e7   :  { %2557 = dma.vmem_to_hbm [thread:$0]  %s2555_s21, 32, %s3498_s17, [#allocation4]  }
 0x5e8   :  { %s3102_s14 = smov [#allocation28]  }
 0x5e9   :  { %s2574_s15 = sshll.u32 %s3102_s14, 4  ;;  %s2575_s15 = int_to_ptr.vmem [resolvable:$true] %s2574_s15 }
 0x5ea   :  { %s3035_s24 = scalar_lea.vmem %s2575_s15, 32  ;;  %p3040_p11 = scmp.lt.s32.totalorder %s2575_s15, %s2575_s15 }
 0x5eb   :  { %p3036_p10 = scmp.ne.s32.totalorder %s2575_s15, %s3035_s24  ;;  %p3041_p12 = scmp.lt.s32.totalorder %s3035_s24, %s3035_s24 }
 0x5ed   :  { %p3042_p13 = por %p3041_p12, %p3040_p11 }
 0x5ef   :  { %p3043_p0 = pnand %p3042_p13, %p3036_p10 }
 0x5f1   :  { %3046 = shalt.err (!%p3043_p0)
}
 0x5f2   :  { %2577 = dma.vmem_to_hbm [thread:$0]  %s2575_s15, 32, %s3500_s19, [#allocation27]   ;;  %v2170_v36 = vld [vmem:[#allocation23] sm:$0xff]  ;;  %v2194_v44 = vsub.s32 5, %v3245_v41  ;;  %v2202_v45 = vsub.s32 7, %v3245_v41 }
 0x5f3   :  { %v2175_v14 = vrot.slane %v2170_v36, %v3301_v32  ;;  %v2183_v23 = vrot.slane %v2170_v36, %v759_v56  ;;  %v2179_v24 = vrot.slane %v2170_v36, %v3306_v38  ;;  %v2187_v25 = vrot.slane %v2170_v36, %v763_v57 }
 0x5f4   :  { %v2190_v38 = vsub.s32 4, %v3245_v41  ;;  %v2198_v57 = vsub.s32 6, %v3245_v41  ;;  %v2195_v48 = vrot.slane %v2170_v36, %v2194_v44  ;;  %v2203_v49 = vrot.slane %v2170_v36, %v2202_v45 }
 0x5f6   :  { %v2191_v46 = vrot.slane %v2170_v36, %v2190_v38  ;;  %v2199_v47 = vrot.slane %v2170_v36, %v2198_v57 }
 0x67b   :  { %v2278_v27 = vpop.f32.mrf.mxu1  ;;  %v2349_v28 = vpop.f32.mrf.mxu0 }
 0x67c   :  { %v2279_v33 = vadd.f32 %v2278_v27, %v2175_v14  ;;  %v2350_v34 = vadd.f32 %v2349_v28, %v2183_v23 }
 0x67d   :  { %v2280_v30 = vpop.f32.mrf.mxu1  ;;  %v2351_v31 = vpop.f32.mrf.mxu0 }
 0x67e   :  { %v2281_v37 = vadd.f32 %v2280_v30, %v2179_v24  ;;  %v2352_v39 = vadd.f32 %v2351_v31, %v2187_v25 }
 0x680   :  { %v2504_v40 = vcombine.low %v2279_v33, %v2281_v37  ;;  %v2505_v42 = vcombine.low %v2350_v34, %v2352_v39 }
 0x682   :  { %v2512_v32 = vrot.slane %v2504_v40, %v3251_v52  ;;  %v2519_v43 = vrot.slane %v2505_v42, %v3251_v52 }
 0x684   :  { %v2520_v56 = vcombine.low %v2512_v32, %v2519_v43 }
 0x686   :  { %2540 = vst [vmem:[%s3497_s16] sm:$0xff] %v2520_v56 }
 0x69c   :  { %v2420_v50 = vpop.f32.mrf.mxu1  ;;  %v2491_v51 = vpop.f32.mrf.mxu0 }
 0x69d   :  { %v2421_v55 = vadd.f32 %v2420_v50, %v2191_v46  ;;  %v2492_v58 = vadd.f32 %v2491_v51, %v2199_v47 }
 0x69e   :  { %v2422_v53 = vpop.f32.mrf.mxu1  ;;  %v2493_v54 = vpop.f32.mrf.mxu0 }
 0x69f   :  { %v2423_v59 = vadd.f32 %v2422_v53, %v2195_v48  ;;  %v2494_v60 = vadd.f32 %v2493_v54, %v2203_v49 }
 0x6a1   :  { %v2521_v8 = vcombine.low %v2421_v55, %v2423_v59  ;;  %v2522_v61 = vcombine.low %v2492_v58, %v2494_v60 }
 0x6a3   :  { %v2529_v62 = vrot.slane %v2521_v8, %v3251_v52  ;;  %v2536_v63 = vrot.slane %v2522_v61, %v3251_v52 }
 0x6a5   :  { %v2537_v11 = vcombine.low %v2529_v62, %v2536_v63 }
 0x6a7   :  { %2541 = vst [vmem:[%s3497_s16 + $0x8] sm:$0xff] %v2537_v11 }
 0x6a8   :  { %3071 = dma.done.wait [#allocation4], 32  }
 0x6a9   :  { %3072 = vsyncadd [#allocation4], 4294967264 }
 0x6aa   :  { %3073 = dma.done.wait [#allocation27], 64  }
 0x6ab   :  { %3074 = vsyncadd [#allocation27], 4294967232 }
 0x6ac   :  { %2589 = vsyncpa [#allocation3], 1 }
 0x6ad   :  { %2590 = vsyncpa [#allocation6], 1 }
 0x6ae   :  { %2591 = vsyncpa [#allocation9], 1 }
 0x6af   :  { %2592 = vsyncpa [#allocation12], 1 }
 0x6b0   :  { %2593 = vsyncpa [#allocation15], 1 }
 0x6b1   :  { %2594 = vsyncpa [#allocation18], 1 }
 0x6b2   :  { %2595 = vsyncpa [#allocation21], 1 }
 0x6b3   :  { %2596 = vsyncpa [#allocation24], 1 }
 0x6b4   :  { %2597 = vsyncpa [#allocation4], 1 }
 0x6b5   :  { %2598 = vsyncpa [#allocation27], 1 }

</bundles_post_ra>
